<compile_context>
chip_gen: v7x
topology: tpu7x:2x2x1
jax: 0.10.0
libtpu: 0.0.40
codegen_flags: <defaults>
</compile_context>

<pallas_src>
import math

import numpy as np
import jax
import jax.numpy as jnp
from jax import lax
from jax.experimental import pallas as pl
from jax.experimental.pallas import tpu as pltpu

NUM_CLASSES = 5
NUM_ANCHORS = 4
HEAD_C = NUM_ANCHORS * 4 + NUM_ANCHORS * NUM_CLASSES     # 36 = loc(16) ++ conf(20)

PACKW = 384                  # lane width of both constant packs
_MAX_IMGS_PER_STEP = 8       # cap on images stacked into one grid step


def _round_up(x, m):
    return -(-x // m) * m


# ----------------------------------------------------------------------------
# Static geometry (pure numpy, depends only on layer shapes)
# ----------------------------------------------------------------------------
# Activations are stored with a 1-pixel zero border in rows and column blocks,
# so convs with pad<=1 never need explicit padding ops.  All convs (including
# the multibox heads) keep the same [H+2] row count as their input, which lets
# the vertical taps be plain +-1 row shifts of the per-tap matmul results.

def _conv_geom(hin, win, cin, cout, kh, kw, stride, pad, n_pad_to=None):
    hout = (hin + 2 * pad - kh) // stride + 1
    wout = (win + 2 * pad - kw) // stride + 1
    wp_in = win + 2
    w_stored = wout + 2
    n_valid = w_stored * cout
    n_out = n_valid if n_pad_to is None else n_pad_to
    # column tap tensor: input column block -> output column block, per kw tap
    T = np.zeros((kw, wp_in, w_stored), np.float32)
    for j in range(wout):
        for dj in range(kw):
            T[dj, stride * j + dj - pad + 1, j + 1] = 1.0
    bval = np.zeros((w_stored,), np.float32)
    bval[1:1 + wout] = 1.0
    return dict(hin=hin, win=win, cin=cin, cout=cout, kh=kh, kw=kw,
                stride=stride, pad=pad, hout=hout, wout=wout,
                k=wp_in * cin, n_valid=n_valid, n=n_out, T=T, bval=bval,
                r_in=hin + 2, r_out=hout + 2)


_GEOM = dict(
    conv1=_conv_geom(16, 16, 3, 8, 3, 3, 1, 1),
    conv2=_conv_geom(16, 16, 8, 8, 3, 3, 1, 1),
    conv3=_conv_geom(8, 8, 8, 16, 3, 3, 1, 1),          # hooked feature -> L2Norm
    conv4=_conv_geom(4, 4, 16, 32, 3, 3, 1, 1),
    extra0=_conv_geom(4, 4, 32, 16, 1, 1, 1, 0),
    extra1=_conv_geom(4, 4, 16, 32, 3, 3, 2, 1),
    head0=_conv_geom(8, 8, 16, HEAD_C, 3, 3, 1, 1, n_pad_to=384),
    head1=_conv_geom(4, 4, 32, HEAD_C, 3, 3, 1, 1, n_pad_to=256),
    head2=_conv_geom(2, 2, 32, HEAD_C, 3, 3, 1, 1, n_pad_to=256),
)


def _pool_mats(hin, win, c, bt):
    """Block-diagonal row-compaction matrices + column-compaction matrix."""
    hout, wout = hin // 2, win // 2
    r_in, r_out = hin + 2, hout + 2
    ra = np.zeros((bt * r_out, bt * r_in), np.float32)
    rb = np.zeros((bt * r_out, bt * r_in), np.float32)
    for b in range(bt):
        for i in range(hout):
            ra[b * r_out + i + 1, b * r_in + 2 * i + 1] = 1.0
            rb[b * r_out + i + 1, b * r_in + 2 * i + 2] = 1.0
    # column compaction picks the pair-max that the lane-shift+max left at
    # block (2j+1) and writes it to block (j+1)
    ca = np.zeros(((win + 2) * c, (wout + 2) * c), np.float32)
    for j in range(wout):
        for ch in range(c):
            ca[(2 * j + 1) * c + ch, (j + 1) * c + ch] = 1.0
    return ra, rb, ca


def _stride2_sel(g, bt):
    """Block-diagonal row gather for the stride-2 extra conv."""
    sel = np.zeros((g['kh'], bt * g['r_out'], bt * g['r_in']), np.float32)
    for b in range(bt):
        for i in range(g['hout']):
            for di in range(g['kh']):
                src = g['stride'] * i + di - g['pad'] + 1
                sel[di, b * g['r_out'] + i + 1, b * g['r_in'] + src] = 1.0
    return sel


# ----------------------------------------------------------------------------
# Constant packs (weights/selections -> one bf16 slab, biases/gamma -> one f32)
# ----------------------------------------------------------------------------

def _build_packs(params, bt):
    wparts, bias_rows = [], []
    meta = {}
    row = 0

    def _append(arr):                      # -> 16-aligned row offset in pack
        nonlocal row
        a = jnp.asarray(arr, jnp.float32)
        r, n = a.shape
        rpad = _round_up(r, 16)
        wparts.append(jnp.pad(a, ((0, rpad - r), (0, PACKW - n)))
                      .astype(jnp.bfloat16))
        off = row
        row += rpad
        return off

    def _conv_entry(name, w_oihw, bias):
        g = _GEOM[name]
        w = jnp.transpose(w_oihw, (2, 3, 1, 0)).astype(jnp.float32)  # kh,kw,ci,co
        m = jnp.einsum('dpj,kdio->kpijo', jnp.asarray(g['T']), w)
        m = m.reshape(g['kh'], g['k'], g['n_valid'])
        kpad = _round_up(g['k'], 16)
        m = jnp.pad(m, ((0, 0), (0, kpad - g['k']), (0, PACKW - g['n_valid'])))
        woff = _append(m.reshape(g['kh'] * kpad, PACKW))
        brow = (jnp.asarray(g['bval'])[:, None] * bias[None, :]).reshape(1, -1)
        bidx = len(bias_rows)
        bias_rows.append(jnp.pad(brow, ((0, 0), (0, PACKW - g['n_valid']))))
        meta[name] = dict(woff=woff, kpad=kpad, k=g['k'], n=g['n'], kh=g['kh'],
                          bidx=bidx, r_out=g['r_out'], hout=g['hout'])

    def _pool_entry(name, hin, win, c):
        ra, rb, ca = _pool_mats(hin, win, c, bt)
        meta[name] = dict(ra=_append(ra), rb=_append(rb), ca=_append(ca),
                          rrows=ra.shape[0], rcols=ra.shape[1],
                          carows=ca.shape[0], cacols=ca.shape[1], c=c)

    _conv_entry('conv1', params['conv1']['w'], params['conv1']['b'])
    _conv_entry('conv2', params['conv2']['w'], params['conv2']['b'])
    _conv_entry('conv3', params['conv3']['w'], params['conv3']['b'])
    _conv_entry('conv4', params['conv4']['w'], params['conv4']['b'])
    _conv_entry('extra0', params['extra0']['w'], params['extra0']['b'])
    _conv_entry('extra1', params['extra1']['w'], params['extra1']['b'])
    for s in range(3):   # fused loc+conf heads
        wcat = jnp.concatenate([params['loc'][s]['w'], params['conf'][s]['w']], 0)
        bcat = jnp.concatenate([params['loc'][s]['b'], params['conf'][s]['b']], 0)
        _conv_entry('head%d' % s, wcat, bcat)
    _pool_entry('pool1', 16, 16, 8)
    _pool_entry('pool2', 8, 8, 16)

    sel = _stride2_sel(_GEOM['extra1'], bt)
    spad = _round_up(sel.shape[1], 16)
    selp = np.zeros((sel.shape[0], spad, PACKW), np.float32)
    selp[:, :sel.shape[1], :sel.shape[2]] = sel
    meta['extra1'].update(soff=_append(selp.reshape(sel.shape[0] * spad, PACKW)),
                          spad=spad, srows=sel.shape[1], scols=sel.shape[2])

    l2 = np.kron(np.eye(10, dtype=np.float32), np.ones((16, 16), np.float32))
    meta['l2'] = dict(off=_append(l2), rows=160, cols=160)

    gamma = jnp.tile(params['l2norm_gamma'].astype(jnp.float32), 10)[None, :]
    meta['gidx'] = len(bias_rows)
    bias_rows.append(jnp.pad(gamma, ((0, 0), (0, PACKW - gamma.shape[1]))))

    wpack = jnp.concatenate(wparts, axis=0)          # bf16 [R, 384]
    fpack = jnp.concatenate(bias_rows, axis=0)       # f32  [10, 384]
    return wpack, fpack, meta


# ----------------------------------------------------------------------------
# The single fused Pallas kernel (Bt images per grid step)
# ----------------------------------------------------------------------------

def _make_kernel(meta, bt):
    f32, bf16 = jnp.float32, jnp.bfloat16

    def _shift_down(p):      # result[r] = p[r-1], row 0 <- 0
        return jnp.concatenate([jnp.zeros_like(p[0:1]), p[:-1]], axis=0)

    def _shift_up(p):        # result[r] = p[r+1], last row <- 0
        return jnp.concatenate([p[1:], jnp.zeros_like(p[0:1])], axis=0)

    def _shift_lanes(p, c):  # result[:, l] = p[:, l+c], last c lanes <- 0
        return jnp.concatenate([p[:, c:], jnp.zeros_like(p[:, :c])], axis=1)

    def _row_mask(m_rows, r_out, hout):
        # f32 [M,1]: 1 on valid (non-border) rows of every image block
        r = lax.broadcasted_iota(jnp.int32, (m_rows, 1), 0)
        ok = None
        for b in range(bt):
            cur = jnp.logical_and(r >= b * r_out + 1, r <= b * r_out + hout)
            ok = cur if ok is None else jnp.logical_or(ok, cur)
        return ok.astype(f32)

    def kernel(x_ref, wpk, fpk, o0_ref, o1_ref, o2_ref):

        def w_tap(name, di):
            mm = meta[name]
            r0 = mm['woff'] + di * mm['kpad']
            return wpk[r0:r0 + mm['k'], 0:mm['n']]

        def bias(name):
            mm = meta[name]
            return fpk[mm['bidx']:mm['bidx'] + 1, 0:mm['n']]

        def conv3x3(xb, name, masked, relu):
            mm = meta[name]
            p0 = jnp.dot(xb, w_tap(name, 0), preferred_element_type=f32)
            p1 = jnp.dot(xb, w_tap(name, 1), preferred_element_type=f32)
            p2 = jnp.dot(xb, w_tap(name, 2), preferred_element_type=f32)
            acc = p1 + _shift_down(p0) + _shift_up(p2) + bias(name)
            if masked:                       # keep the zero-border invariant
                acc = acc * _row_mask(acc.shape[0], mm['r_out'], mm['hout'])
            if relu:
                acc = jnp.maximum(acc, 0.0)
            return acc

        def conv1x1(xb, name, masked, relu):
            mm = meta[name]
            acc = jnp.dot(xb, w_tap(name, 0), preferred_element_type=f32) + bias(name)
            if masked:
                acc = acc * _row_mask(acc.shape[0], mm['r_out'], mm['hout'])
            if relu:
                acc = jnp.maximum(acc, 0.0)
            return acc

        def conv3x3_s2(xb, name):            # stride-2: block-diag row gather
            mm = meta[name]
            acc = bias(name)
            for di in range(3):
                s0 = mm['soff'] + di * mm['spad']
                sel = wpk[s0:s0 + mm['srows'], 0:mm['scols']]
                g = jnp.dot(sel, xb, preferred_element_type=f32)
                acc = acc + jnp.dot(g.astype(bf16), w_tap(name, di),
                                    preferred_element_type=f32)
            acc = acc * _row_mask(bt * mm['r_out'], mm['r_out'], mm['hout'])
            return jnp.maximum(acc, 0.0)

        def pool2x2(xb, name):
            mm = meta[name]
            ra = wpk[mm['ra']:mm['ra'] + mm['rrows'], 0:mm['rcols']]
            rb = wpk[mm['rb']:mm['rb'] + mm['rrows'], 0:mm['rcols']]
            rows = jnp.maximum(jnp.dot(ra, xb, preferred_element_type=f32),
                               jnp.dot(rb, xb, preferred_element_type=f32))
            cmax = jnp.maximum(rows, _shift_lanes(rows, mm['c']))
            ca = wpk[mm['ca']:mm['ca'] + mm['carows'], 0:mm['cacols']]
            return jnp.dot(cmax.astype(bf16), ca, preferred_element_type=f32)

        xb = x_ref[0]                                         # bf16 [bt*18, 54]
        a = conv3x3(xb, 'conv1', True, True)                  # [bt*18, 144]
        a = conv3x3(a.astype(bf16), 'conv2', False, True)     # [bt*18, 144]
        a = pool2x2(a.astype(bf16), 'pool1')                  # [bt*10,  80]
        feat = conv3x3(a.astype(bf16), 'conv3', True, True)   # [bt*10, 160] hooked
        featb = feat.astype(bf16)
        l2m = meta['l2']
        l2o = wpk[l2m['off']:l2m['off'] + l2m['rows'], 0:l2m['cols']]
        ssq = jnp.dot(featb * featb, l2o, preferred_element_type=f32)
        gamma = fpk[meta['gidx']:meta['gidx'] + 1, 0:l2m['cols']]
        src0 = feat * gamma * lax.rsqrt(ssq + 1e-12)          # L2Norm, source 0
        a = pool2x2(featb, 'pool2')                           # [bt*6,  96]
        src1 = conv3x3(a.astype(bf16), 'conv4', True, True)   # [bt*6, 192] source 1
        src1b = src1.astype(bf16)
        a = conv1x1(src1b, 'extra0', True, True)              # [bt*6,  96]
        src2 = conv3x3_s2(a.astype(bf16), 'extra1')           # [bt*4, 128] source 2
        # fused loc+conf heads (lane-dense outputs, borders sliced off in glue)
        o0_ref[0] = conv3x3(src0.astype(bf16), 'head0', False, False)
        o1_ref[0] = conv3x3(src1b, 'head1', False, False)
        o2_ref[0] = conv3x3(src2.astype(bf16), 'head2', False, False)

    return kernel


# ----------------------------------------------------------------------------
# Parameter init + priors (deterministic)
# ----------------------------------------------------------------------------

def _xavier_normal(key, cout, cin, kh, kw):
    std = math.sqrt(2.0 / (cin * kh * kw + cout * kh * kw))
    return std * jax.random.normal(key, (cout, cin, kh, kw), jnp.float32)


def init_params(key):
    keys = iter(jax.random.split(key, 32))

    def conv_p(cout, cin, kh, kw):
        return {"w": _xavier_normal(next(keys), cout, cin, kh, kw),
                "b": jnp.zeros((cout,), jnp.float32)}

    return {
        "conv1": conv_p(8, 3, 3, 3),
        "conv2": conv_p(8, 8, 3, 3),
        "conv3": conv_p(16, 8, 3, 3),
        "conv4": conv_p(32, 16, 3, 3),
        "l2norm_gamma": jnp.full((16,), 20.0, jnp.float32),
        "extra0": conv_p(16, 32, 1, 1),
        "extra1": conv_p(32, 16, 3, 3),
        "loc": [conv_p(NUM_ANCHORS * 4, 16, 3, 3),
                conv_p(NUM_ANCHORS * 4, 32, 3, 3),
                conv_p(NUM_ANCHORS * 4, 32, 3, 3)],
        "conf": [conv_p(NUM_ANCHORS * NUM_CLASSES, 16, 3, 3),
                 conv_p(NUM_ANCHORS * NUM_CLASSES, 32, 3, 3),
                 conv_p(NUM_ANCHORS * NUM_CLASSES, 32, 3, 3)],
    }


def make_priors(feature_shapes):
    # TODO(synk): exact PriorBox cfg (self.option.result['detector']) is not
    # given in the module; generate a deterministic SSD-style prior grid.
    priors = []
    n_maps = len(feature_shapes)
    for idx, (fh, fw) in enumerate(feature_shapes):
        s_k = 0.2 + 0.6 * idx / max(1, n_maps - 1)
        s_k1 = 0.2 + 0.6 * (idx + 1) / max(1, n_maps - 1)
        s_prime = math.sqrt(s_k * s_k1)
        anchors = [(s_k, s_k), (s_prime, s_prime),
                   (s_k * math.sqrt(2.0), s_k / math.sqrt(2.0)),
                   (s_k / math.sqrt(2.0), s_k * math.sqrt(2.0))]
        for i in range(fh):
            for j in range(fw):
                cx, cy = (j + 0.5) / fw, (i + 0.5) / fh
                for aw, ah in anchors:
                    priors.append((cx, cy, aw, ah))
    return jnp.clip(jnp.asarray(priors, jnp.float32), 0.0, 1.0)


# ----------------------------------------------------------------------------
# SSD forward ('train' phase)
# ----------------------------------------------------------------------------

def ssd_forward(params, x_nchw, priors):
    b = x_nchw.shape[0]
    n_steps = 1 if b <= 1 else max(2, -(-b // _MAX_IMGS_PER_STEP))
    bt = -(-b // n_steps)
    b_pad = n_steps * bt

    # NCHW -> NHWC, add zero border, stack bt images along rows per grid step
    x = jnp.transpose(x_nchw, (0, 2, 3, 1)).astype(jnp.float32)
    xp = jnp.pad(x, ((0, b_pad - b), (1, 1), (1, 1), (0, 0)))
    x2d = xp.reshape(b_pad, 18, 54).reshape(n_steps, bt * 18, 54).astype(jnp.bfloat16)

    wpack, fpack, meta = _build_packs(params, bt)
    kernel = _make_kernel(meta, bt)

    g0, g1, g2 = _GEOM['head0'], _GEOM['head1'], _GEOM['head2']
    out_shape = tuple(
        jax.ShapeDtypeStruct((n_steps, bt * g['r_out'], g['n']), jnp.float32)
        for g in (g0, g1, g2))

    outs = pl.pallas_call(
        kernel,
        out_shape=out_shape,
        grid=(n_steps,),
        in_specs=[
            pl.BlockSpec((1, bt * 18, 54), lambda i: (i, 0, 0)),
            pl.BlockSpec(wpack.shape, lambda i: (0, 0)),      # resident constants
            pl.BlockSpec(fpack.shape, lambda i: (0, 0)),
        ],
        out_specs=tuple(
            pl.BlockSpec((1, bt * g['r_out'], g['n']), lambda i: (i, 0, 0))
            for g in (g0, g1, g2)),
        compiler_params=pltpu.CompilerParams(
            dimension_semantics=("parallel",)),
    )(x2d, wpack, fpack)

    # glue: strip borders / lane padding, split fused heads into loc / conf
    loc_parts, conf_parts = [], []
    for out, g in zip(outs, (g0, g1, g2)):
        h, w = g['hout'], g['wout']
        v = out.reshape(b_pad, g['r_out'], g['n'])[:b, 1:1 + h,
                                                   HEAD_C:HEAD_C * (w + 1)]
        v = v.reshape(b, h, w, HEAD_C)
        loc_parts.append(v[..., :NUM_ANCHORS * 4].reshape(b, -1))
        conf_parts.append(v[..., NUM_ANCHORS * 4:].reshape(b, -1))

    loc = jnp.concatenate(loc_parts, axis=1).reshape(b, -1, 4)
    conf = jnp.concatenate(conf_parts, axis=1).reshape(b, -1, NUM_CLASSES)
    # phase == 'train' output tuple; Detect/NMS ('test' phase) not implemented.
    return loc, conf, priors


# ----------------------------------------------------------------------------
# Pure-JAX reference of the same scaled-down SSD (for a tolerance check)
# ----------------------------------------------------------------------------

def _reference_forward(params, x_nchw):
    dn = ('NCHW', 'OIHW', 'NCHW')

    def conv(v, p, stride=1, pad=1):
        out = lax.conv_general_dilated(v, p['w'], (stride, stride),
                                       [(pad, pad), (pad, pad)],
                                       dimension_numbers=dn)
        return out + p['b'][None, :, None, None]

    def pool(v):
        return lax.reduce_window(v, -jnp.inf, lax.max,
                                 (1, 1, 2, 2), (1, 1, 2, 2), 'VALID')

    relu = lambda v: jnp.maximum(v, 0.0)
    b = x_nchw.shape[0]
    v = relu(conv(x_nchw, params['conv1']))
    v = relu(conv(v, params['conv2']))
    v = pool(v)
    feat = relu(conv(v, params['conv3']))
    nrm = jnp.sqrt(jnp.sum(feat * feat, axis=1, keepdims=True))
    src0 = feat / (nrm + 1e-10) * params['l2norm_gamma'][None, :, None, None]
    v = pool(feat)
    src1 = relu(conv(v, params['conv4']))
    v = relu(conv(src1, params['extra0'], pad=0))
    src2 = relu(conv(v, params['extra1'], stride=2, pad=1))
    locs, confs = [], []
    for s, src in enumerate((src0, src1, src2)):
        l = conv(src, params['loc'][s])
        c = conv(src, params['conf'][s])
        locs.append(jnp.transpose(l, (0, 2, 3, 1)).reshape(b, -1))
        confs.append(jnp.transpose(c, (0, 2, 3, 1)).reshape(b, -1))
    loc = jnp.concatenate(locs, axis=1).reshape(b, -1, 4)
    conf = jnp.concatenate(confs, axis=1).reshape(b, -1, NUM_CLASSES)
    return loc, conf


if __name__ == "__main__":
    key = jax.random.PRNGKey(0)
    pkey, xkey = jax.random.split(key)
    params = init_params(pkey)
    B = 8
    x = jax.random.normal(xkey, (B, 3, 16, 16), jnp.float32)   # NCHW like PyTorch

    feature_shapes = [(8, 8), (4, 4), (2, 2)]
    priors = make_priors(feature_shapes)

    fwd = jax.jit(ssd_forward)
    loc, conf, pri = fwd(params, x, priors)
    jax.block_until_ready((loc, conf, pri))

    n_priors = sum(h * w * NUM_ANCHORS for h, w in feature_shapes)   # 336
    assert loc.shape == (B, n_priors, 4), loc.shape
    assert conf.shape == (B, n_priors, NUM_CLASSES), conf.shape
    assert pri.shape == (n_priors, 4), pri.shape
    assert bool(jnp.all(jnp.isfinite(loc))) and bool(jnp.all(jnp.isfinite(conf)))

    # correctness vs a pure-JAX/XLA f32 reference (kernel uses bf16 operands,
    # so compare with a scale-relative tolerance)
    ref_loc, ref_conf = jax.jit(_reference_forward)(params, x)
    for name, got, want in (("loc", loc, ref_loc), ("conf", conf, ref_conf)):
        err = float(jnp.max(jnp.abs(got - want)))
        scale = 1.0 + float(jnp.max(jnp.abs(want)))
        assert err <= 0.1 * scale, (name, err, scale)

    print("KERNEL_OK")
</pallas_src>

<mosaic_0001>
module attributes {stable_mosaic.version = 11 : i64} {
  func.func @kernel(%arg0: i32, %arg1: memref<1x72x54xbf16, #tpu.memory_space<vmem>>, %arg2: memref<3744x384xbf16, #tpu.memory_space<vmem>>, %arg3: memref<10x384xf32, #tpu.memory_space<vmem>>, %arg4: memref<1x40x384xf32, #tpu.memory_space<vmem>>, %arg5: memref<1x24x256xf32, #tpu.memory_space<vmem>>, %arg6: memref<1x16x256xf32, #tpu.memory_space<vmem>>) attributes {dimension_semantics = [#tpu.dimension_semantics<parallel>], iteration_bounds = array<i64: 2>, scalar_prefetch = 0 : i64, scratch_operands = 0 : i64, tpu.core_type = #tpu.core_type<tc>, window_params = [{transform_indices = @transform_0, window_bounds = array<i64: 1, 72, 54>}, {pipeline_mode = #tpu.pipeline_mode<synchronous>, transform_indices = @transform_1, window_bounds = array<i64: 3744, 384>}, {pipeline_mode = #tpu.pipeline_mode<synchronous>, transform_indices = @transform_2, window_bounds = array<i64: 10, 384>}, {transform_indices = @transform_3, window_bounds = array<i64: 1, 40, 384>}, {transform_indices = @transform_4, window_bounds = array<i64: 1, 24, 256>}, {transform_indices = @transform_5, window_bounds = array<i64: 1, 16, 256>}]} {
    %c0 = arith.constant 0 : index
    %c0_0 = arith.constant 0 : index
    %c0_1 = arith.constant 0 : index
    %0 = vector.load %arg1[%c0, %c0_0, %c0_1] : memref<1x72x54xbf16, #tpu.memory_space<vmem>>, vector<1x72x54xbf16>
    %1 = vector.shape_cast %0 : vector<1x72x54xbf16> to vector<72x54xbf16>
    %c0_2 = arith.constant 0 : index
    %c0_3 = arith.constant 0 : index
    %2 = vector.load %arg2[%c0_2, %c0_3] : memref<3744x384xbf16, #tpu.memory_space<vmem>>, vector<54x144xbf16>
    %cst = arith.constant dense<0.000000e+00> : vector<72x144xf32>
    %3 = tpu.matmul %1, %2, %cst {dimension_numbers = #tpu.dot_dimension_numbers<[1], [0], [0], [1], [0, 0, 1, 1], [], []>} : vector<72x54xbf16>, vector<54x144xbf16>, vector<72x144xf32> -> vector<72x144xf32>
    %c64 = arith.constant 64 : index
    %c0_4 = arith.constant 0 : index
    %4 = vector.load %arg2[%c64, %c0_4] : memref<3744x384xbf16, #tpu.memory_space<vmem>>, vector<54x144xbf16>
    %cst_5 = arith.constant dense<0.000000e+00> : vector<72x144xf32>
    %5 = tpu.matmul %1, %4, %cst_5 {dimension_numbers = #tpu.dot_dimension_numbers<[1], [0], [0], [1], [0, 0, 1, 1], [], []>} : vector<72x54xbf16>, vector<54x144xbf16>, vector<72x144xf32> -> vector<72x144xf32>
    %c128 = arith.constant 128 : index
    %c0_6 = arith.constant 0 : index
    %6 = vector.load %arg2[%c128, %c0_6] : memref<3744x384xbf16, #tpu.memory_space<vmem>>, vector<54x144xbf16>
    %cst_7 = arith.constant dense<0.000000e+00> : vector<72x144xf32>
    %7 = tpu.matmul %1, %6, %cst_7 {dimension_numbers = #tpu.dot_dimension_numbers<[1], [0], [0], [1], [0, 0, 1, 1], [], []>} : vector<72x54xbf16>, vector<54x144xbf16>, vector<72x144xf32> -> vector<72x144xf32>
    %cst_8 = arith.constant 0.000000e+00 : f32
    %8 = vector.broadcast %cst_8 : f32 to vector<1x144xf32>
    %9 = vector.extract_strided_slice %3 {offsets = [0, 0], sizes = [71, 144], strides = [1, 1]} : vector<72x144xf32> to vector<71x144xf32>
    %10 = tpu.concatenate %8, %9 in 0 : vector<1x144xf32>, vector<71x144xf32> -> vector<72x144xf32>
    %11 = arith.addf %5, %10 : vector<72x144xf32>
    %12 = vector.extract_strided_slice %7 {offsets = [1, 0], sizes = [71, 144], strides = [1, 1]} : vector<72x144xf32> to vector<71x144xf32>
    %cst_9 = arith.constant 0.000000e+00 : f32
    %13 = vector.broadcast %cst_9 : f32 to vector<1x144xf32>
    %14 = tpu.concatenate %12, %13 in 0 : vector<71x144xf32>, vector<1x144xf32> -> vector<72x144xf32>
    %15 = arith.addf %11, %14 : vector<72x144xf32>
    %c0_10 = arith.constant 0 : index
    %c0_11 = arith.constant 0 : index
    %16 = vector.load %arg3[%c0_10, %c0_11] : memref<10x384xf32, #tpu.memory_space<vmem>>, vector<1x144xf32>
    %17 = vector.broadcast %16 : vector<1x144xf32> to vector<72x144xf32>
    %18 = arith.addf %15, %17 : vector<72x144xf32>
    %19 = tpu.iota {dimensions = array<i32: 0>} : vector<72x1xi32>
    %c1_i32 = arith.constant 1 : i32
    %20 = vector.broadcast %c1_i32 : i32 to vector<72x1xi32>
    %21 = arith.cmpi sge, %19, %20 : vector<72x1xi32>
    %c16_i32 = arith.constant 16 : i32
    %22 = vector.broadcast %c16_i32 : i32 to vector<72x1xi32>
    %23 = arith.cmpi sle, %19, %22 : vector<72x1xi32>
    %24 = arith.andi %21, %23 : vector<72x1xi1>
    %c19_i32 = arith.constant 19 : i32
    %25 = vector.broadcast %c19_i32 : i32 to vector<72x1xi32>
    %26 = arith.cmpi sge, %19, %25 : vector<72x1xi32>
    %c34_i32 = arith.constant 34 : i32
    %27 = vector.broadcast %c34_i32 : i32 to vector<72x1xi32>
    %28 = arith.cmpi sle, %19, %27 : vector<72x1xi32>
    %29 = arith.andi %26, %28 : vector<72x1xi1>
    %30 = arith.ori %24, %29 : vector<72x1xi1>
    %c37_i32 = arith.constant 37 : i32
    %31 = vector.broadcast %c37_i32 : i32 to vector<72x1xi32>
    %32 = arith.cmpi sge, %19, %31 : vector<72x1xi32>
    %c52_i32 = arith.constant 52 : i32
    %33 = vector.broadcast %c52_i32 : i32 to vector<72x1xi32>
    %34 = arith.cmpi sle, %19, %33 : vector<72x1xi32>
    %35 = arith.andi %32, %34 : vector<72x1xi1>
    %36 = arith.ori %30, %35 : vector<72x1xi1>
    %c55_i32 = arith.constant 55 : i32
    %37 = vector.broadcast %c55_i32 : i32 to vector<72x1xi32>
    %38 = arith.cmpi sge, %19, %37 : vector<72x1xi32>
    %c70_i32 = arith.constant 70 : i32
    %39 = vector.broadcast %c70_i32 : i32 to vector<72x1xi32>
    %40 = arith.cmpi sle, %19, %39 : vector<72x1xi32>
    %41 = arith.andi %38, %40 : vector<72x1xi1>
    %42 = arith.ori %36, %41 : vector<72x1xi1>
    %43 = arith.extui %42 : vector<72x1xi1> to vector<72x1xi32>
    %44 = arith.sitofp %43 : vector<72x1xi32> to vector<72x1xf32>
    %45 = vector.broadcast %44 : vector<72x1xf32> to vector<72x144xf32>
    %46 = arith.mulf %18, %45 : vector<72x144xf32>
    %cst_12 = arith.constant 0.000000e+00 : f32
    %47 = vector.broadcast %cst_12 : f32 to vector<72x144xf32>
    %48 = arith.maximumf %46, %47 : vector<72x144xf32>
    %49 = arith.truncf %48 : vector<72x144xf32> to vector<72x144xbf16>
    %c192 = arith.constant 192 : index
    %c0_13 = arith.constant 0 : index
    %50 = vector.load %arg2[%c192, %c0_13] : memref<3744x384xbf16, #tpu.memory_space<vmem>>, vector<144x144xbf16>
    %cst_14 = arith.constant dense<0.000000e+00> : vector<72x144xf32>
    %51 = tpu.matmul %49, %50, %cst_14 {dimension_numbers = #tpu.dot_dimension_numbers<[1], [0], [0], [1], [0, 0, 1, 1], [], []>} : vector<72x144xbf16>, vector<144x144xbf16>, vector<72x144xf32> -> vector<72x144xf32>
    %c336 = arith.constant 336 : index
    %c0_15 = arith.constant 0 : index
    %52 = vector.load %arg2[%c336, %c0_15] : memref<3744x384xbf16, #tpu.memory_space<vmem>>, vector<144x144xbf16>
    %cst_16 = arith.constant dense<0.000000e+00> : vector<72x144xf32>
    %53 = tpu.matmul %49, %52, %cst_16 {dimension_numbers = #tpu.dot_dimension_numbers<[1], [0], [0], [1], [0, 0, 1, 1], [], []>} : vector<72x144xbf16>, vector<144x144xbf16>, vector<72x144xf32> -> vector<72x144xf32>
    %c480 = arith.constant 480 : index
    %c0_17 = arith.constant 0 : index
    %54 = vector.load %arg2[%c480, %c0_17] : memref<3744x384xbf16, #tpu.memory_space<vmem>>, vector<144x144xbf16>
    %cst_18 = arith.constant dense<0.000000e+00> : vector<72x144xf32>
    %55 = tpu.matmul %49, %54, %cst_18 {dimension_numbers = #tpu.dot_dimension_numbers<[1], [0], [0], [1], [0, 0, 1, 1], [], []>} : vector<72x144xbf16>, vector<144x144xbf16>, vector<72x144xf32> -> vector<72x144xf32>
    %cst_19 = arith.constant 0.000000e+00 : f32
    %56 = vector.broadcast %cst_19 : f32 to vector<1x144xf32>
    %57 = vector.extract_strided_slice %51 {offsets = [0, 0], sizes = [71, 144], strides = [1, 1]} : vector<72x144xf32> to vector<71x144xf32>
    %58 = tpu.concatenate %56, %57 in 0 : vector<1x144xf32>, vector<71x144xf32> -> vector<72x144xf32>
    %59 = arith.addf %53, %58 : vector<72x144xf32>
    %60 = vector.extract_strided_slice %55 {offsets = [1, 0], sizes = [71, 144], strides = [1, 1]} : vector<72x144xf32> to vector<71x144xf32>
    %cst_20 = arith.constant 0.000000e+00 : f32
    %61 = vector.broadcast %cst_20 : f32 to vector<1x144xf32>
    %62 = tpu.concatenate %60, %61 in 0 : vector<71x144xf32>, vector<1x144xf32> -> vector<72x144xf32>
    %63 = arith.addf %59, %62 : vector<72x144xf32>
    %c1 = arith.constant 1 : index
    %c0_21 = arith.constant 0 : index
    %64 = vector.load %arg3[%c1, %c0_21] : memref<10x384xf32, #tpu.memory_space<vmem>>, vector<1x144xf32>
    %65 = vector.broadcast %64 : vector<1x144xf32> to vector<72x144xf32>
    %66 = arith.addf %63, %65 : vector<72x144xf32>
    %cst_22 = arith.constant 0.000000e+00 : f32
    %67 = vector.broadcast %cst_22 : f32 to vector<72x144xf32>
    %68 = arith.maximumf %66, %67 : vector<72x144xf32>
    %69 = arith.truncf %68 : vector<72x144xf32> to vector<72x144xbf16>
    %c3072 = arith.constant 3072 : index
    %c0_23 = arith.constant 0 : index
    %70 = vector.load %arg2[%c3072, %c0_23] : memref<3744x384xbf16, #tpu.memory_space<vmem>>, vector<40x72xbf16>
    %c3120 = arith.constant 3120 : index
    %c0_24 = arith.constant 0 : index
    %71 = vector.load %arg2[%c3120, %c0_24] : memref<3744x384xbf16, #tpu.memory_space<vmem>>, vector<40x72xbf16>
    %cst_25 = arith.constant dense<0.000000e+00> : vector<40x144xf32>
    %72 = tpu.matmul %70, %69, %cst_25 {dimension_numbers = #tpu.dot_dimension_numbers<[1], [0], [0], [1], [0, 0, 1, 1], [], []>} : vector<40x72xbf16>, vector<72x144xbf16>, vector<40x144xf32> -> vector<40x144xf32>
    %cst_26 = arith.constant dense<0.000000e+00> : vector<40x144xf32>
    %73 = tpu.matmul %71, %69, %cst_26 {dimension_numbers = #tpu.dot_dimension_numbers<[1], [0], [0], [1], [0, 0, 1, 1], [], []>} : vector<40x72xbf16>, vector<72x144xbf16>, vector<40x144xf32> -> vector<40x144xf32>
    %74 = arith.maximumf %72, %73 : vector<40x144xf32>
    %75 = vector.extract_strided_slice %74 {offsets = [0, 8], sizes = [40, 136], strides = [1, 1]} : vector<40x144xf32> to vector<40x136xf32>
    %cst_27 = arith.constant 0.000000e+00 : f32
    %76 = vector.broadcast %cst_27 : f32 to vector<40x8xf32>
    %77 = tpu.concatenate %75, %76 in 1 : vector<40x136xf32>, vector<40x8xf32> -> vector<40x144xf32>
    %78 = arith.maximumf %74, %77 : vector<40x144xf32>
    %c3168 = arith.constant 3168 : index
    %c0_28 = arith.constant 0 : index
    %79 = vector.load %arg2[%c3168, %c0_28] : memref<3744x384xbf16, #tpu.memory_space<vmem>>, vector<144x80xbf16>
    %80 = arith.truncf %78 : vector<40x144xf32> to vector<40x144xbf16>
    %cst_29 = arith.constant dense<0.000000e+00> : vector<40x80xf32>
    %81 = tpu.matmul %80, %79, %cst_29 {dimension_numbers = #tpu.dot_dimension_numbers<[1], [0], [0], [1], [0, 0, 1, 1], [], []>} : vector<40x144xbf16>, vector<144x80xbf16>, vector<40x80xf32> -> vector<40x80xf32>
    %82 = arith.truncf %81 : vector<40x80xf32> to vector<40x80xbf16>
    %c624 = arith.constant 624 : index
    %c0_30 = arith.constant 0 : index
    %83 = vector.load %arg2[%c624, %c0_30] : memref<3744x384xbf16, #tpu.memory_space<vmem>>, vector<80x160xbf16>
    %cst_31 = arith.constant dense<0.000000e+00> : vector<40x160xf32>
    %84 = tpu.matmul %82, %83, %cst_31 {dimension_numbers = #tpu.dot_dimension_numbers<[1], [0], [0], [1], [0, 0, 1, 1], [], []>} : vector<40x80xbf16>, vector<80x160xbf16>, vector<40x160xf32> -> vector<40x160xf32>
    %c704 = arith.constant 704 : index
    %c0_32 = arith.constant 0 : index
    %85 = vector.load %arg2[%c704, %c0_32] : memref<3744x384xbf16, #tpu.memory_space<vmem>>, vector<80x160xbf16>
    %cst_33 = arith.constant dense<0.000000e+00> : vector<40x160xf32>
    %86 = tpu.matmul %82, %85, %cst_33 {dimension_numbers = #tpu.dot_dimension_numbers<[1], [0], [0], [1], [0, 0, 1, 1], [], []>} : vector<40x80xbf16>, vector<80x160xbf16>, vector<40x160xf32> -> vector<40x160xf32>
    %c784 = arith.constant 784 : index
    %c0_34 = arith.constant 0 : index
    %87 = vector.load %arg2[%c784, %c0_34] : memref<3744x384xbf16, #tpu.memory_space<vmem>>, vector<80x160xbf16>
    %cst_35 = arith.constant dense<0.000000e+00> : vector<40x160xf32>
    %88 = tpu.matmul %82, %87, %cst_35 {dimension_numbers = #tpu.dot_dimension_numbers<[1], [0], [0], [1], [0, 0, 1, 1], [], []>} : vector<40x80xbf16>, vector<80x160xbf16>, vector<40x160xf32> -> vector<40x160xf32>
    %cst_36 = arith.constant 0.000000e+00 : f32
    %89 = vector.broadcast %cst_36 : f32 to vector<1x160xf32>
    %90 = vector.extract_strided_slice %84 {offsets = [0, 0], sizes = [39, 160], strides = [1, 1]} : vector<40x160xf32> to vector<39x160xf32>
    %91 = tpu.concatenate %89, %90 in 0 : vector<1x160xf32>, vector<39x160xf32> -> vector<40x160xf32>
    %92 = arith.addf %86, %91 : vector<40x160xf32>
    %93 = vector.extract_strided_slice %88 {offsets = [1, 0], sizes = [39, 160], strides = [1, 1]} : vector<40x160xf32> to vector<39x160xf32>
    %cst_37 = arith.constant 0.000000e+00 : f32
    %94 = vector.broadcast %cst_37 : f32 to vector<1x160xf32>
    %95 = tpu.concatenate %93, %94 in 0 : vector<39x160xf32>, vector<1x160xf32> -> vector<40x160xf32>
    %96 = arith.addf %92, %95 : vector<40x160xf32>
    %c2 = arith.constant 2 : index
    %c0_38 = arith.constant 0 : index
    %97 = vector.load %arg3[%c2, %c0_38] : memref<10x384xf32, #tpu.memory_space<vmem>>, vector<1x160xf32>
    %98 = vector.broadcast %97 : vector<1x160xf32> to vector<40x160xf32>
    %99 = arith.addf %96, %98 : vector<40x160xf32>
    %100 = tpu.iota {dimensions = array<i32: 0>} : vector<40x1xi32>
    %c1_i32_39 = arith.constant 1 : i32
    %101 = vector.broadcast %c1_i32_39 : i32 to vector<40x1xi32>
    %102 = arith.cmpi sge, %100, %101 : vector<40x1xi32>
    %c8_i32 = arith.constant 8 : i32
    %103 = vector.broadcast %c8_i32 : i32 to vector<40x1xi32>
    %104 = arith.cmpi sle, %100, %103 : vector<40x1xi32>
    %105 = arith.andi %102, %104 : vector<40x1xi1>
    %c11_i32 = arith.constant 11 : i32
    %106 = vector.broadcast %c11_i32 : i32 to vector<40x1xi32>
    %107 = arith.cmpi sge, %100, %106 : vector<40x1xi32>
    %c18_i32 = arith.constant 18 : i32
    %108 = vector.broadcast %c18_i32 : i32 to vector<40x1xi32>
    %109 = arith.cmpi sle, %100, %108 : vector<40x1xi32>
    %110 = arith.andi %107, %109 : vector<40x1xi1>
    %111 = arith.ori %105, %110 : vector<40x1xi1>
    %c21_i32 = arith.constant 21 : i32
    %112 = vector.broadcast %c21_i32 : i32 to vector<40x1xi32>
    %113 = arith.cmpi sge, %100, %112 : vector<40x1xi32>
    %c28_i32 = arith.constant 28 : i32
    %114 = vector.broadcast %c28_i32 : i32 to vector<40x1xi32>
    %115 = arith.cmpi sle, %100, %114 : vector<40x1xi32>
    %116 = arith.andi %113, %115 : vector<40x1xi1>
    %117 = arith.ori %111, %116 : vector<40x1xi1>
    %c31_i32 = arith.constant 31 : i32
    %118 = vector.broadcast %c31_i32 : i32 to vector<40x1xi32>
    %119 = arith.cmpi sge, %100, %118 : vector<40x1xi32>
    %c38_i32 = arith.constant 38 : i32
    %120 = vector.broadcast %c38_i32 : i32 to vector<40x1xi32>
    %121 = arith.cmpi sle, %100, %120 : vector<40x1xi32>
    %122 = arith.andi %119, %121 : vector<40x1xi1>
    %123 = arith.ori %117, %122 : vector<40x1xi1>
    %124 = arith.extui %123 : vector<40x1xi1> to vector<40x1xi32>
    %125 = arith.sitofp %124 : vector<40x1xi32> to vector<40x1xf32>
    %126 = vector.broadcast %125 : vector<40x1xf32> to vector<40x160xf32>
    %127 = arith.mulf %99, %126 : vector<40x160xf32>
    %cst_40 = arith.constant 0.000000e+00 : f32
    %128 = vector.broadcast %cst_40 : f32 to vector<40x160xf32>
    %129 = arith.maximumf %127, %128 : vector<40x160xf32>
    %130 = arith.truncf %129 : vector<40x160xf32> to vector<40x160xbf16>
    %c3584 = arith.constant 3584 : index
    %c0_41 = arith.constant 0 : index
    %131 = vector.load %arg2[%c3584, %c0_41] : memref<3744x384xbf16, #tpu.memory_space<vmem>>, vector<160x160xbf16>
    %132 = arith.mulf %130, %130 : vector<40x160xbf16>
    %cst_42 = arith.constant dense<0.000000e+00> : vector<40x160xf32>
    %133 = tpu.matmul %132, %131, %cst_42 {dimension_numbers = #tpu.dot_dimension_numbers<[1], [0], [0], [1], [0, 0, 1, 1], [], []>} : vector<40x160xbf16>, vector<160x160xbf16>, vector<40x160xf32> -> vector<40x160xf32>
    %c9 = arith.constant 9 : index
    %c0_43 = arith.constant 0 : index
    %134 = vector.load %arg3[%c9, %c0_43] : memref<10x384xf32, #tpu.memory_space<vmem>>, vector<1x160xf32>
    %135 = vector.broadcast %134 : vector<1x160xf32> to vector<40x160xf32>
    %136 = arith.mulf %129, %135 : vector<40x160xf32>
    %cst_44 = arith.constant 9.99999996E-13 : f32
    %137 = vector.broadcast %cst_44 : f32 to vector<40x160xf32>
    %138 = arith.addf %133, %137 : vector<40x160xf32>
    %139 = math.rsqrt %138 : vector<40x160xf32>
    %140 = arith.mulf %136, %139 : vector<40x160xf32>
    %c3312 = arith.constant 3312 : index
    %c0_45 = arith.constant 0 : index
    %141 = vector.load %arg2[%c3312, %c0_45] : memref<3744x384xbf16, #tpu.memory_space<vmem>>, vector<24x40xbf16>
    %c3344 = arith.constant 3344 : index
    %c0_46 = arith.constant 0 : index
    %142 = vector.load %arg2[%c3344, %c0_46] : memref<3744x384xbf16, #tpu.memory_space<vmem>>, vector<24x40xbf16>
    %cst_47 = arith.constant dense<0.000000e+00> : vector<24x160xf32>
    %143 = tpu.matmul %141, %130, %cst_47 {dimension_numbers = #tpu.dot_dimension_numbers<[1], [0], [0], [1], [0, 0, 1, 1], [], []>} : vector<24x40xbf16>, vector<40x160xbf16>, vector<24x160xf32> -> vector<24x160xf32>
    %cst_48 = arith.constant dense<0.000000e+00> : vector<24x160xf32>
    %144 = tpu.matmul %142, %130, %cst_48 {dimension_numbers = #tpu.dot_dimension_numbers<[1], [0], [0], [1], [0, 0, 1, 1], [], []>} : vector<24x40xbf16>, vector<40x160xbf16>, vector<24x160xf32> -> vector<24x160xf32>
    %145 = arith.maximumf %143, %144 : vector<24x160xf32>
    %146 = vector.extract_strided_slice %145 {offsets = [0, 16], sizes = [24, 144], strides = [1, 1]} : vector<24x160xf32> to vector<24x144xf32>
    %cst_49 = arith.constant 0.000000e+00 : f32
    %147 = vector.broadcast %cst_49 : f32 to vector<24x16xf32>
    %148 = tpu.concatenate %146, %147 in 1 : vector<24x144xf32>, vector<24x16xf32> -> vector<24x160xf32>
    %149 = arith.maximumf %145, %148 : vector<24x160xf32>
    %c3376 = arith.constant 3376 : index
    %c0_50 = arith.constant 0 : index
    %150 = vector.load %arg2[%c3376, %c0_50] : memref<3744x384xbf16, #tpu.memory_space<vmem>>, vector<160x96xbf16>
    %151 = arith.truncf %149 : vector<24x160xf32> to vector<24x160xbf16>
    %cst_51 = arith.constant dense<0.000000e+00> : vector<24x96xf32>
    %152 = tpu.matmul %151, %150, %cst_51 {dimension_numbers = #tpu.dot_dimension_numbers<[1], [0], [0], [1], [0, 0, 1, 1], [], []>} : vector<24x160xbf16>, vector<160x96xbf16>, vector<24x96xf32> -> vector<24x96xf32>
    %153 = arith.truncf %152 : vector<24x96xf32> to vector<24x96xbf16>
    %c864 = arith.constant 864 : index
    %c0_52 = arith.constant 0 : index
    %154 = vector.load %arg2[%c864, %c0_52] : memref<3744x384xbf16, #tpu.memory_space<vmem>>, vector<96x192xbf16>
    %cst_53 = arith.constant dense<0.000000e+00> : vector<24x192xf32>
    %155 = tpu.matmul %153, %154, %cst_53 {dimension_numbers = #tpu.dot_dimension_numbers<[1], [0], [0], [1], [0, 0, 1, 1], [], []>} : vector<24x96xbf16>, vector<96x192xbf16>, vector<24x192xf32> -> vector<24x192xf32>
    %c960 = arith.constant 960 : index
    %c0_54 = arith.constant 0 : index
    %156 = vector.load %arg2[%c960, %c0_54] : memref<3744x384xbf16, #tpu.memory_space<vmem>>, vector<96x192xbf16>
    %cst_55 = arith.constant dense<0.000000e+00> : vector<24x192xf32>
    %157 = tpu.matmul %153, %156, %cst_55 {dimension_numbers = #tpu.dot_dimension_numbers<[1], [0], [0], [1], [0, 0, 1, 1], [], []>} : vector<24x96xbf16>, vector<96x192xbf16>, vector<24x192xf32> -> vector<24x192xf32>
    %c1056 = arith.constant 1056 : index
    %c0_56 = arith.constant 0 : index
    %158 = vector.load %arg2[%c1056, %c0_56] : memref<3744x384xbf16, #tpu.memory_space<vmem>>, vector<96x192xbf16>
    %cst_57 = arith.constant dense<0.000000e+00> : vector<24x192xf32>
    %159 = tpu.matmul %153, %158, %cst_57 {dimension_numbers = #tpu.dot_dimension_numbers<[1], [0], [0], [1], [0, 0, 1, 1], [], []>} : vector<24x96xbf16>, vector<96x192xbf16>, vector<24x192xf32> -> vector<24x192xf32>
    %cst_58 = arith.constant 0.000000e+00 : f32
    %160 = vector.broadcast %cst_58 : f32 to vector<1x192xf32>
    %161 = vector.extract_strided_slice %155 {offsets = [0, 0], sizes = [23, 192], strides = [1, 1]} : vector<24x192xf32> to vector<23x192xf32>
    %162 = tpu.concatenate %160, %161 in 0 : vector<1x192xf32>, vector<23x192xf32> -> vector<24x192xf32>
    %163 = arith.addf %157, %162 : vector<24x192xf32>
    %164 = vector.extract_strided_slice %159 {offsets = [1, 0], sizes = [23, 192], strides = [1, 1]} : vector<24x192xf32> to vector<23x192xf32>
    %cst_59 = arith.constant 0.000000e+00 : f32
    %165 = vector.broadcast %cst_59 : f32 to vector<1x192xf32>
    %166 = tpu.concatenate %164, %165 in 0 : vector<23x192xf32>, vector<1x192xf32> -> vector<24x192xf32>
    %167 = arith.addf %163, %166 : vector<24x192xf32>
    %c3 = arith.constant 3 : index
    %c0_60 = arith.constant 0 : index
    %168 = vector.load %arg3[%c3, %c0_60] : memref<10x384xf32, #tpu.memory_space<vmem>>, vector<1x192xf32>
    %169 = vector.broadcast %168 : vector<1x192xf32> to vector<24x192xf32>
    %170 = arith.addf %167, %169 : vector<24x192xf32>
    %171 = tpu.iota {dimensions = array<i32: 0>} : vector<24x1xi32>
    %c1_i32_61 = arith.constant 1 : i32
    %172 = vector.broadcast %c1_i32_61 : i32 to vector<24x1xi32>
    %173 = arith.cmpi sge, %171, %172 : vector<24x1xi32>
    %c4_i32 = arith.constant 4 : i32
    %174 = vector.broadcast %c4_i32 : i32 to vector<24x1xi32>
    %175 = arith.cmpi sle, %171, %174 : vector<24x1xi32>
    %176 = arith.andi %173, %175 : vector<24x1xi1>
    %c7_i32 = arith.constant 7 : i32
    %177 = vector.broadcast %c7_i32 : i32 to vector<24x1xi32>
    %178 = arith.cmpi sge, %171, %177 : vector<24x1xi32>
    %c10_i32 = arith.constant 10 : i32
    %179 = vector.broadcast %c10_i32 : i32 to vector<24x1xi32>
    %180 = arith.cmpi sle, %171, %179 : vector<24x1xi32>
    %181 = arith.andi %178, %180 : vector<24x1xi1>
    %182 = arith.ori %176, %181 : vector<24x1xi1>
    %c13_i32 = arith.constant 13 : i32
    %183 = vector.broadcast %c13_i32 : i32 to vector<24x1xi32>
    %184 = arith.cmpi sge, %171, %183 : vector<24x1xi32>
    %c16_i32_62 = arith.constant 16 : i32
    %185 = vector.broadcast %c16_i32_62 : i32 to vector<24x1xi32>
    %186 = arith.cmpi sle, %171, %185 : vector<24x1xi32>
    %187 = arith.andi %184, %186 : vector<24x1xi1>
    %188 = arith.ori %182, %187 : vector<24x1xi1>
    %c19_i32_63 = arith.constant 19 : i32
    %189 = vector.broadcast %c19_i32_63 : i32 to vector<24x1xi32>
    %190 = arith.cmpi sge, %171, %189 : vector<24x1xi32>
    %c22_i32 = arith.constant 22 : i32
    %191 = vector.broadcast %c22_i32 : i32 to vector<24x1xi32>
    %192 = arith.cmpi sle, %171, %191 : vector<24x1xi32>
    %193 = arith.andi %190, %192 : vector<24x1xi1>
    %194 = arith.ori %188, %193 : vector<24x1xi1>
    %195 = arith.extui %194 : vector<24x1xi1> to vector<24x1xi32>
    %196 = arith.sitofp %195 : vector<24x1xi32> to vector<24x1xf32>
    %197 = vector.broadcast %196 : vector<24x1xf32> to vector<24x192xf32>
    %198 = arith.mulf %170, %197 : vector<24x192xf32>
    %cst_64 = arith.constant 0.000000e+00 : f32
    %199 = vector.broadcast %cst_64 : f32 to vector<24x192xf32>
    %200 = arith.maximumf %198, %199 : vector<24x192xf32>
    %201 = arith.truncf %200 : vector<24x192xf32> to vector<24x192xbf16>
    %c1152 = arith.constant 1152 : index
    %c0_65 = arith.constant 0 : index
    %202 = vector.load %arg2[%c1152, %c0_65] : memref<3744x384xbf16, #tpu.memory_space<vmem>>, vector<192x96xbf16>
    %cst_66 = arith.constant dense<0.000000e+00> : vector<24x96xf32>
    %203 = tpu.matmul %201, %202, %cst_66 {dimension_numbers = #tpu.dot_dimension_numbers<[1], [0], [0], [1], [0, 0, 1, 1], [], []>} : vector<24x192xbf16>, vector<192x96xbf16>, vector<24x96xf32> -> vector<24x96xf32>
    %c4 = arith.constant 4 : index
    %c0_67 = arith.constant 0 : index
    %204 = vector.load %arg3[%c4, %c0_67] : memref<10x384xf32, #tpu.memory_space<vmem>>, vector<1x96xf32>
    %205 = vector.broadcast %204 : vector<1x96xf32> to vector<24x96xf32>
    %206 = arith.addf %203, %205 : vector<24x96xf32>
    %207 = tpu.iota {dimensions = array<i32: 0>} : vector<24x1xi32>
    %c1_i32_68 = arith.constant 1 : i32
    %208 = vector.broadcast %c1_i32_68 : i32 to vector<24x1xi32>
    %209 = arith.cmpi sge, %207, %208 : vector<24x1xi32>
    %c4_i32_69 = arith.constant 4 : i32
    %210 = vector.broadcast %c4_i32_69 : i32 to vector<24x1xi32>
    %211 = arith.cmpi sle, %207, %210 : vector<24x1xi32>
    %212 = arith.andi %209, %211 : vector<24x1xi1>
    %c7_i32_70 = arith.constant 7 : i32
    %213 = vector.broadcast %c7_i32_70 : i32 to vector<24x1xi32>
    %214 = arith.cmpi sge, %207, %213 : vector<24x1xi32>
    %c10_i32_71 = arith.constant 10 : i32
    %215 = vector.broadcast %c10_i32_71 : i32 to vector<24x1xi32>
    %216 = arith.cmpi sle, %207, %215 : vector<24x1xi32>
    %217 = arith.andi %214, %216 : vector<24x1xi1>
    %218 = arith.ori %212, %217 : vector<24x1xi1>
    %c13_i32_72 = arith.constant 13 : i32
    %219 = vector.broadcast %c13_i32_72 : i32 to vector<24x1xi32>
    %220 = arith.cmpi sge, %207, %219 : vector<24x1xi32>
    %c16_i32_73 = arith.constant 16 : i32
    %221 = vector.broadcast %c16_i32_73 : i32 to vector<24x1xi32>
    %222 = arith.cmpi sle, %207, %221 : vector<24x1xi32>
    %223 = arith.andi %220, %222 : vector<24x1xi1>
    %224 = arith.ori %218, %223 : vector<24x1xi1>
    %c19_i32_74 = arith.constant 19 : i32
    %225 = vector.broadcast %c19_i32_74 : i32 to vector<24x1xi32>
    %226 = arith.cmpi sge, %207, %225 : vector<24x1xi32>
    %c22_i32_75 = arith.constant 22 : i32
    %227 = vector.broadcast %c22_i32_75 : i32 to vector<24x1xi32>
    %228 = arith.cmpi sle, %207, %227 : vector<24x1xi32>
    %229 = arith.andi %226, %228 : vector<24x1xi1>
    %230 = arith.ori %224, %229 : vector<24x1xi1>
    %231 = arith.extui %230 : vector<24x1xi1> to vector<24x1xi32>
    %232 = arith.sitofp %231 : vector<24x1xi32> to vector<24x1xf32>
    %233 = vector.broadcast %232 : vector<24x1xf32> to vector<24x96xf32>
    %234 = arith.mulf %206, %233 : vector<24x96xf32>
    %cst_76 = arith.constant 0.000000e+00 : f32
    %235 = vector.broadcast %cst_76 : f32 to vector<24x96xf32>
    %236 = arith.maximumf %234, %235 : vector<24x96xf32>
    %237 = arith.truncf %236 : vector<24x96xf32> to vector<24x96xbf16>
    %c5 = arith.constant 5 : index
    %c0_77 = arith.constant 0 : index
    %238 = vector.load %arg3[%c5, %c0_77] : memref<10x384xf32, #tpu.memory_space<vmem>>, vector<1x128xf32>
    %c3536 = arith.constant 3536 : index
    %c0_78 = arith.constant 0 : index
    %239 = vector.load %arg2[%c3536, %c0_78] : memref<3744x384xbf16, #tpu.memory_space<vmem>>, vector<16x24xbf16>
    %cst_79 = arith.constant dense<0.000000e+00> : vector<16x96xf32>
    %240 = tpu.matmul %239, %237, %cst_79 {dimension_numbers = #tpu.dot_dimension_numbers<[1], [0], [0], [1], [0, 0, 1, 1], [], []>} : vector<16x24xbf16>, vector<24x96xbf16>, vector<16x96xf32> -> vector<16x96xf32>
    %241 = arith.truncf %240 : vector<16x96xf32> to vector<16x96xbf16>
    %c1344 = arith.constant 1344 : index
    %c0_80 = arith.constant 0 : index
    %242 = vector.load %arg2[%c1344, %c0_80] : memref<3744x384xbf16, #tpu.memory_space<vmem>>, vector<96x128xbf16>
    %cst_81 = arith.constant dense<0.000000e+00> : vector<16x128xf32>
    %243 = tpu.matmul %241, %242, %cst_81 {dimension_numbers = #tpu.dot_dimension_numbers<[1], [0], [0], [1], [0, 0, 1, 1], [], []>} : vector<16x96xbf16>, vector<96x128xbf16>, vector<16x128xf32> -> vector<16x128xf32>
    %244 = vector.broadcast %238 : vector<1x128xf32> to vector<16x128xf32>
    %245 = arith.addf %244, %243 : vector<16x128xf32>
    %c3552 = arith.constant 3552 : index
    %c0_82 = arith.constant 0 : index
    %246 = vector.load %arg2[%c3552, %c0_82] : memref<3744x384xbf16, #tpu.memory_space<vmem>>, vector<16x24xbf16>
    %cst_83 = arith.constant dense<0.000000e+00> : vector<16x96xf32>
    %247 = tpu.matmul %246, %237, %cst_83 {dimension_numbers = #tpu.dot_dimension_numbers<[1], [0], [0], [1], [0, 0, 1, 1], [], []>} : vector<16x24xbf16>, vector<24x96xbf16>, vector<16x96xf32> -> vector<16x96xf32>
    %248 = arith.truncf %247 : vector<16x96xf32> to vector<16x96xbf16>
    %c1440 = arith.constant 1440 : index
    %c0_84 = arith.constant 0 : index
    %249 = vector.load %arg2[%c1440, %c0_84] : memref<3744x384xbf16, #tpu.memory_space<vmem>>, vector<96x128xbf16>
    %cst_85 = arith.constant dense<0.000000e+00> : vector<16x128xf32>
    %250 = tpu.matmul %248, %249, %cst_85 {dimension_numbers = #tpu.dot_dimension_numbers<[1], [0], [0], [1], [0, 0, 1, 1], [], []>} : vector<16x96xbf16>, vector<96x128xbf16>, vector<16x128xf32> -> vector<16x128xf32>
    %251 = arith.addf %245, %250 : vector<16x128xf32>
    %c3568 = arith.constant 3568 : index
    %c0_86 = arith.constant 0 : index
    %252 = vector.load %arg2[%c3568, %c0_86] : memref<3744x384xbf16, #tpu.memory_space<vmem>>, vector<16x24xbf16>
    %cst_87 = arith.constant dense<0.000000e+00> : vector<16x96xf32>
    %253 = tpu.matmul %252, %237, %cst_87 {dimension_numbers = #tpu.dot_dimension_numbers<[1], [0], [0], [1], [0, 0, 1, 1], [], []>} : vector<16x24xbf16>, vector<24x96xbf16>, vector<16x96xf32> -> vector<16x96xf32>
    %254 = arith.truncf %253 : vector<16x96xf32> to vector<16x96xbf16>
    %c1536 = arith.constant 1536 : index
    %c0_88 = arith.constant 0 : index
    %255 = vector.load %arg2[%c1536, %c0_88] : memref<3744x384xbf16, #tpu.memory_space<vmem>>, vector<96x128xbf16>
    %cst_89 = arith.constant dense<0.000000e+00> : vector<16x128xf32>
    %256 = tpu.matmul %254, %255, %cst_89 {dimension_numbers = #tpu.dot_dimension_numbers<[1], [0], [0], [1], [0, 0, 1, 1], [], []>} : vector<16x96xbf16>, vector<96x128xbf16>, vector<16x128xf32> -> vector<16x128xf32>
    %257 = arith.addf %251, %256 : vector<16x128xf32>
    %258 = tpu.iota {dimensions = array<i32: 0>} : vector<16x1xi32>
    %c1_i32_90 = arith.constant 1 : i32
    %259 = vector.broadcast %c1_i32_90 : i32 to vector<16x1xi32>
    %260 = arith.cmpi sge, %258, %259 : vector<16x1xi32>
    %c2_i32 = arith.constant 2 : i32
    %261 = vector.broadcast %c2_i32 : i32 to vector<16x1xi32>
    %262 = arith.cmpi sle, %258, %261 : vector<16x1xi32>
    %263 = arith.andi %260, %262 : vector<16x1xi1>
    %c5_i32 = arith.constant 5 : i32
    %264 = vector.broadcast %c5_i32 : i32 to vector<16x1xi32>
    %265 = arith.cmpi sge, %258, %264 : vector<16x1xi32>
    %c6_i32 = arith.constant 6 : i32
    %266 = vector.broadcast %c6_i32 : i32 to vector<16x1xi32>
    %267 = arith.cmpi sle, %258, %266 : vector<16x1xi32>
    %268 = arith.andi %265, %267 : vector<16x1xi1>
    %269 = arith.ori %263, %268 : vector<16x1xi1>
    %c9_i32 = arith.constant 9 : i32
    %270 = vector.broadcast %c9_i32 : i32 to vector<16x1xi32>
    %271 = arith.cmpi sge, %258, %270 : vector<16x1xi32>
    %c10_i32_91 = arith.constant 10 : i32
    %272 = vector.broadcast %c10_i32_91 : i32 to vector<16x1xi32>
    %273 = arith.cmpi sle, %258, %272 : vector<16x1xi32>
    %274 = arith.andi %271, %273 : vector<16x1xi1>
    %275 = arith.ori %269, %274 : vector<16x1xi1>
    %c13_i32_92 = arith.constant 13 : i32
    %276 = vector.broadcast %c13_i32_92 : i32 to vector<16x1xi32>
    %277 = arith.cmpi sge, %258, %276 : vector<16x1xi32>
    %c14_i32 = arith.constant 14 : i32
    %278 = vector.broadcast %c14_i32 : i32 to vector<16x1xi32>
    %279 = arith.cmpi sle, %258, %278 : vector<16x1xi32>
    %280 = arith.andi %277, %279 : vector<16x1xi1>
    %281 = arith.ori %275, %280 : vector<16x1xi1>
    %282 = arith.extui %281 : vector<16x1xi1> to vector<16x1xi32>
    %283 = arith.sitofp %282 : vector<16x1xi32> to vector<16x1xf32>
    %284 = vector.broadcast %283 : vector<16x1xf32> to vector<16x128xf32>
    %285 = arith.mulf %257, %284 : vector<16x128xf32>
    %cst_93 = arith.constant 0.000000e+00 : f32
    %286 = vector.broadcast %cst_93 : f32 to vector<16x128xf32>
    %287 = arith.maximumf %285, %286 : vector<16x128xf32>
    %288 = arith.truncf %140 : vector<40x160xf32> to vector<40x160xbf16>
    %c1632 = arith.constant 1632 : index
    %c0_94 = arith.constant 0 : index
    %289 = vector.load %arg2[%c1632, %c0_94] : memref<3744x384xbf16, #tpu.memory_space<vmem>>, vector<160x384xbf16>
    %cst_95 = arith.constant dense<0.000000e+00> : vector<40x384xf32>
    %290 = tpu.matmul %288, %289, %cst_95 {dimension_numbers = #tpu.dot_dimension_numbers<[1], [0], [0], [1], [0, 0, 1, 1], [], []>} : vector<40x160xbf16>, vector<160x384xbf16>, vector<40x384xf32> -> vector<40x384xf32>
    %c1792 = arith.constant 1792 : index
    %c0_96 = arith.constant 0 : index
    %291 = vector.load %arg2[%c1792, %c0_96] : memref<3744x384xbf16, #tpu.memory_space<vmem>>, vector<160x384xbf16>
    %cst_97 = arith.constant dense<0.000000e+00> : vector<40x384xf32>
    %292 = tpu.matmul %288, %291, %cst_97 {dimension_numbers = #tpu.dot_dimension_numbers<[1], [0], [0], [1], [0, 0, 1, 1], [], []>} : vector<40x160xbf16>, vector<160x384xbf16>, vector<40x384xf32> -> vector<40x384xf32>
    %c1952 = arith.constant 1952 : index
    %c0_98 = arith.constant 0 : index
    %293 = vector.load %arg2[%c1952, %c0_98] : memref<3744x384xbf16, #tpu.memory_space<vmem>>, vector<160x384xbf16>
    %cst_99 = arith.constant dense<0.000000e+00> : vector<40x384xf32>
    %294 = tpu.matmul %288, %293, %cst_99 {dimension_numbers = #tpu.dot_dimension_numbers<[1], [0], [0], [1], [0, 0, 1, 1], [], []>} : vector<40x160xbf16>, vector<160x384xbf16>, vector<40x384xf32> -> vector<40x384xf32>
    %cst_100 = arith.constant 0.000000e+00 : f32
    %295 = vector.broadcast %cst_100 : f32 to vector<1x384xf32>
    %296 = vector.extract_strided_slice %290 {offsets = [0, 0], sizes = [39, 384], strides = [1, 1]} : vector<40x384xf32> to vector<39x384xf32>
    %297 = tpu.concatenate %295, %296 in 0 : vector<1x384xf32>, vector<39x384xf32> -> vector<40x384xf32>
    %298 = arith.addf %292, %297 : vector<40x384xf32>
    %299 = vector.extract_strided_slice %294 {offsets = [1, 0], sizes = [39, 384], strides = [1, 1]} : vector<40x384xf32> to vector<39x384xf32>
    %cst_101 = arith.constant 0.000000e+00 : f32
    %300 = vector.broadcast %cst_101 : f32 to vector<1x384xf32>
    %301 = tpu.concatenate %299, %300 in 0 : vector<39x384xf32>, vector<1x384xf32> -> vector<40x384xf32>
    %302 = arith.addf %298, %301 : vector<40x384xf32>
    %c6 = arith.constant 6 : index
    %c0_102 = arith.constant 0 : index
    %303 = vector.load %arg3[%c6, %c0_102] : memref<10x384xf32, #tpu.memory_space<vmem>>, vector<1x384xf32>
    %304 = vector.broadcast %303 : vector<1x384xf32> to vector<40x384xf32>
    %305 = arith.addf %302, %304 : vector<40x384xf32>
    %c0_103 = arith.constant 0 : index
    %c0_104 = arith.constant 0 : index
    %c0_105 = arith.constant 0 : index
    %306 = vector.load %arg4[%c0_103, %c0_104, %c0_105] : memref<1x40x384xf32, #tpu.memory_space<vmem>>, vector<1x40x384xf32>
    %307 = vector.shape_cast %306 : vector<1x40x384xf32> to vector<40x384xf32>
    %308 = vector.shape_cast %305 : vector<40x384xf32> to vector<1x40x384xf32>
    tpu.vector_store %arg4[%c0_103, %c0_104, %c0_105], %308 {strides = array<i32>} : memref<1x40x384xf32, #tpu.memory_space<vmem>>, vector<1x40x384xf32>,
    %c2112 = arith.constant 2112 : index
    %c0_106 = arith.constant 0 : index
    %309 = vector.load %arg2[%c2112, %c0_106] : memref<3744x384xbf16, #tpu.memory_space<vmem>>, vector<192x256xbf16>
    %cst_107 = arith.constant dense<0.000000e+00> : vector<24x256xf32>
    %310 = tpu.matmul %201, %309, %cst_107 {dimension_numbers = #tpu.dot_dimension_numbers<[1], [0], [0], [1], [0, 0, 1, 1], [], []>} : vector<24x192xbf16>, vector<192x256xbf16>, vector<24x256xf32> -> vector<24x256xf32>
    %c2304 = arith.constant 2304 : index
    %c0_108 = arith.constant 0 : index
    %311 = vector.load %arg2[%c2304, %c0_108] : memref<3744x384xbf16, #tpu.memory_space<vmem>>, vector<192x256xbf16>
    %cst_109 = arith.constant dense<0.000000e+00> : vector<24x256xf32>
    %312 = tpu.matmul %201, %311, %cst_109 {dimension_numbers = #tpu.dot_dimension_numbers<[1], [0], [0], [1], [0, 0, 1, 1], [], []>} : vector<24x192xbf16>, vector<192x256xbf16>, vector<24x256xf32> -> vector<24x256xf32>
    %c2496 = arith.constant 2496 : index
    %c0_110 = arith.constant 0 : index
    %313 = vector.load %arg2[%c2496, %c0_110] : memref<3744x384xbf16, #tpu.memory_space<vmem>>, vector<192x256xbf16>
    %cst_111 = arith.constant dense<0.000000e+00> : vector<24x256xf32>
    %314 = tpu.matmul %201, %313, %cst_111 {dimension_numbers = #tpu.dot_dimension_numbers<[1], [0], [0], [1], [0, 0, 1, 1], [], []>} : vector<24x192xbf16>, vector<192x256xbf16>, vector<24x256xf32> -> vector<24x256xf32>
    %cst_112 = arith.constant 0.000000e+00 : f32
    %315 = vector.broadcast %cst_112 : f32 to vector<1x256xf32>
    %316 = vector.extract_strided_slice %310 {offsets = [0, 0], sizes = [23, 256], strides = [1, 1]} : vector<24x256xf32> to vector<23x256xf32>
    %317 = tpu.concatenate %315, %316 in 0 : vector<1x256xf32>, vector<23x256xf32> -> vector<24x256xf32>
    %318 = arith.addf %312, %317 : vector<24x256xf32>
    %319 = vector.extract_strided_slice %314 {offsets = [1, 0], sizes = [23, 256], strides = [1, 1]} : vector<24x256xf32> to vector<23x256xf32>
    %cst_113 = arith.constant 0.000000e+00 : f32
    %320 = vector.broadcast %cst_113 : f32 to vector<1x256xf32>
    %321 = tpu.concatenate %319, %320 in 0 : vector<23x256xf32>, vector<1x256xf32> -> vector<24x256xf32>
    %322 = arith.addf %318, %321 : vector<24x256xf32>
    %c7 = arith.constant 7 : index
    %c0_114 = arith.constant 0 : index
    %323 = vector.load %arg3[%c7, %c0_114] : memref<10x384xf32, #tpu.memory_space<vmem>>, vector<1x256xf32>
    %324 = vector.broadcast %323 : vector<1x256xf32> to vector<24x256xf32>
    %325 = arith.addf %322, %324 : vector<24x256xf32>
    %c0_115 = arith.constant 0 : index
    %c0_116 = arith.constant 0 : index
    %c0_117 = arith.constant 0 : index
    %326 = vector.load %arg5[%c0_115, %c0_116, %c0_117] : memref<1x24x256xf32, #tpu.memory_space<vmem>>, vector<1x24x256xf32>
    %327 = vector.shape_cast %326 : vector<1x24x256xf32> to vector<24x256xf32>
    %328 = vector.shape_cast %325 : vector<24x256xf32> to vector<1x24x256xf32>
    tpu.vector_store %arg5[%c0_115, %c0_116, %c0_117], %328 {strides = array<i32>} : memref<1x24x256xf32, #tpu.memory_space<vmem>>, vector<1x24x256xf32>,
    %329 = arith.truncf %287 : vector<16x128xf32> to vector<16x128xbf16>
    %c2688 = arith.constant 2688 : index
    %c0_118 = arith.constant 0 : index
    %330 = vector.load %arg2[%c2688, %c0_118] : memref<3744x384xbf16, #tpu.memory_space<vmem>>, vector<128x256xbf16>
    %cst_119 = arith.constant dense<0.000000e+00> : vector<16x256xf32>
    %331 = tpu.matmul %329, %330, %cst_119 {dimension_numbers = #tpu.dot_dimension_numbers<[1], [0], [0], [1], [0, 0, 1, 1], [], []>} : vector<16x128xbf16>, vector<128x256xbf16>, vector<16x256xf32> -> vector<16x256xf32>
    %c2816 = arith.constant 2816 : index
    %c0_120 = arith.constant 0 : index
    %332 = vector.load %arg2[%c2816, %c0_120] : memref<3744x384xbf16, #tpu.memory_space<vmem>>, vector<128x256xbf16>
    %cst_121 = arith.constant dense<0.000000e+00> : vector<16x256xf32>
    %333 = tpu.matmul %329, %332, %cst_121 {dimension_numbers = #tpu.dot_dimension_numbers<[1], [0], [0], [1], [0, 0, 1, 1], [], []>} : vector<16x128xbf16>, vector<128x256xbf16>, vector<16x256xf32> -> vector<16x256xf32>
    %c2944 = arith.constant 2944 : index
    %c0_122 = arith.constant 0 : index
    %334 = vector.load %arg2[%c2944, %c0_122] : memref<3744x384xbf16, #tpu.memory_space<vmem>>, vector<128x256xbf16>
    %cst_123 = arith.constant dense<0.000000e+00> : vector<16x256xf32>
    %335 = tpu.matmul %329, %334, %cst_123 {dimension_numbers = #tpu.dot_dimension_numbers<[1], [0], [0], [1], [0, 0, 1, 1], [], []>} : vector<16x128xbf16>, vector<128x256xbf16>, vector<16x256xf32> -> vector<16x256xf32>
    %cst_124 = arith.constant 0.000000e+00 : f32
    %336 = vector.broadcast %cst_124 : f32 to vector<1x256xf32>
    %337 = vector.extract_strided_slice %331 {offsets = [0, 0], sizes = [15, 256], strides = [1, 1]} : vector<16x256xf32> to vector<15x256xf32>
    %338 = tpu.concatenate %336, %337 in 0 : vector<1x256xf32>, vector<15x256xf32> -> vector<16x256xf32>
    %339 = arith.addf %333, %338 : vector<16x256xf32>
    %340 = vector.extract_strided_slice %335 {offsets = [1, 0], sizes = [15, 256], strides = [1, 1]} : vector<16x256xf32> to vector<15x256xf32>
    %cst_125 = arith.constant 0.000000e+00 : f32
    %341 = vector.broadcast %cst_125 : f32 to vector<1x256xf32>
    %342 = tpu.concatenate %340, %341 in 0 : vector<15x256xf32>, vector<1x256xf32> -> vector<16x256xf32>
    %343 = arith.addf %339, %342 : vector<16x256xf32>
    %c8 = arith.constant 8 : index
    %c0_126 = arith.constant 0 : index
    %344 = vector.load %arg3[%c8, %c0_126] : memref<10x384xf32, #tpu.memory_space<vmem>>, vector<1x256xf32>
    %345 = vector.broadcast %344 : vector<1x256xf32> to vector<16x256xf32>
    %346 = arith.addf %343, %345 : vector<16x256xf32>
    %c0_127 = arith.constant 0 : index
    %c0_128 = arith.constant 0 : index
    %c0_129 = arith.constant 0 : index
    %347 = vector.load %arg6[%c0_127, %c0_128, %c0_129] : memref<1x16x256xf32, #tpu.memory_space<vmem>>, vector<1x16x256xf32>
    %348 = vector.shape_cast %347 : vector<1x16x256xf32> to vector<16x256xf32>
    %349 = vector.shape_cast %346 : vector<16x256xf32> to vector<1x16x256xf32>
    tpu.vector_store %arg6[%c0_127, %c0_128, %c0_129], %349 {strides = array<i32>} : memref<1x16x256xf32, #tpu.memory_space<vmem>>, vector<1x16x256xf32>,
    return
  }
  func.func @transform_0(%arg0: i32) -> (i32, i32, i32) {
    %c0_i32 = arith.constant 0 : i32
    %c0_i32_0 = arith.constant 0 : i32
    %c0_i32_1 = arith.constant 0 : i32
    return %arg0, %c0_i32, %c0_i32_0 : i32, i32, i32
  }
  func.func @transform_1(%arg0: i32) -> (i32, i32) {
    %c0_i32 = arith.constant 0 : i32
    %c0_i32_0 = arith.constant 0 : i32
    %c0_i32_1 = arith.constant 0 : i32
    return %c0_i32, %c0_i32_0 : i32, i32
  }
  func.func @transform_2(%arg0: i32) -> (i32, i32) {
    %c0_i32 = arith.constant 0 : i32
    %c0_i32_0 = arith.constant 0 : i32
    %c0_i32_1 = arith.constant 0 : i32
    return %c0_i32, %c0_i32_0 : i32, i32
  }
  func.func @transform_3(%arg0: i32) -> (i32, i32, i32) {
    %c0_i32 = arith.constant 0 : i32
    %c0_i32_0 = arith.constant 0 : i32
    %c0_i32_1 = arith.constant 0 : i32
    return %arg0, %c0_i32, %c0_i32_0 : i32, i32, i32
  }
  func.func @transform_4(%arg0: i32) -> (i32, i32, i32) {
    %c0_i32 = arith.constant 0 : i32
    %c0_i32_0 = arith.constant 0 : i32
    %c0_i32_1 = arith.constant 0 : i32
    return %arg0, %c0_i32, %c0_i32_0 : i32, i32, i32
  }
  func.func @transform_5(%arg0: i32) -> (i32, i32, i32) {
    %c0_i32 = arith.constant 0 : i32
    %c0_i32_0 = arith.constant 0 : i32
    %c0_i32_1 = arith.constant 0 : i32
    return %arg0, %c0_i32, %c0_i32_0 : i32, i32, i32
  }
}

</mosaic_0001>

<bundles_post_ra>
// kernel: tile.8
= control target key start
LH: loop header
LB: loop body
LE: loop exit
PB: predicated region body
PF: predicated region fallthrough
CT: control target
= control target key end

     0   :  { %2 = vsyncpa [#allocation1], 0  ;;  %s47_s6 = smov [#allocation0]   ;;  %s76_s0 = inlined_call_operand.hbm [shape: f32[16], index: 0, kind: input, shape index: {}]   ;;  %s77_s1 = inlined_call_operand.vmem [shape: f32[10,16], index: 1, kind: output, shape index: {}]  }
   0x1   :  { %s9_s7 = sshll.u32 %s47_s6, 4  ;;  %s23_s10 = scalar_lea.hbm %s76_s0, 16  ;;  %s10_s7 = int_to_ptr.vmem [resolvable:$true] %s9_s7 }
   0x2   :  { %p24_p0 = scmp.ne.s32.totalorder %s76_s0, %s23_s10  ;;  %p27_p1 = scmp.lt.u32.totalorder %s23_s10, %s76_s0 }
   0x4   :  { %p29_p2 = pnand %p27_p1, %p24_p0 }
   0x6   :  { %32 = shalt.err (!%p29_p2)
}
   0x7   :  { %s33_s15 = scalar_lea.vmem %s10_s7, 16  ;;  %s37_s16 = scalar_lea.vmem %s10_s7, 32 }
   0x8   :  { %p34_p3 = scmp.ne.s32.totalorder %s10_s7, %s33_s15  ;;  %p38_p4 = scmp.lt.s32.totalorder %s10_s7, %s10_s7 }
   0x9   :  { %p39_p5 = scmp.lt.s32.totalorder %s37_s16, %s33_s15 }
   0xb   :  { %p40_p6 = por %p39_p5, %p38_p4 }
   0xd   :  { %p41_p7 = pnand %p40_p6, %p34_p3 }
   0xf   :  { %44 = shalt.err (!%p41_p7)
}
  0x10   :  { %12 = dma.hbm_to_vmem [thread:$0]  %s76_s0, 16, %s10_s7, [#allocation1]  }
  0x11   :  { %45 = dma.done.wait [#allocation1], 16  }
  0x12   :  { %46 = vsyncadd [#allocation1], 4294967280  ;;  %v16_v0 = vld [vmem:[#allocation0] ss:$0 sm:$0xff] }
  0x13   :  { %17 = vst [vmem:[%s77_s1] sm:$0xff] %v16_v0  ;;  %21 = vst [vmem:[%s77_s1 + $0x8] sm:$0xff] %v16_v0 }
  0x14   :  { %20 = vsyncpa [#allocation1], 1 }

// kernel: ssd_forward.1
= control target key start
LH: loop header
LB: loop body
LE: loop exit
PB: predicated region body
PF: predicated region fallthrough
CT: control target
= control target key end

     0   :  { %s8424_s18 = smov 0   ;;  %s10952_s0 = inlined_call_operand.vmem [shape: bf16[2,72,54], index: 0, kind: input, shape index: {}]   ;;  %s10953_s1 = inlined_call_operand.vmem [shape: bf16[3744,384], index: 1, kind: input, shape index: {}]   ;;  %s10954_s2 = inlined_call_operand.vmem [shape: f32[10,384], index: 2, kind: input, shape index: {}]   ;;  %s10955_s3 = inlined_call_operand.vmem [shape: f32[2,40,384], index: 3, kind: output, shape index: {0}]   ;;  %s10956_s4 = inlined_call_operand.vmem [shape: f32[2,24,256], index: 4, kind: output, shape index: {1}]   ;;  %s10957_s5 = inlined_call_operand.vmem [shape: f32[2,16,256], index: 5, kind: output, shape index: {2}]  }
   0x1 LB: > { %s7005_s19 = sadd.s32 4294967295, %s8387_s18   ;;  %p7009_p0 = scmp.ge.s32.totalorder %s8387_s18, 1  ;;  %s8387_s18 = sphi %s8424_s18, %s16_s18  }
   0x2   : > { %p192_p1 = scmp.lt.s32.totalorder %s8387_s18, 3 }
   0x4   : > { %p193_p2 = pnand %p7009_p0, %p192_p1 }
   0x5   : > { %v7751_v0 = vld [vmem:[%s10953_s1 + $0x4] ss:$12 sps:$4 sm:$0xff] (!%p193_p2)   ;;  %v7753_v1 = vld [vmem:[%s10953_s1] ss:$12 sps:$4 sm:$0xff] (!%p193_p2)   ;;  %v8389_v2 = vmov (!%p193_p2), 0   ;;  %p230_p3 = scmp.lt.s32.totalorder (!%p193_p2), %s7005_s19, 1 }
   0x6   : > { %196 = sbr.rel (%p193_p2) target bundleno = 3428 (0xd64), region = 32  ;;  %380 = vmatprep.mubr.bf16.mxu0 (!%p193_p2), %v8389_v2  ;;  %516 = vmatprep.mubr.bf16.mxu1 (!%p193_p2), %v8389_v2  ;;  %v7754_v3 = vld [vmem:[%s10953_s1 + $0x1c] ss:$12 sps:$4 sm:$0xff] (!%p193_p2)   ;;  %v7756_v4 = vld [vmem:[%s10953_s1 + $0x18] ss:$12 sps:$4 sm:$0xff] (!%p193_p2)   ;;  %vm341_vm0 = vcmask (!%p193_p2), 1042432  }
   0x7   : > { %348 = vmatprep.subr.bf16.mxu0 (!%p193_p2), %v7751_v0  ;;  %v7757_v5 = vld [vmem:[%s10953_s1 + $0x34] ss:$12 sps:$4 sm:$0xff] (!%p193_p2)   ;;  %v266_v6 = vld [vmem:[%s10953_s1 + $0x48] sm:$0x77] (!%p193_p2)  ;;  %v7764_v7 = vld [vmem:[%s10953_s1 + $0xc4] ss:$12 sps:$4 sm:$0xff] (!%p193_p2)  }
   0x8   : > { %349 = vmatpush1.bf16.msra.mxu0 (!%p193_p2), %v7753_v1  ;;  %v7759_v8 = vld [vmem:[%s10953_s1 + $0x30] ss:$12 sps:$4 sm:$0xff] (!%p193_p2)   ;;  %484 = vmatprep.subr.bf16.mxu1 (!%p193_p2), %v7764_v7  ;;  %v7769_v9 = vld [vmem:[%s10953_s1 + $0xc0] ss:$12 sps:$4 sm:$0xff] (!%p193_p2)   ;;  %v7027_v11 = vcombine.high (!%p193_p2), %v266_v6, %v266_v6  ;;  %v7026_v12 = vcombine.low (!%p193_p2), %v266_v6, %v266_v6  ;;  %v7772_v13 = vld [vmem:[%s10953_s1 + $0xd8] ss:$12 sps:$4 sm:$0xff] (!%p193_p2)  }
   0x9   : > { %350 = vmatprep.subr.bf16.mxu0 (!%p193_p2), %v7754_v3  ;;  %v7770_v10 = vld [vmem:[%s10953_s1 + $0xdc] ss:$12 sps:$4 sm:$0xff] (!%p193_p2)   ;;  %485 = vmatpush1.bf16.msra.mxu1 (!%p193_p2), %v7769_v9  ;;  %v7768_v15 = vld [vmem:[%s10953_s1 + $0x64] ss:$12 sps:$4 sm:$0xff] (!%p193_p2)   ;;  %v7774_v16 = vld [vmem:[%s10953_s1 + $0xf4] ss:$12 sps:$4 sm:$0xff] (!%p193_p2)  }
   0xa   : > { %486 = vmatprep.subr.bf16.mxu1 (!%p193_p2), %v7770_v10  ;;  %v343_v14 = vsel (!%p193_p2), %vm341_vm0, %v7026_v12, 0  ;;  %v7776_v18 = vld [vmem:[%s10953_s1 + $0xf0] ss:$12 sps:$4 sm:$0xff] (!%p193_p2)   ;;  %v442_v19 = vld [vmem:[%s10953_s1 + $0x108] sm:$0x77] (!%p193_p2)  ;;  %vm325_vm1 = vcmask (!%p193_p2), 441344  }
   0xb   : > { %v7766_v20 = vld [vmem:[%s10953_s1 + $0x60] ss:$12 sps:$4 sm:$0xff] (!%p193_p2)   ;;  %v7041_v21 = vcombine.high (!%p193_p2), %v442_v19, %v442_v19  ;;  %v7040_v22 = vcombine.low (!%p193_p2), %v442_v19, %v442_v19  ;;  %v7779_v23 = vld [vmem:[%s10953_s1 + $0x7c] ss:$12 sps:$4 sm:$0xff] (!%p193_p2)   ;;  %v7777_v24 = vld [vmem:[%s10953_s1 + $0x78] ss:$12 sps:$4 sm:$0xff] (!%p193_p2)  }
   0xc   : > { %351 = vmatpush1.bf16.msra.mxu0 (!%p193_p2), %v7756_v4  ;;  %v7785_v26 = vld [vmem:[%s10953_s1 + $0x94] ss:$12 sps:$4 sm:$0xff] (!%p193_p2)   ;;  %v435_v27 = vld [vmem:[%s10953_s1 + $0xa8] sm:$0x77] (!%p193_p2)  ;;  %v7783_v29 = vld [vmem:[%s10953_s1 + $0x90] ss:$12 sps:$4 sm:$0xff] (!%p193_p2)  }
   0xd   : > { %s10961_s19 = smov (!%p230_p3, %s7005_s19), 1  ;;  %352 = vmatprep.subr.bf16.mxu0 %v7757_v5  ;;  %487 = vmatpush1.bf16.msra.mxu1 %v7772_v13  ;;  %v479_v25 = vsel %vm341_vm0, %v7040_v22, 0  ;;  %v7055_v30 = vcombine.high %v435_v27, %v435_v27  ;;  %v7054_v31 = vcombine.low %v435_v27, %v435_v27  ;;  %v7791_v36 = vld [vmem:[%s10953_s1 + $0x124] ss:$12 sps:$4 sm:$0xff]   ;;  %v7794_v37 = vld [vmem:[%s10953_s1 + $0x2d4] ss:$12 sps:$4 sm:$0xff]   ;;  %v853_v5 = vlaneseq }
   0xe   : > { %s7695_s7 = smul.u32 36, %s10961_s19  ;;  %488 = vmatprep.subr.bf16.mxu1 %v7774_v16  ;;  %v7789_v38 = vld [vmem:[%s10953_s1 + $0x120] ss:$12 sps:$4 sm:$0xff]   ;;  %v7792_v39 = vld [vmem:[%s10953_s1 + $0x2d0] ss:$12 sps:$4 sm:$0xff]   ;;  %vm583_vm7 = vcmask 1040384  }
   0xf   : > { %v674_v33 = vsel %vm341_vm0, %v7054_v31, 0  ;;  %v7795_v40 = vld [vmem:[%s10953_s1 + $0x138] ss:$12 sps:$4 sm:$0xff]   ;;  %v7797_v41 = vld [vmem:[%s10953_s1 + $0x13c] ss:$12 sps:$4 sm:$0xff]   ;;  %v8652_v10 = vshrl.u32 %v853_v5, 7 }
  0x10   : > { %s8464_s14 = scalar_lea.vmem %s10952_s0, %s7695_s7  ;;  %353 = vmatpush1.bf16.msra.mxu0 %v7759_v8  ;;  %v7798_v42 = vld [vmem:[%s10953_s1 + $0x2e8] ss:$12 sps:$4 sm:$0xff]   ;;  %v7800_v43 = vld [vmem:[%s10953_s1 + $0x2ec] ss:$12 sps:$4 sm:$0xff]   ;;  %v7806_v45 = vld [vmem:[%s10953_s1 + $0x304] ss:$12 sps:$4 sm:$0xff]  }
  0x11   : > { %7028 = vmatprep.subr.msk.bf16.mxu0 %vm341_vm0, %v7027_v11  ;;  %v7762_v17 = vld [vmem:[%s8464_s14] sm:$0xff]   ;;  %489 = vmatpush1.bf16.msra.mxu1 %v7776_v18  ;;  %v7763_v28 = vld [vmem:[%s8464_s14 + $0x8] sm:$0xff]   ;;  %v7773_v32 = vld [vmem:[%s8464_s14 + $0x10] sm:$0xff]   ;;  %v8655_v11 = vadd.s32 16, %v8652_v10  ;;  %vm778_vm8 = vcmask 1046528   ;;  %vm891_vm9 = vcmp.ge.s32.totalorder %v8652_v10, 1 }
  0x12   : > { %7042 = vmatprep.subr.msk.bf16.mxu1 %vm341_vm0, %v7041_v21  ;;  %v7782_v34 = vld [vmem:[%s8464_s14 + $0x18] sm:$0xff]   ;;  %v7786_v35 = vld [vmem:[%s8464_s14 + $0x20] ss:$0 sps:$4 sm:$0xff]   ;;  %v7807_v48 = vld [vmem:[%s10953_s1 + $0x168] ss:$12 sps:$4 sm:$0xff]   ;;  %vm1198_vm11 = vcmask 130048  }
  0x13   : > { %v7803_v44 = vld [vmem:[%s10953_s1 + $0x154] ss:$12 sps:$4 sm:$0xff]   ;;  %v7801_v46 = vld [vmem:[%s10953_s1 + $0x150] ss:$12 sps:$4 sm:$0xff]   ;;  %v7809_v49 = vld [vmem:[%s10953_s1 + $0x16c] ss:$12 sps:$4 sm:$0xff]  }
  0x14   : > { %355 = vmatpush1.bf16.msra.mxu0 %v343_v14  ;;  %v7804_v47 = vld [vmem:[%s10953_s1 + $0x300] ss:$12 sps:$4 sm:$0xff]   ;;  %v7810_v50 = vld [vmem:[%s10953_s1 + $0x318] ss:$12 sps:$4 sm:$0xff]   ;;  %v7812_v51 = vld [vmem:[%s10953_s1 + $0x31c] ss:$12 sps:$4 sm:$0xff]  }
  0x15   : > { %679 = vmatprep.subr.bf16.mxu0 %v7768_v15  ;;  %491 = vmatpush1.bf16.msra.mxu1 %v479_v25  ;;  %v7815_v52 = vld [vmem:[%s10953_s1 + $0x184] ss:$12 sps:$4 sm:$0xff]   ;;  %v7818_v53 = vld [vmem:[%s10953_s1 + $0x334] ss:$12 sps:$4 sm:$0xff]   ;;  %v7821_v57 = vld [vmem:[%s10953_s1 + $0x19c] ss:$12 sps:$4 sm:$0xff]  }
  0x16   : > { %1214 = vmatprep.subr.bf16.mxu1 %v7791_v36  ;;  %v7813_v54 = vld [vmem:[%s10953_s1 + $0x180] ss:$12 sps:$4 sm:$0xff]   ;;  %v7816_v55 = vld [vmem:[%s10953_s1 + $0x330] ss:$12 sps:$4 sm:$0xff]   ;;  %v7819_v56 = vld [vmem:[%s10953_s1 + $0x198] ss:$12 sps:$4 sm:$0xff]  }
  0x17   : > { %7029 = vmatmul.mubr.msk.bf16.vlgmr.msra.gmra.mrb[0].mxu0 %vm325_vm1, %v7762_v17  ;;  %v7822_v58 = vld [vmem:[%s10953_s1 + $0x348] ss:$12 sps:$4 sm:$0xff]   ;;  %v7824_v59 = vld [vmem:[%s10953_s1 + $0x34c] ss:$12 sps:$4 sm:$0xff]   ;;  %v7830_v61 = vld [vmem:[%s10953_s1 + $0x364] ss:$12 sps:$4 sm:$0xff]  }
  0x18   : > { %390 = vmatprep.mubr.bf16.mxu0 %v8389_v2  ;;  %680 = vmatpush1.bf16.msra.mxu0 %v7766_v20  ;;  %v7827_v60 = vld [vmem:[%s10953_s1 + $0x1b4] ss:$12 sps:$4 sm:$0xff]   ;;  %v7825_v62 = vld [vmem:[%s10953_s1 + $0x1b0] ss:$12 sps:$4 sm:$0xff]   ;;  %v7833_v0 = vld [vmem:[%s10953_s1 + $0x1cc] ss:$12 sps:$4 sm:$0xff]  }
  0x19   : > { %681 = vmatprep.subr.bf16.mxu0 %v7779_v23  ;;  %7043 = vmatmul.mubr.msk.bf16.vlgmr.msra.gmra.mrb[0].mxu1 %vm325_vm1, %v7762_v17  ;;  %v7828_v63 = vld [vmem:[%s10953_s1 + $0x360] ss:$12 sps:$4 sm:$0xff]   ;;  %v7836_v1 = vld [vmem:[%s10953_s1 + $0x37c] ss:$12 sps:$4 sm:$0xff]   ;;  %v7834_v4 = vld [vmem:[%s10953_s1 + $0x378] ss:$12 sps:$4 sm:$0xff]  }
  0x1a   : > { %526 = vmatprep.mubr.bf16.mxu1 %v8389_v2  ;;  %1215 = vmatpush1.bf16.msra.mxu1 %v7789_v38  ;;  %v7831_v3 = vld [vmem:[%s10953_s1 + $0x1c8] ss:$12 sps:$4 sm:$0xff]   ;;  %v7839_v6 = vld [vmem:[%s10953_s1 + $0x1e4] ss:$12 sps:$4 sm:$0xff]   ;;  %v7837_v8 = vld [vmem:[%s10953_s1 + $0x1e0] ss:$12 sps:$4 sm:$0xff]  }
  0x1b   : > { %1216 = vmatprep.subr.bf16.mxu1 %v7797_v41  ;;  %v7842_v7 = vld [vmem:[%s10953_s1 + $0x394] ss:$12 sps:$4 sm:$0xff]   ;;  %v7840_v9 = vld [vmem:[%s10953_s1 + $0x390] ss:$12 sps:$4 sm:$0xff]   ;;  %vm920_vm2 = vcmp.ge.s32.totalorder %v8655_v11, 19  ;;  %vm3932_vm3 = vcmp.le.s32.totalorder %v8655_v11, 22 }
  0x1c   : > { %682 = vmatpush1.bf16.msra.mxu0 %v7777_v24  ;;  %v7845_v12 = vld [vmem:[%s10953_s1 + $0x1fc] ss:$12 sps:$4 sm:$0xff]   ;;  %vm902_vm4 = vcmp.le.s32.totalorder %v8655_v11, 16  ;;  %vm3935_vm5 = vmand %vm920_vm2, %vm3932_vm3  ;;  %vm1927_vm3 = vcmask 1043456   ;;  %s8391_s24 = smov 120   ;;  %s8392_s20 = smov 112  }
  0x1d   : > { %683 = vmatprep.subr.bf16.mxu0 %v7785_v26  ;;  %vm8667_vm6 = vmor %vm902_vm4, %vm3935_vm5  ;;  %vm2134_vm5 = vcmask 64512   ;;  %s7696_s23 = smul.u32 120, %s10961_s19  ;;  %s7582_s7 = sshll.u32 %s10961_s19, 5 }
  0x1e   : > { %1217 = vmatpush1.bf16.msra.mxu1 %v7795_v40  ;;  %vm947_vm10 = vmor %vm902_vm4, %vm920_vm2  ;;  %vm1917_vm4 = vcmask 588800   ;;  %s7697_s27 = smul.u32 48, %s10961_s19  ;;  %s249_s10 = scalar_lea.vmem %s10957_s5, %s7582_s7 }
  0x1f   : > { %7030 = vmatmul.mubr.msk.bf16.gmra.mrb[4].mxu0 %vm325_vm1, %v7763_v28  ;;  %1218 = vmatprep.subr.bf16.mxu1 %v7803_v44  ;;  %s10438_s26 = scalar_lea.vmem %s10955_s3, %s7696_s23 }
  0x20   : > { %400 = vmatprep.mubr.bf16.mxu0 %v8389_v2  ;;  %684 = vmatpush1.bf16.msra.mxu0 %v7783_v29  ;;  %s244_s29 = scalar_lea.vmem %s10956_s4, %s7697_s27 }
  0x21   : > { %7056 = vmatprep.subr.msk.bf16.mxu0 %vm341_vm0, %v7055_v30  ;;  %7044 = vmatmul.mubr.msk.bf16.gmra.mrb[4].mxu1 %vm325_vm1, %v7763_v28 }
  0x22   : > { %536 = vmatprep.mubr.bf16.mxu1 %v8389_v2  ;;  %1219 = vmatpush1.bf16.msra.mxu1 %v7801_v46 }
  0x23   : > { %1220 = vmatprep.subr.bf16.mxu1 %v7809_v49 }
  0x24   : > { %686 = vmatpush1.bf16.msra.mxu0 %v674_v33 }
  0x25   : > { %1421 = vmatprep.subr.bf16.mxu0 %v7794_v37 }
  0x26   : > { %1221 = vmatpush1.bf16.msra.mxu1 %v7807_v48 }
  0x27   : > { %7031 = vmatmul.mubr.msk.bf16.gmra.mrb[8].mxu0 %vm325_vm1, %v7773_v32  ;;  %1222 = vmatprep.subr.bf16.mxu1 %v7815_v52 }
  0x28   : > { %410 = vmatprep.mubr.bf16.mxu0 %v8389_v2 }
  0x29   : > { %7045 = vmatmul.mubr.msk.bf16.gmra.mrb[8].mxu1 %vm325_vm1, %v7773_v32 }
  0x2a   : > { %546 = vmatprep.mubr.bf16.mxu1 %v8389_v2  ;;  %1223 = vmatpush1.bf16.msra.mxu1 %v7813_v54 }
  0x2b   : > { %1224 = vmatprep.subr.bf16.mxu1 %v7821_v57 }
  0x2e   : > { %1225 = vmatpush1.bf16.msra.mxu1 %v7819_v56 }
  0x2f   : > { %7032 = vmatmul.mubr.msk.bf16.gmra.mrb[12].mxu0 %vm325_vm1, %v7782_v34  ;;  %1226 = vmatprep.subr.bf16.mxu1 %v7827_v60 }
  0x30   : > { %420 = vmatprep.mubr.bf16.mxu0 %v8389_v2 }
  0x31   : > { %7046 = vmatmul.mubr.msk.bf16.gmra.mrb[12].mxu1 %vm325_vm1, %v7782_v34 }
  0x32   : > { %556 = vmatprep.mubr.bf16.mxu1 %v8389_v2  ;;  %1227 = vmatpush1.bf16.msra.mxu1 %v7825_v62 }
  0x33   : > { %1228 = vmatprep.subr.bf16.mxu1 %v7833_v0 }
  0x36   : > { %1229 = vmatpush1.bf16.msra.mxu1 %v7831_v3 }
  0x37   : > { %7033 = vmatmul.mubr.msk.bf16.gmra.mrb[16].mxu0 %vm325_vm1, %v7786_v35  ;;  %1230 = vmatprep.subr.bf16.mxu1 %v7839_v6 }
  0x38   : > { %711 = vmatprep.mubr.bf16.mxu0 %v8389_v2 }
  0x39   : > { %7047 = vmatmul.mubr.msk.bf16.gmra.mrb[16].mxu1 %vm325_vm1, %v7786_v35 }
  0x3a   : > { %1231 = vmatpush1.bf16.msra.mxu1 %v7837_v8 }
  0x3b   : > { %1664 = vmatprep.subr.bf16.mxu1 %v7845_v12 }
  0x3f   : > { %7057 = vmatmul.mubr.msk.bf16.vlgmr.msra.gmra.mrb[20].mxu0 %vm325_vm1, %v7762_v17 }
  0x40   : > { %721 = vmatprep.mubr.bf16.mxu0 %v8389_v2  ;;  %1422 = vmatpush1.bf16.msra.mxu0 %v7792_v39 }
  0x41   : > { %1423 = vmatprep.subr.bf16.mxu0 %v7800_v43 }
  0x44   : > { %1424 = vmatpush1.bf16.msra.mxu0 %v7798_v42 }
  0x45   : > { %1425 = vmatprep.subr.bf16.mxu0 %v7806_v45 }
  0x47   : > { %7058 = vmatmul.mubr.msk.bf16.gmra.mrb[24].mxu0 %vm325_vm1, %v7763_v28 }
  0x48   : > { %731 = vmatprep.mubr.bf16.mxu0 %v8389_v2  ;;  %1426 = vmatpush1.bf16.msra.mxu0 %v7804_v47 }
  0x49   : > { %1427 = vmatprep.subr.bf16.mxu0 %v7812_v51 }
  0x4c   : > { %1428 = vmatpush1.bf16.msra.mxu0 %v7810_v50 }
  0x4d   : > { %1429 = vmatprep.subr.bf16.mxu0 %v7818_v53 }
  0x4f   : > { %7059 = vmatmul.mubr.msk.bf16.gmra.mrb[28].mxu0 %vm325_vm1, %v7773_v32 }
  0x50   : > { %741 = vmatprep.mubr.bf16.mxu0 %v8389_v2  ;;  %1430 = vmatpush1.bf16.msra.mxu0 %v7816_v55 }
  0x51   : > { %1431 = vmatprep.subr.bf16.mxu0 %v7824_v59 }
  0x54   : > { %1432 = vmatpush1.bf16.msra.mxu0 %v7822_v58 }
  0x55   : > { %1433 = vmatprep.subr.bf16.mxu0 %v7830_v61 }
  0x57   : > { %7060 = vmatmul.mubr.msk.bf16.gmra.mrb[32].mxu0 %vm325_vm1, %v7782_v34 }
  0x58   : > { %751 = vmatprep.mubr.bf16.mxu0 %v8389_v2  ;;  %1434 = vmatpush1.bf16.msra.mxu0 %v7828_v63 }
  0x59   : > { %1435 = vmatprep.subr.bf16.mxu0 %v7836_v1 }
  0x5c   : > { %1436 = vmatpush1.bf16.msra.mxu0 %v7834_v4 }
  0x5d   : > { %1437 = vmatprep.subr.bf16.mxu0 %v7842_v7 }
  0x5f   : > { %7061 = vmatmul.mubr.msk.bf16.gmra.mrb[36].mxu0 %vm325_vm1, %v7786_v35 }
  0x60   : > { %1438 = vmatpush1.bf16.msra.mxu0 %v7840_v9 }
  0xea   : > { %v8671_v14 = vpop.f32.mrb[0].mxu0 }
  0xeb   : > { %v8673_v15 = vpop.f32.mrb[1].mxu0  ;;  %v584_v17 = vrot.slane %v8671_v14, 7 }
  0xec   : > { %v386_v16 = vpop.f32.mrb[2].mxu0  ;;  %v585_v20 = vrot.slane %v8673_v15, 7  ;;  %v518_v23 = vpop.f32.mrb[0].mxu1 }
  0xed   : > { %v586_v18 = vrot.slane %v386_v16, 7  ;;  %v388_v19 = vpop.f32.mrb[3].mxu0  ;;  %v779_v25 = vrot.slane %v518_v23, 1  ;;  %v520_v26 = vpop.f32.mrb[1].mxu1 }
  0xee   : > { %v588_v21 = vrot.slane %v388_v19, 7  ;;  %v782_v28 = vrot.slane %v520_v26, 1  ;;  %v522_v29 = vpop.f32.mrb[2].mxu1 }
  0xef   : > { %v8680_v22 = vsel %vm583_vm7, %v584_v17, %v586_v18  ;;  %v780_v32 = vrot.slane %v522_v29, 1  ;;  %v524_v33 = vpop.f32.mrb[3].mxu1 }
  0xf0   : > { %v8685_v24 = vsel %vm583_vm7, %v585_v20, %v588_v21  ;;  %v783_v36 = vrot.slane %v524_v33, 1 }
  0xf1   : > { %v8688_v39 = vsel %vm778_vm8, %v779_v25, %v780_v32 }
  0xf2   : > { %v392_v27 = vpop.f32.mrb[4].mxu0  ;;  %v8694_v42 = vsel %vm778_vm8, %v782_v28, %v783_v36 }
  0xf3   : > { %v590_v30 = vrot.slane %v392_v27, 7  ;;  %v394_v31 = vpop.f32.mrb[5].mxu0 }
  0xf4   : > { %v592_v34 = vrot.slane %v394_v31, 7  ;;  %v396_v35 = vpop.f32.mrb[6].mxu0  ;;  %v528_v45 = vpop.f32.mrb[4].mxu1 }
  0xf5   : > { %v594_v37 = vrot.slane %v396_v35, 7  ;;  %v398_v38 = vpop.f32.mrb[7].mxu0  ;;  %v8691_v40 = vsel %vm583_vm7, %v586_v18, %v590_v30  ;;  %v785_v47 = vrot.slane %v528_v45, 1  ;;  %v530_v48 = vpop.f32.mrb[5].mxu1 }
  0xf6   : > { %v596_v41 = vrot.slane %v398_v38, 7  ;;  %v8697_v43 = vsel %vm583_vm7, %v588_v21, %v592_v34  ;;  %v787_v50 = vrot.slane %v530_v48, 1  ;;  %v532_v51 = vpop.f32.mrb[6].mxu1 }
  0xf7   : > { %v8700_v44 = vsel %vm583_vm7, %v590_v30, %v594_v37  ;;  %v789_v54 = vrot.slane %v532_v51, 1  ;;  %v534_v55 = vpop.f32.mrb[7].mxu1  ;;  %v8706_v56 = vsel %vm778_vm8, %v780_v32, %v785_v47 }
  0xf8   : > { %v8703_v46 = vsel %vm583_vm7, %v592_v34, %v596_v41  ;;  %v791_v59 = vrot.slane %v534_v55, 1  ;;  %v8709_v60 = vsel %vm778_vm8, %v783_v36, %v787_v50 }
  0xf9   : > { %v8712_v63 = vsel %vm778_vm8, %v785_v47, %v789_v54 }
  0xfa   : > { %v402_v49 = vpop.f32.mrb[8].mxu0  ;;  %v8718_v3 = vsel %vm778_vm8, %v787_v50, %v791_v59 }
  0xfb   : > { %v598_v52 = vrot.slane %v402_v49, 7  ;;  %v404_v53 = vpop.f32.mrb[9].mxu0 }
  0xfc   : > { %v600_v57 = vrot.slane %v404_v53, 7  ;;  %v406_v58 = vpop.f32.mrb[10].mxu0  ;;  %v538_v6 = vpop.f32.mrb[8].mxu1 }
  0xfd   : > { %v602_v61 = vrot.slane %v406_v58, 7  ;;  %v408_v62 = vpop.f32.mrb[11].mxu0  ;;  %v8715_v0 = vsel %vm583_vm7, %v594_v37, %v598_v52  ;;  %v793_v8 = vrot.slane %v538_v6, 1  ;;  %v540_v9 = vpop.f32.mrb[9].mxu1 }
  0xfe   : > { %v604_v1 = vrot.slane %v408_v62, 7  ;;  %v8721_v4 = vsel %vm583_vm7, %v596_v41, %v600_v57  ;;  %v795_v16 = vrot.slane %v540_v9, 1  ;;  %v542_v18 = vpop.f32.mrb[10].mxu1  ;;  %v8766_v9 = vsub.s32 0, %v8652_v10 }
  0xff   : > { %v8724_v5 = vsel %vm583_vm7, %v598_v52, %v602_v61  ;;  %v797_v23 = vrot.slane %v542_v18, 1  ;;  %v544_v25 = vpop.f32.mrb[11].mxu1  ;;  %v8730_v26 = vsel %vm778_vm8, %v789_v54, %v793_v8  ;;  %v851_v18 = vld [vmem:[%s10954_s2] ss:$8 sm:$0x3] }
 0x100   : > { %v8727_v7 = vsel %vm583_vm7, %v600_v57, %v604_v1  ;;  %v799_v29 = vrot.slane %v544_v25, 1  ;;  %v8733_v30 = vsel %vm778_vm8, %v791_v59, %v795_v16 }
 0x101   : > { %v8736_v33 = vsel %vm778_vm8, %v793_v8, %v797_v23 }
 0x102   : > { %v412_v12 = vpop.f32.mrb[12].mxu0  ;;  %v8742_v36 = vsel %vm778_vm8, %v795_v16, %v799_v29 }
 0x103   : > { %v606_v19 = vrot.slane %v412_v12, 7  ;;  %v414_v21 = vpop.f32.mrb[13].mxu0 }
 0x104   : > { %v608_v27 = vrot.slane %v414_v21, 7  ;;  %v416_v28 = vpop.f32.mrb[14].mxu0  ;;  %v548_v41 = vpop.f32.mrb[12].mxu1 }
 0x105   : > { %v610_v31 = vrot.slane %v416_v28, 7  ;;  %v418_v32 = vpop.f32.mrb[15].mxu0  ;;  %v8739_v34 = vsel %vm583_vm7, %v602_v61, %v606_v19  ;;  %v801_v47 = vrot.slane %v548_v41, 1  ;;  %v550_v48 = vpop.f32.mrb[13].mxu1  ;;  %v637_v41 = vsel %vm583_vm7, 0.0, %v585_v20 }
 0x106   : > { %v612_v35 = vrot.slane %v418_v32, 7  ;;  %v8745_v37 = vsel %vm583_vm7, %v604_v1, %v608_v27  ;;  %v803_v50 = vrot.slane %v550_v48, 1  ;;  %v552_v51 = vpop.f32.mrb[14].mxu1 }
 0x107   : > { %v8748_v38 = vsel %vm583_vm7, %v606_v19, %v610_v31  ;;  %v805_v54 = vrot.slane %v552_v51, 1  ;;  %v554_v55 = vpop.f32.mrb[15].mxu1  ;;  %v8754_v57 = vsel %vm778_vm8, %v797_v23, %v801_v47  ;;  %v8778_v19 = vsub.s32 1, %v8652_v10 }
 0x108   : > { %v8751_v45 = vsel %vm583_vm7, %v608_v27, %v612_v35  ;;  %v807_v61 = vrot.slane %v554_v55, 1  ;;  %v8757_v62 = vsel %vm778_vm8, %v799_v29, %v803_v50  ;;  %v636_v27 = vsel %vm583_vm7, 0.0, %v584_v17 }
 0x109   : > { %v8760_v6 = vsel %vm778_vm8, %v801_v47, %v805_v54  ;;  %v8789_v29 = vrot.slane %v851_v18, %v8766_v9 }
 0x10a   : > { %v422_v49 = vpop.f32.mrb[16].mxu0  ;;  %v8769_v12 = vsel %vm778_vm8, %v803_v50, %v807_v61 }
 0x10b   : > { %v614_v52 = vrot.slane %v422_v49, 7  ;;  %v424_v53 = vpop.f32.mrb[17].mxu0  ;;  %v8802_v49 = vrot.slane %v851_v18, %v8778_v19 }
 0x10c   : > { %v616_v58 = vrot.slane %v424_v53, 7  ;;  %v426_v59 = vpop.f32.mrb[18].mxu0  ;;  %v8780_v21 = vpop.f32.mrb[16].mxu1  ;;  %v8390_v53 = vmov 0.0  }
 0x10d   : > { %v427_v1 = vpop.f32.mrb[19].mxu0  ;;  %v8763_v8 = vsel %vm583_vm7, %v610_v31, %v614_v52  ;;  %v809_v23 = vrot.slane %v8780_v21, 1  ;;  %v8783_v25 = vpop.f32.mrb[17].mxu1  ;;  %v7861_v21 = vld [vmem:[%s10953_s1 + $0x288] ss:$12 sps:$4 sm:$0xff]  }
 0x10e   : > { %v8772_v16 = vsel %vm583_vm7, %v612_v35, %v616_v58  ;;  %v811_v31 = vrot.slane %v8783_v25, 1  ;;  %v562_v32 = vpop.f32.mrb[18].mxu1 }
 0x10f   : > { %v563_v48 = vpop.f32.mrb[19].mxu1  ;;  %v8799_v14 = vsel %vm778_vm8, %v805_v54, %v809_v23  ;;  %v8814_v54 = vsel %vm891_vm9, 1.0, %v8390_v53 }
 0x110   : > { %v8807_v51 = vsel %vm778_vm8, %v807_v61, %v811_v31 }
 0x112   : > { %v713_v28 = vpop.f32.mrb[20].mxu0 }
 0x113   : > { %v714_v35 = vadd.f32 %v713_v28, %v636_v27  ;;  %v715_v47 = vpop.f32.mrb[21].mxu0 }
 0x114   : > { %v716_v17 = vadd.f32 %v715_v47, %v637_v41  ;;  %v717_v50 = vpop.f32.mrb[22].mxu0 }
 0x115   : > { %v833_v15 = vadd.f32 %v8688_v39, %v714_v35  ;;  %v718_v20 = vadd.f32 %v717_v50, %v8680_v22  ;;  %v719_v52 = vpop.f32.mrb[23].mxu0 }
 0x116   : > { %v834_v55 = vadd.f32 %v8694_v42, %v716_v17  ;;  %v720_v58 = vadd.f32 %v719_v52, %v8685_v24  ;;  %v8833_v17 = vadd.s32 32, %v8652_v10 }
 0x117   : > { %v863_v59 = vadd.f32 %v8789_v29, %v833_v15  ;;  %v835_v61 = vadd.f32 %v8706_v56, %v718_v20 }
 0x118   : > { %v864_v1 = vadd.f32 %v8802_v49, %v834_v55  ;;  %v836_v39 = vadd.f32 %v8709_v60, %v720_v58  ;;  %v7063_v58 = vsel %vm947_vm10, 1.0, %v8390_v53  ;;  %vm931_vm12 = vcmp.le.s32.totalorder %v8833_v17, 34 }
 0x119   : > { %v1044_v22 = vmul.f32 %v8814_v54, %v863_v59  ;;  %v865_v18 = vadd.f32 %v8789_v29, %v835_v61  ;;  %v7843_v59 = vld [vmem:[%s10953_s1 + $0x1f8] ss:$12 sps:$4 sm:$0xff]   ;;  %vm958_vm13 = vcmp.ge.s32.totalorder %v8833_v17, 37  ;;  %vm2118_vm10 = vcmask 982016  }
 0x11a   : > { %v1045_v27 = vmul.f32 %v8814_v54, %v864_v1  ;;  %v866_v28 = vadd.f32 %v8802_v49, %v836_v39  ;;  %v723_v32 = vpop.f32.mrb[24].mxu0  ;;  %vm985_vm14 = vmor %vm931_vm12, %vm958_vm13  ;;  %vm2356_vm12 = vcmask 654336  }
 0x11b   : > { %v1062_v42 = vmax.f32 %v1044_v22, 0.0  ;;  %v1064_v35 = vmax.f32 %v865_v18, 0.0  ;;  %v724_v24 = vadd.f32 %v723_v32, %v8691_v40  ;;  %v725_v41 = vpop.f32.mrb[25].mxu0  ;;  %v7846_v18 = vld [vmem:[%s10953_s1 + $0x210] ss:$12 sps:$4 sm:$0xff]  }
 0x11c   : > { %v1063_v56 = vmax.f32 %v1045_v27, 0.0  ;;  %v1065_v60 = vmax.f32 %v866_v28, 0.0  ;;  %v726_v47 = vadd.f32 %v725_v41, %v8697_v43  ;;  %v727_v48 = vpop.f32.mrb[26].mxu0 }
 0x11d   : > { %v8835_v50 = vpack.c.bf16 %v1064_v35, %v1062_v42  ;;  %v837_v15 = vadd.f32 %v8712_v63, %v724_v24  ;;  %v728_v40 = vadd.f32 %v727_v48, %v8700_v44  ;;  %v729_v20 = vpop.f32.mrb[27].mxu0  ;;  %v7848_v44 = vld [vmem:[%s10953_s1 + $0x214] ss:$12 sps:$4 sm:$0xff]   ;;  %v7851_v35 = vld [vmem:[%s10953_s1 + $0x22c] ss:$12 sps:$4 sm:$0xff]  }
 0x11e   : > { %v8839_v52 = vpack.c.bf16 %v1065_v60, %v1063_v56  ;;  %v838_v55 = vadd.f32 %v8718_v3, %v726_v47  ;;  %v730_v43 = vadd.f32 %v729_v20, %v8703_v46  ;;  %v888_v47 = vadd.s32 48, %v8652_v10 }
 0x11f   : > { %v867_v61 = vadd.f32 %v8789_v29, %v837_v15  ;;  %v839_v63 = vadd.f32 %v8730_v26, %v728_v40 }
 0x120   : > { %v868_v1 = vadd.f32 %v8802_v49, %v838_v55  ;;  %v840_v3 = vadd.f32 %v8733_v30, %v730_v43  ;;  %7085 = vmatprep.mubr.msk.bf16.mxu1 %vm1198_vm11, %v8839_v52  ;;  %7108 = vmatprep.mubr.msk.bf16.mxu0 %vm1198_vm11, %v8839_v52  ;;  %vm969_vm15 = vcmp.le.s32.totalorder %v888_v47, 52  ;;  %vm996_vm0 = vcmp.ge.s32.totalorder %v888_v47, 55 }
 0x121   : > { %v869_v46 = vadd.f32 %v8789_v29, %v839_v63  ;;  %1247 = vmatmul.mubr.bf16.vlgmr.msra.gmra.mrb[20].mxu1 %v8835_v50  ;;  %1454 = vmatmul.mubr.bf16.vlgmr.msra.gmra.mrb[40].mxu0 %v8835_v50  ;;  %v1048_v26 = vmul.f32 %v7063_v58, %v867_v61  ;;  %vm1023_vm1 = vmor %vm969_vm15, %vm996_vm0  ;;  %v890_v47 = vadd.s32 64, %v8652_v10  ;;  %vm2799_vm0 = vcmp.le.s32.totalorder %v8655_v11, 18 }
 0x122   : > { %v1049_v39 = vmul.f32 %v7063_v58, %v868_v1  ;;  %v870_v30 = vadd.f32 %v8802_v49, %v840_v3  ;;  %v733_v22 = vpop.f32.mrb[28].mxu0  ;;  %1665 = vmatpush1.bf16.msra.mxu1 %v7843_v59  ;;  %v7064_v58 = vsel %vm985_vm14, 1.0, %v8390_v53  ;;  %v7854_v59 = vld [vmem:[%s10953_s1 + $0x244] ss:$12 sps:$4 sm:$0xff]  }
 0x123   : > { %v1068_v27 = vmax.f32 %v869_v46, 0.0  ;;  %v734_v28 = vadd.f32 %v733_v22, %v8715_v0  ;;  %v735_v32 = vpop.f32.mrb[29].mxu0  ;;  %v1066_v42 = vmax.f32 %v1048_v26, 0.0  ;;  %1666 = vmatprep.subr.bf16.mxu1 %v7848_v44  ;;  %vm1007_vm2 = vcmp.le.s32.totalorder %v890_v47, 70 }
 0x124   : > { %v1067_v24 = vmax.f32 %v1049_v39, 0.0  ;;  %v1069_v41 = vmax.f32 %v870_v30, 0.0  ;;  %v736_v56 = vadd.f32 %v735_v32, %v8721_v4  ;;  %v737_v60 = vpop.f32.mrb[30].mxu0  ;;  %v7849_v4 = vld [vmem:[%s10953_s1 + $0x228] ss:$12 sps:$4 sm:$0xff]  }
 0x125   : > { %v841_v48 = vadd.f32 %v8736_v33, %v734_v28  ;;  %v738_v15 = vadd.f32 %v737_v60, %v8724_v5  ;;  %v739_v0 = vpop.f32.mrb[31].mxu0  ;;  %v8875_v40 = vpack.c.bf16 %v1068_v27, %v1066_v42  ;;  %v7857_v30 = vld [vmem:[%s10953_s1 + $0x25c] ss:$12 sps:$4 sm:$0xff]  }
 0x126   : > { %v8877_v20 = vpack.c.bf16 %v1069_v41, %v1067_v24  ;;  %v842_v55 = vadd.f32 %v8742_v36, %v736_v56  ;;  %v740_v43 = vadd.f32 %v739_v0, %v8727_v7  ;;  %1667 = vmatpush1.bf16.msra.mxu1 %v7846_v18  ;;  %v7065_v56 = vsel %vm1023_vm1, 1.0, %v8390_v53 }
 0x127   : > { %v871_v33 = vadd.f32 %v8789_v29, %v841_v48  ;;  %v843_v5 = vadd.f32 %v8754_v57, %v738_v15  ;;  %1668 = vmatprep.subr.bf16.mxu1 %v7851_v35  ;;  %vm2814_vm1 = vcmp.ge.s32.totalorder %v8655_v11, 21 }
 0x128   : > { %v872_v36 = vadd.f32 %v8802_v49, %v842_v55  ;;  %v844_v61 = vadd.f32 %v8757_v62, %v740_v43  ;;  %7086 = vmatprep.mubr.msk.bf16.mxu1 %vm1198_vm11, %v8877_v20  ;;  %7109 = vmatprep.mubr.msk.bf16.mxu0 %vm1198_vm11, %v8877_v20  ;;  %v7852_v62 = vld [vmem:[%s10953_s1 + $0x240] ss:$12 sps:$4 sm:$0xff]  }
 0x129   : > { %v873_v7 = vadd.f32 %v8789_v29, %v843_v5  ;;  %1257 = vmatmul.mubr.bf16.gmra.mrb[24].mxu1 %v8875_v40  ;;  %1464 = vmatmul.mubr.bf16.gmra.mrb[44].mxu0 %v8875_v40  ;;  %v1052_v57 = vmul.f32 %v7064_v58, %v871_v33 }
 0x12a   : > { %v1053_v63 = vmul.f32 %v7064_v58, %v872_v36  ;;  %v874_v44 = vadd.f32 %v8802_v49, %v844_v61  ;;  %v743_v1 = vpop.f32.mrb[32].mxu0  ;;  %1669 = vmatpush1.bf16.msra.mxu1 %v7849_v4  ;;  %v831_v36 = vsel %vm778_vm8, %v809_v23, 0.0 }
 0x12b   : > { %v1072_v3 = vmax.f32 %v873_v7, 0.0  ;;  %v744_v46 = vadd.f32 %v743_v1, %v8739_v34  ;;  %v745_v26 = vpop.f32.mrb[33].mxu0  ;;  %v1070_v39 = vmax.f32 %v1052_v57, 0.0  ;;  %1670 = vmatprep.subr.bf16.mxu1 %v7854_v59  ;;  %v7863_v59 = vld [vmem:[%s10953_s1 + $0x28c] ss:$12 sps:$4 sm:$0xff]  }
 0x12c   : > { %v1071_v22 = vmax.f32 %v1053_v63, 0.0  ;;  %v1073_v18 = vmax.f32 %v874_v44, 0.0  ;;  %v746_v27 = vadd.f32 %v745_v26, %v8745_v37  ;;  %v747_v28 = vpop.f32.mrb[34].mxu0  ;;  %v7855_v37 = vld [vmem:[%s10953_s1 + $0x258] ss:$12 sps:$4 sm:$0xff]   ;;  %v7066_v26 = vsel %vm1007_vm2, 1.0, %v8390_v53 }
 0x12d   : > { %v845_v32 = vadd.f32 %v8760_v6, %v744_v46  ;;  %v748_v42 = vadd.f32 %v747_v28, %v8748_v38  ;;  %v749_v35 = vpop.f32.mrb[35].mxu0  ;;  %v8910_v24 = vpack.c.bf16 %v1072_v3, %v1070_v39 }
 0x12e   : > { %v8912_v34 = vpack.c.bf16 %v1073_v18, %v1071_v22  ;;  %v846_v41 = vadd.f32 %v8769_v12, %v746_v27  ;;  %v750_v60 = vadd.f32 %v749_v35, %v8751_v45  ;;  %1671 = vmatpush1.bf16.msra.mxu1 %v7852_v62  ;;  %v7860_v12 = vld [vmem:[%s10953_s1 + $0x274] ss:$12 sps:$4 sm:$0xff]   ;;  %v7869_v22 = vld [vmem:[%s10953_s1 + $0x2bc] ss:$12 sps:$4 sm:$0xff]   ;;  %v7867_v27 = vld [vmem:[%s10953_s1 + $0x2b8] ss:$12 sps:$4 sm:$0xff]  }
 0x12f   : > { %v875_v6 = vadd.f32 %v8789_v29, %v845_v32  ;;  %v847_v38 = vadd.f32 %v8799_v14, %v748_v42  ;;  %1672 = vmatprep.subr.bf16.mxu1 %v7857_v30 }
 0x130   : > { %v876_v48 = vadd.f32 %v8802_v49, %v846_v41  ;;  %v848_v45 = vadd.f32 %v8807_v51, %v750_v60  ;;  %7087 = vmatprep.mubr.msk.bf16.mxu1 %vm1198_vm11, %v8912_v34  ;;  %7110 = vmatprep.mubr.msk.bf16.mxu0 %vm1198_vm11, %v8912_v34  ;;  %v7858_v51 = vld [vmem:[%s10953_s1 + $0x270] ss:$12 sps:$4 sm:$0xff]  }
 0x131   : > { %v877_v15 = vadd.f32 %v8789_v29, %v847_v38  ;;  %1267 = vmatmul.mubr.bf16.gmra.mrb[28].mxu1 %v8910_v24  ;;  %1474 = vmatmul.mubr.bf16.gmra.mrb[48].mxu0 %v8910_v24  ;;  %v1056_v14 = vmul.f32 %v7065_v56, %v875_v6 }
 0x132   : > { %v1057_v0 = vmul.f32 %v7065_v56, %v876_v48  ;;  %v878_v55 = vadd.f32 %v8802_v49, %v848_v45  ;;  %v753_v58 = vpop.f32.mrb[36].mxu0  ;;  %1673 = vmatpush1.bf16.msra.mxu1 %v7855_v37 }
 0x133   : > { %v1076_v43 = vmax.f32 %v877_v15, 0.0  ;;  %v754_v4 = vadd.f32 %v753_v58, %v8763_v8  ;;  %v755_v33 = vpop.f32.mrb[37].mxu0  ;;  %v1074_v5 = vmax.f32 %v1056_v14, 0.0  ;;  %1674 = vmatprep.subr.bf16.mxu1 %v7860_v12  ;;  %v832_v8 = vsel %vm778_vm8, %v811_v31, 0.0 }
 0x134   : > { %v1075_v61 = vmax.f32 %v1057_v0, 0.0  ;;  %v1077_v7 = vmax.f32 %v878_v55, 0.0  ;;  %v756_v57 = vadd.f32 %v755_v33, %v8772_v16  ;;  %v757_v63 = vpop.f32.mrb[38].mxu0  ;;  %v7866_v16 = vld [vmem:[%s10953_s1 + $0x2a4] ss:$12 sps:$4 sm:$0xff]  }
 0x135   : > { %v849_v44 = vadd.f32 %v831_v36, %v754_v4  ;;  %v758_v1 = vpop.f32.mrb[39].mxu0  ;;  %v1086_v62 = vpack.c.bf16 %v1076_v43, %v1074_v5 }
 0x136   : > { %v1087_v3 = vpack.c.bf16 %v1077_v7, %v1075_v61  ;;  %v850_v46 = vadd.f32 %v832_v8, %v756_v57  ;;  %1675 = vmatpush1.bf16.msra.mxu1 %v7858_v51 }
 0x137   : > { %v879_v23 = vadd.f32 %v8789_v29, %v849_v44  ;;  %1676 = vmatprep.subr.bf16.mxu1 %v7863_v59  ;;  %v7864_v29 = vld [vmem:[%s10953_s1 + $0x2a0] ss:$12 sps:$4 sm:$0xff]  }
 0x138   : > { %v880_v25 = vadd.f32 %v8802_v49, %v850_v46  ;;  %7088 = vmatprep.mubr.msk.bf16.mxu1 %vm1198_vm11, %v1087_v3  ;;  %7111 = vmatprep.mubr.msk.bf16.mxu0 %vm1198_vm11, %v1087_v3 }
 0x139   : > { %1277 = vmatmul.mubr.bf16.gmra.mrb[32].mxu1 %v1086_v62  ;;  %1484 = vmatmul.mubr.bf16.gmra.mrb[52].mxu0 %v1086_v62  ;;  %v1060_v31 = vmul.f32 %v7066_v26, %v879_v23 }
 0x13a   : > { %v1061_v39 = vmul.f32 %v7066_v26, %v880_v25  ;;  %1677 = vmatpush1.bf16.msra.mxu1 %v7861_v21 }
 0x13b   : > { %v1078_v30 = vmax.f32 %v1060_v31, 0.0  ;;  %1678 = vmatprep.subr.bf16.mxu1 %v7866_v16 }
 0x13c   : > { %v1079_v49 = vmax.f32 %v1061_v39, 0.0 }
 0x13d   : > { %v1088_v28 = vpack.c.bf16 %v1078_v30, %v1078_v30 }
 0x13e   : > { %v1089_v18 = vpack.c.bf16 %v1079_v49, %v1079_v49  ;;  %1679 = vmatpush1.bf16.msra.mxu1 %v7864_v29 }
 0x13f   : > { %1680 = vmatprep.subr.bf16.mxu1 %v7869_v22 }
 0x140   : > { %7089 = vmatprep.mubr.msk.bf16.mxu1 %vm1198_vm11, %v1089_v18  ;;  %7112 = vmatprep.mubr.msk.bf16.mxu0 %vm1198_vm11, %v1089_v18 }
 0x141   : > { %1287 = vmatmul.mubr.bf16.gmra.mrb[36].mxu1 %v1088_v28  ;;  %1494 = vmatmul.mubr.bf16.gmra.mrb[56].mxu0 %v1088_v28 }
 0x142   : > { %7131 = vmatprep.mubr.msk.bf16.mxu1 %vm1198_vm11, %v8839_v52  ;;  %1681 = vmatpush1.bf16.msra.mxu1 %v7867_v27 }
 0x143   : > { %1966 = vmatprep.mubr.bf16.mxu0 %v8389_v2 }
 0x149   : > { %1697 = vmatmul.mubr.bf16.vlgmr.msra.gmra.mrb[40].mxu1 %v8835_v50 }
 0x14a   : > { %7132 = vmatprep.mubr.msk.bf16.mxu1 %vm1198_vm11, %v8877_v20 }
 0x151   : > { %1707 = vmatmul.mubr.bf16.gmra.mrb[44].mxu1 %v8875_v40 }
 0x152   : > { %7133 = vmatprep.mubr.msk.bf16.mxu1 %vm1198_vm11, %v8912_v34 }
 0x159   : > { %1717 = vmatmul.mubr.bf16.gmra.mrb[48].mxu1 %v8910_v24 }
 0x15a   : > { %7134 = vmatprep.mubr.msk.bf16.mxu1 %vm1198_vm11, %v1087_v3 }
 0x161   : > { %1727 = vmatmul.mubr.bf16.gmra.mrb[52].mxu1 %v1086_v62 }
 0x162   : > { %7135 = vmatprep.mubr.msk.bf16.mxu1 %vm1198_vm11, %v1089_v18 }
 0x169   : > { %1737 = vmatmul.mubr.bf16.gmra.mrb[56].mxu1 %v1088_v28 }
 0x16a   : > { %2049 = vmatprep.mubr.bf16.mxu1 %v8389_v2 }
 0x1f4   : > { %v8985_v52 = vpop.f32.mrb[20].mxu1  ;;  %v1455_v50 = vpop.f32.mrb[40].mxu0 }
 0x1f5   : > { %v8987_v32 = vpop.f32.mrb[21].mxu1  ;;  %v1457_v20 = vpop.f32.mrb[41].mxu0  ;;  %v1520_v35 = vrot.slane %v8985_v52, 7  ;;  %v1763_v34 = vrot.slane %v1455_v50, 1 }
 0x1f6   : > { %v1252_v40 = vpop.f32.mrb[22].mxu1  ;;  %v1459_v42 = vpop.f32.mrb[42].mxu0  ;;  %v1521_v37 = vrot.slane %v8987_v32, 7  ;;  %v1766_v6 = vrot.slane %v1457_v20, 1 }
 0x1f7   : > { %v1522_v24 = vrot.slane %v1252_v40, 7  ;;  %v1764_v41 = vrot.slane %v1459_v42, 1  ;;  %v1254_v56 = vpop.f32.mrb[23].mxu1  ;;  %v1461_v60 = vpop.f32.mrb[43].mxu0 }
 0x1f8   : > { %v1524_v38 = vrot.slane %v1254_v56, 7  ;;  %v1767_v47 = vrot.slane %v1461_v60, 1 }
 0x1f9   : > { %v8992_v12 = vsel %vm778_vm8, %v1763_v34, %v1764_v41  ;;  %v8997_v48 = vsel %vm583_vm7, %v1520_v35, %v1522_v24 }
 0x1fa   : > { %v9000_v45 = vsel %vm778_vm8, %v1766_v6, %v1767_v47  ;;  %v9005_v15 = vsel %vm583_vm7, %v1521_v37, %v1524_v38 }
 0x1fc   : > { %v1258_v14 = vpop.f32.mrb[24].mxu1  ;;  %v1465_v0 = vpop.f32.mrb[44].mxu0 }
 0x1fd   : > { %v1526_v55 = vrot.slane %v1258_v14, 7  ;;  %v1769_v58 = vrot.slane %v1465_v0, 1  ;;  %v1260_v51 = vpop.f32.mrb[25].mxu1  ;;  %v1467_v43 = vpop.f32.mrb[45].mxu0 }
 0x1fe   : > { %v1528_v4 = vrot.slane %v1260_v51, 7  ;;  %v1771_v33 = vrot.slane %v1467_v43, 1  ;;  %v1262_v5 = vpop.f32.mrb[26].mxu1  ;;  %v1469_v59 = vpop.f32.mrb[46].mxu0 }
 0x1ff   : > { %v1530_v36 = vrot.slane %v1262_v5, 7  ;;  %v1773_v61 = vrot.slane %v1469_v59, 1  ;;  %v1264_v7 = vpop.f32.mrb[27].mxu1  ;;  %v1471_v57 = vpop.f32.mrb[47].mxu0  ;;  %v9008_v63 = vsel %vm778_vm8, %v1764_v41, %v1769_v58  ;;  %v9011_v8 = vsel %vm583_vm7, %v1522_v24, %v1526_v55 }
 0x200   : > { %v1532_v44 = vrot.slane %v1264_v7, 7  ;;  %v1775_v1 = vrot.slane %v1471_v57, 1  ;;  %v9014_v62 = vsel %vm778_vm8, %v1767_v47, %v1771_v33  ;;  %v9017_v3 = vsel %vm583_vm7, %v1524_v38, %v1528_v4 }
 0x201   : > { %v9020_v46 = vsel %vm778_vm8, %v1769_v58, %v1773_v61  ;;  %v9023_v26 = vsel %vm583_vm7, %v1526_v55, %v1530_v36 }
 0x202   : > { %v9026_v21 = vsel %vm778_vm8, %v1771_v33, %v1775_v1  ;;  %v9029_v23 = vsel %vm583_vm7, %v1528_v4, %v1532_v44 }
 0x204   : > { %v1268_v16 = vpop.f32.mrb[28].mxu1  ;;  %v1475_v25 = vpop.f32.mrb[48].mxu0 }
 0x205   : > { %v1534_v31 = vrot.slane %v1268_v16, 7  ;;  %v1777_v39 = vrot.slane %v1475_v25, 1  ;;  %v1270_v29 = vpop.f32.mrb[29].mxu1  ;;  %v1477_v30 = vpop.f32.mrb[49].mxu0 }
 0x206   : > { %v1536_v22 = vrot.slane %v1270_v29, 7  ;;  %v1779_v49 = vrot.slane %v1477_v30, 1  ;;  %v1272_v18 = vpop.f32.mrb[30].mxu1  ;;  %v1479_v27 = vpop.f32.mrb[50].mxu0 }
 0x207   : > { %v1538_v28 = vrot.slane %v1272_v18, 7  ;;  %v1781_v50 = vrot.slane %v1479_v27, 1  ;;  %v1274_v20 = vpop.f32.mrb[31].mxu1  ;;  %v1481_v40 = vpop.f32.mrb[51].mxu0  ;;  %v9032_v42 = vsel %vm778_vm8, %v1773_v61, %v1777_v39  ;;  %v9035_v34 = vsel %vm583_vm7, %v1530_v36, %v1534_v31 }
 0x208   : > { %v1540_v24 = vrot.slane %v1274_v20, 7  ;;  %v1783_v41 = vrot.slane %v1481_v40, 1  ;;  %v9038_v56 = vsel %vm778_vm8, %v1775_v1, %v1779_v49  ;;  %v9041_v60 = vsel %vm583_vm7, %v1532_v44, %v1536_v22 }
 0x209   : > { %v9044_v6 = vsel %vm778_vm8, %v1777_v39, %v1781_v50  ;;  %v9047_v38 = vsel %vm583_vm7, %v1534_v31, %v1538_v28 }
 0x20a   : > { %v9050_v47 = vsel %vm778_vm8, %v1779_v49, %v1783_v41  ;;  %v9053_v14 = vsel %vm583_vm7, %v1536_v22, %v1540_v24 }
 0x20c   : > { %v1278_v0 = vpop.f32.mrb[32].mxu1  ;;  %v1485_v55 = vpop.f32.mrb[52].mxu0 }
 0x20d   : > { %v1542_v58 = vrot.slane %v1278_v0, 7  ;;  %v1785_v51 = vrot.slane %v1485_v55, 1  ;;  %v1280_v43 = vpop.f32.mrb[33].mxu1  ;;  %v1487_v4 = vpop.f32.mrb[53].mxu0 }
 0x20e   : > { %v1544_v33 = vrot.slane %v1280_v43, 7  ;;  %v1787_v5 = vrot.slane %v1487_v4, 1  ;;  %v1282_v59 = vpop.f32.mrb[34].mxu1  ;;  %v1489_v36 = vpop.f32.mrb[54].mxu0 }
 0x20f   : > { %v1546_v61 = vrot.slane %v1282_v59, 7  ;;  %v1789_v7 = vrot.slane %v1489_v36, 1  ;;  %v1284_v57 = vpop.f32.mrb[35].mxu1  ;;  %v1491_v44 = vpop.f32.mrb[55].mxu0  ;;  %v9056_v1 = vsel %vm778_vm8, %v1781_v50, %v1785_v51  ;;  %v9059_v16 = vsel %vm583_vm7, %v1538_v28, %v1542_v58 }
 0x210   : > { %v1548_v25 = vrot.slane %v1284_v57, 7  ;;  %v1791_v31 = vrot.slane %v1491_v44, 1  ;;  %v9062_v39 = vsel %vm778_vm8, %v1783_v41, %v1787_v5  ;;  %v9065_v29 = vsel %vm583_vm7, %v1540_v24, %v1544_v33  ;;  %v7136_v36 = vld [vmem:[%s10954_s2 + $0x1] ss:$8 sm:$0x3] }
 0x211   : > { %v9068_v30 = vsel %vm778_vm8, %v1785_v51, %v1789_v7  ;;  %v9071_v22 = vsel %vm583_vm7, %v1542_v58, %v1546_v61 }
 0x212   : > { %v9074_v49 = vsel %vm778_vm8, %v1787_v5, %v1791_v31  ;;  %v9077_v18 = vsel %vm583_vm7, %v1544_v33, %v1548_v25 }
 0x214   : > { %v1288_v27 = vpop.f32.mrb[36].mxu1  ;;  %v9079_v28 = vpop.f32.mrb[56].mxu0 }
 0x215   : > { %v1550_v50 = vrot.slane %v1288_v27, 7  ;;  %v1793_v20 = vrot.slane %v9079_v28, 1  ;;  %v1290_v40 = vpop.f32.mrb[37].mxu1  ;;  %v9082_v24 = vpop.f32.mrb[57].mxu0 }
 0x216   : > { %v1552_v41 = vrot.slane %v1290_v40, 7  ;;  %v1795_v0 = vrot.slane %v9082_v24, 1  ;;  %v1292_v55 = vpop.f32.mrb[38].mxu1  ;;  %v1499_v58 = vpop.f32.mrb[58].mxu0 }
 0x217   : > { %v1293_v51 = vpop.f32.mrb[39].mxu1  ;;  %v1500_v43 = vpop.f32.mrb[59].mxu0  ;;  %v9088_v4 = vsel %vm778_vm8, %v1789_v7, %v1793_v20  ;;  %v9091_v33 = vsel %vm583_vm7, %v1546_v61, %v1550_v50  ;;  %v1572_v7 = vsel %vm583_vm7, 0.0, %v1520_v35  ;;  %v9108_v61 = vrot.slane %v7136_v36, %v8766_v9 }
 0x218   : > { %v9096_v5 = vsel %vm778_vm8, %v1791_v31, %v1795_v0  ;;  %v9099_v59 = vsel %vm583_vm7, %v1548_v25, %v1552_v41  ;;  %v1573_v31 = vsel %vm583_vm7, 0.0, %v1521_v37  ;;  %v9114_v50 = vrot.slane %v7136_v36, %v8778_v19 }
 0x21c   : > { %v1698_v57 = vpop.f32.mrb[40].mxu1 }
 0x21d   : > { %v1699_v44 = vadd.f32 %v1698_v57, %v1572_v7  ;;  %v1700_v27 = vpop.f32.mrb[41].mxu1 }
 0x21e   : > { %v1701_v25 = vadd.f32 %v1700_v27, %v1573_v31  ;;  %v1702_v40 = vpop.f32.mrb[42].mxu1 }
 0x21f   : > { %v1817_v41 = vadd.f32 %v8992_v12, %v1699_v44  ;;  %v1703_v52 = vadd.f32 %v1702_v40, %v8997_v48  ;;  %v1704_v35 = vpop.f32.mrb[43].mxu1 }
 0x220   : > { %v1818_v55 = vadd.f32 %v9000_v45, %v1701_v25  ;;  %v1705_v58 = vadd.f32 %v1704_v35, %v9005_v15 }
 0x221   : > { %v1848_v51 = vadd.f32 %v9108_v61, %v1817_v41  ;;  %v1819_v32 = vadd.f32 %v9008_v63, %v1703_v52 }
 0x222   : > { %v1849_v37 = vadd.f32 %v9114_v50, %v1818_v55  ;;  %v1820_v43 = vadd.f32 %v9014_v62, %v1705_v58 }
 0x223   : > { %v1850_v36 = vadd.f32 %v9108_v61, %v1819_v32  ;;  %v1866_v57 = vmax.f32 %v1848_v51, 0.0 }
 0x224   : > { %v1851_v7 = vadd.f32 %v9114_v50, %v1820_v43  ;;  %v1708_v12 = vpop.f32.mrb[44].mxu1  ;;  %v1867_v31 = vmax.f32 %v1849_v37, 0.0 }
 0x225   : > { %v1868_v48 = vmax.f32 %v1850_v36, 0.0  ;;  %v1709_v44 = vadd.f32 %v1708_v12, %v9011_v8  ;;  %v1710_v45 = vpop.f32.mrb[45].mxu1 }
 0x226   : > { %v1869_v15 = vmax.f32 %v1851_v7, 0.0  ;;  %v1711_v27 = vadd.f32 %v1710_v45, %v9017_v3  ;;  %v1712_v25 = vpop.f32.mrb[46].mxu1 }
 0x227   : > { %v1884_v63 = vpack.c.bf16 %v1868_v48, %v1866_v57  ;;  %v1821_v40 = vadd.f32 %v9020_v46, %v1709_v44  ;;  %v1713_v62 = vadd.f32 %v1712_v25, %v9023_v26  ;;  %v1714_v41 = vpop.f32.mrb[47].mxu1 }
 0x228   : > { %v1822_v52 = vadd.f32 %v9026_v21, %v1711_v27  ;;  %v1715_v35 = vadd.f32 %v1714_v41, %v9029_v23  ;;  %v1885_v55 = vpack.c.bf16 %v1869_v15, %v1867_v31 }
 0x229   : > { %v1852_v58 = vadd.f32 %v9108_v61, %v1821_v40  ;;  %v1823_v8 = vadd.f32 %v9032_v42, %v1713_v62 }
 0x22a   : > { %v1853_v51 = vadd.f32 %v9114_v50, %v1822_v52  ;;  %v1824_v3 = vadd.f32 %v9038_v56, %v1715_v35  ;;  %1934 = vmatprep.subr.bf16.mxu0 %v1885_v55  ;;  %2017 = vmatprep.subr.bf16.mxu1 %v1885_v55 }
 0x22b   : > { %v1854_v46 = vadd.f32 %v9108_v61, %v1823_v8  ;;  %1935 = vmatpush1.bf16.msra.mxu0 %v1884_v63  ;;  %2018 = vmatpush1.bf16.msra.mxu1 %v1884_v63  ;;  %v1870_v32 = vmax.f32 %v1852_v58, 0.0 }
 0x22c   : > { %v1855_v26 = vadd.f32 %v9114_v50, %v1824_v3  ;;  %v1718_v21 = vpop.f32.mrb[48].mxu1  ;;  %v1871_v36 = vmax.f32 %v1853_v51, 0.0 }
 0x22d   : > { %v1872_v23 = vmax.f32 %v1854_v46, 0.0  ;;  %v1719_v37 = vadd.f32 %v1718_v21, %v9035_v34  ;;  %v1720_v43 = vpop.f32.mrb[49].mxu1 }
 0x22e   : > { %v1873_v42 = vmax.f32 %v1855_v26, 0.0  ;;  %v1721_v7 = vadd.f32 %v1720_v43, %v9041_v60  ;;  %v1722_v12 = vpop.f32.mrb[50].mxu1 }
 0x22f   : > { %v1886_v56 = vpack.c.bf16 %v1872_v23, %v1870_v32  ;;  %v1825_v57 = vadd.f32 %v9044_v6, %v1719_v37  ;;  %v1723_v48 = vadd.f32 %v1722_v12, %v9047_v38  ;;  %v1724_v44 = vpop.f32.mrb[51].mxu1 }
 0x230   : > { %v1826_v45 = vadd.f32 %v9050_v47, %v1721_v7  ;;  %v1725_v31 = vadd.f32 %v1724_v44, %v9053_v14  ;;  %v1887_v15 = vpack.c.bf16 %v1873_v42, %v1871_v36  ;;  %v1816_v7 = vsel %vm778_vm8, %v1795_v0, 0.0 }
 0x231   : > { %v1856_v27 = vadd.f32 %v9108_v61, %v1825_v57  ;;  %v1827_v34 = vadd.f32 %v9056_v1, %v1723_v48 }
 0x232   : > { %v1857_v25 = vadd.f32 %v9114_v50, %v1826_v45  ;;  %v1828_v60 = vadd.f32 %v9062_v39, %v1725_v31  ;;  %1936 = vmatprep.subr.bf16.mxu0 %v1887_v15  ;;  %2019 = vmatprep.subr.bf16.mxu1 %v1887_v15  ;;  %v7872_v31 = vld [vmem:[%s10953_s1 + $0x1218] ss:$12 sps:$4 sm:$0xff]   ;;  %v7873_v15 = vld [vmem:[%s10953_s1 + $0x1260] ss:$12 sps:$4 sm:$0xff]  }
 0x233   : > { %v1858_v6 = vadd.f32 %v9108_v61, %v1827_v34  ;;  %1937 = vmatpush1.bf16.msra.mxu0 %v1886_v56  ;;  %2020 = vmatpush1.bf16.msra.mxu1 %v1886_v56  ;;  %v1874_v63 = vmax.f32 %v1856_v27, 0.0  ;;  %v7874_v27 = vld [vmem:[%s10953_s1 + $0x1230] ss:$0 sps:$4 sm:$0xff]   ;;  %v7875_v34 = vld [vmem:[%s10953_s1 + $0x1278] ss:$0 sps:$4 sm:$0xff]  }
 0x234   : > { %v1859_v38 = vadd.f32 %v9114_v50, %v1828_v60  ;;  %v1728_v47 = vpop.f32.mrb[52].mxu1  ;;  %v1875_v41 = vmax.f32 %v1857_v25, 0.0  ;;  %v7876_v25 = vld [vmem:[%s10953_s1 + $0x1290] ss:$12 sps:$4 sm:$0xff]   ;;  %v7877_v60 = vld [vmem:[%s10953_s1 + $0x12a8] ss:$12 sps:$4 sm:$0xff]  }
 0x235   : > { %v1876_v14 = vmax.f32 %v1858_v6, 0.0  ;;  %v1729_v40 = vadd.f32 %v1728_v47, %v9059_v16  ;;  %v1730_v62 = vpop.f32.mrb[53].mxu1  ;;  %v7878_v6 = vld [vmem:[%s10953_s1 + $0x12c0] ss:$12 sps:$4 sm:$0xff]   ;;  %v7880_v47 = vld [vmem:[%s10953_s1 + $0x12f0] ss:$12 sps:$4 sm:$0xff]  }
 0x236   : > { %v1877_v1 = vmax.f32 %v1859_v38, 0.0  ;;  %v1731_v52 = vadd.f32 %v1730_v62, %v9065_v29  ;;  %v1732_v35 = vpop.f32.mrb[54].mxu1  ;;  %v7879_v38 = vld [vmem:[%s10953_s1 + $0x12d8] ss:$12 sps:$4 sm:$0xff]  }
 0x237   : > { %v1888_v39 = vpack.c.bf16 %v1876_v14, %v1874_v63  ;;  %v1829_v55 = vadd.f32 %v9068_v30, %v1729_v40  ;;  %v1733_v58 = vadd.f32 %v1732_v35, %v9071_v22  ;;  %v1734_v8 = vpop.f32.mrb[55].mxu1  ;;  %v7881_v63 = vld [vmem:[%s10953_s1 + $0x1308] ss:$12 sps:$4 sm:$0xff]   ;;  %v7882_v14 = vld [vmem:[%s10953_s1 + $0x1320] ss:$12 sps:$4 sm:$0xff]  }
 0x238   : > { %v1830_v51 = vadd.f32 %v9074_v49, %v1731_v52  ;;  %v1735_v3 = vadd.f32 %v1734_v8, %v9077_v18  ;;  %v1889_v46 = vpack.c.bf16 %v1877_v1, %v1875_v41  ;;  %v7883_v40 = vld [vmem:[%s10953_s1 + $0x1338] ss:$12 sps:$4 sm:$0xff]  }
 0x239   : > { %v1860_v26 = vadd.f32 %v9108_v61, %v1829_v55  ;;  %v1831_v16 = vadd.f32 %v9088_v4, %v1733_v58  ;;  %v1815_v4 = vsel %vm778_vm8, %v1793_v20, 0.0 }
 0x23a   : > { %v1861_v21 = vadd.f32 %v9114_v50, %v1830_v51  ;;  %v1832_v29 = vadd.f32 %v9096_v5, %v1735_v3  ;;  %1938 = vmatprep.subr.bf16.mxu0 %v1889_v46  ;;  %2021 = vmatprep.subr.bf16.mxu1 %v1889_v46 }
 0x23b   : > { %v1862_v30 = vadd.f32 %v9108_v61, %v1831_v16  ;;  %1939 = vmatpush1.bf16.msra.mxu0 %v1888_v39  ;;  %2022 = vmatpush1.bf16.msra.mxu1 %v1888_v39  ;;  %v1878_v32 = vmax.f32 %v1860_v26, 0.0  ;;  %v7884_v39 = vld [vmem:[%s10953_s1 + $0x1350] ss:$12 sps:$4 sm:$0xff]  }
 0x23c   : > { %v1863_v22 = vadd.f32 %v9114_v50, %v1832_v29  ;;  %v1738_v49 = vpop.f32.mrb[56].mxu1  ;;  %v1879_v43 = vmax.f32 %v1861_v21, 0.0 }
 0x23d   : > { %v1880_v18 = vmax.f32 %v1862_v30, 0.0  ;;  %v1739_v23 = vadd.f32 %v1738_v49, %v9091_v33  ;;  %v1740_v37 = vpop.f32.mrb[57].mxu1 }
 0x23e   : > { %v1881_v5 = vmax.f32 %v1863_v22, 0.0  ;;  %v1741_v36 = vadd.f32 %v1740_v37, %v9099_v59  ;;  %v1742_v42 = vpop.f32.mrb[58].mxu1 }
 0x23f   : > { %v1890_v12 = vpack.c.bf16 %v1880_v18, %v1878_v32  ;;  %v1833_v56 = vadd.f32 %v1815_v4, %v1739_v23  ;;  %v1743_v57 = vpop.f32.mrb[59].mxu1 }
 0x240   : > { %v1834_v48 = vadd.f32 %v1816_v7, %v1741_v36  ;;  %v1891_v44 = vpack.c.bf16 %v1881_v5, %v1879_v43 }
 0x241   : > { %v1864_v33 = vadd.f32 %v9108_v61, %v1833_v56  ;;  %v7870_v61 = vld [vmem:[%s10953_s1 + $0x1200] ss:$12 sps:$4 sm:$0xff]  }
 0x242   : > { %v1865_v28 = vadd.f32 %v9114_v50, %v1834_v48  ;;  %1940 = vmatprep.subr.bf16.mxu0 %v1891_v44  ;;  %2023 = vmatprep.subr.bf16.mxu1 %v1891_v44  ;;  %v7871_v50 = vld [vmem:[%s10953_s1 + $0x1248] ss:$12 sps:$4 sm:$0xff]  }
 0x243   : > { %v1882_v20 = vmax.f32 %v1864_v33, 0.0  ;;  %1941 = vmatpush1.bf16.msra.mxu0 %v1890_v12  ;;  %2024 = vmatpush1.bf16.msra.mxu1 %v1890_v12 }
 0x244   : > { %v1883_v59 = vmax.f32 %v1865_v28, 0.0 }
 0x245   : > { %v1892_v45 = vpack.c.bf16 %v1882_v20, %v1882_v20 }
 0x246   : > { %v1893_v24 = vpack.c.bf16 %v1883_v59, %v1883_v59 }
 0x247   : > { %v1929_v0 = vsel %vm1927_vm3, %v1892_v45, 0 }
 0x248   : > { %7140 = vmatprep.subr.msk.bf16.mxu0 %vm1927_vm3, %v1893_v24  ;;  %7147 = vmatprep.subr.msk.bf16.mxu1 %vm1927_vm3, %v1893_v24 }
 0x249   : > { %1943 = vmatpush1.bf16.msra.mxu0 %v1929_v0  ;;  %2026 = vmatpush1.bf16.msra.mxu1 %v1929_v0  ;;  %v7885_v0 = vld [vmem:[%s10953_s1 + $0x3a8] ss:$12 sps:$4 sm:$0xff]  }
 0x24a   : > { %2237 = vmatprep.subr.bf16.mxu0 %v8389_v2 }
 0x24c   : > { %7141 = vmatmul.mubr.msk.bf16.vlgmr.msra.gmra.mrb[60].mxu0 %vm1917_vm4, %v7870_v61  ;;  %7148 = vmatmul.mubr.msk.bf16.vlgmr.msra.gmra.mrb[60].mxu1 %vm1917_vm4, %v7871_v50  ;;  %v7887_v61 = vld [vmem:[%s10953_s1 + $0x3ac] ss:$12 sps:$4 sm:$0xff]   ;;  %v7890_v50 = vld [vmem:[%s10953_s1 + $0x424] ss:$12 sps:$4 sm:$0xff]  }
 0x24d   : > { %1976 = vmatprep.mubr.bf16.mxu0 %v8389_v2  ;;  %2059 = vmatprep.mubr.bf16.mxu1 %v8389_v2 }
 0x24e   : > { %2238 = vmatpush1.bf16.msra.mxu0 %v7876_v25  ;;  %2366 = vmatprep.subr.bf16.mxu1 %v7887_v61  ;;  %v7905_v25 = vld [vmem:[%s10953_s1 + $0x3f4] ss:$12 sps:$4 sm:$0xff]  }
 0x24f   : > { %2239 = vmatprep.subr.bf16.mxu0 %v8389_v2  ;;  %2367 = vmatpush1.bf16.msra.mxu1 %v7885_v0  ;;  %v7908_v0 = vld [vmem:[%s10953_s1 + $0x46c] ss:$12 sps:$4 sm:$0xff]  }
 0x252   : > { %2240 = vmatpush1.bf16.msra.mxu0 %v7877_v60  ;;  %v7903_v60 = vld [vmem:[%s10953_s1 + $0x3f0] ss:$12 sps:$4 sm:$0xff]  }
 0x253   : > { %2241 = vmatprep.subr.bf16.mxu0 %v8389_v2 }
 0x254   : > { %7142 = vmatmul.mubr.msk.bf16.gmra.mrb[64].mxu0 %vm1917_vm4, %v7872_v31  ;;  %7149 = vmatmul.mubr.msk.bf16.gmra.mrb[64].mxu1 %vm1917_vm4, %v7873_v15  ;;  %v7893_v31 = vld [vmem:[%s10953_s1 + $0x3c4] ss:$12 sps:$4 sm:$0xff]   ;;  %v7891_v15 = vld [vmem:[%s10953_s1 + $0x3c0] ss:$12 sps:$4 sm:$0xff]  }
 0x255   : > { %1986 = vmatprep.mubr.bf16.mxu0 %v8389_v2  ;;  %2069 = vmatprep.mubr.bf16.mxu1 %v8389_v2 }
 0x256   : > { %2242 = vmatpush1.bf16.msra.mxu0 %v7878_v6  ;;  %2368 = vmatprep.subr.bf16.mxu1 %v7893_v31  ;;  %v7911_v31 = vld [vmem:[%s10953_s1 + $0x40c] ss:$12 sps:$4 sm:$0xff]  }
 0x257   : > { %2243 = vmatprep.subr.bf16.mxu0 %v8389_v2  ;;  %2369 = vmatpush1.bf16.msra.mxu1 %v7891_v15  ;;  %v7914_v15 = vld [vmem:[%s10953_s1 + $0x484] ss:$12 sps:$4 sm:$0xff]  }
 0x25a   : > { %2244 = vmatpush1.bf16.msra.mxu0 %v7879_v38 }
 0x25b   : > { %2245 = vmatprep.subr.bf16.mxu0 %v8389_v2 }
 0x25c   : > { %7143 = vmatmul.mubr.msk.bf16.gmra.mrb[68].mxu0 %vm1917_vm4, %v7874_v27  ;;  %7150 = vmatmul.mubr.msk.bf16.gmra.mrb[68].mxu1 %vm1917_vm4, %v7875_v34  ;;  %v7899_v27 = vld [vmem:[%s10953_s1 + $0x3dc] ss:$12 sps:$4 sm:$0xff]   ;;  %v7897_v34 = vld [vmem:[%s10953_s1 + $0x3d8] ss:$12 sps:$4 sm:$0xff]  }
 0x25d   : > { %2398 = vmatprep.mubr.bf16.mxu1 %v8389_v2  ;;  %2370 = vmatprep.subr.bf16.mxu1 %v7899_v27  ;;  %v7909_v27 = vld [vmem:[%s10953_s1 + $0x408] ss:$12 sps:$4 sm:$0xff]  }
 0x25e   : > { %2246 = vmatpush1.bf16.msra.mxu0 %v7880_v47  ;;  %2371 = vmatpush1.bf16.msra.mxu1 %v7897_v34  ;;  %v7917_v34 = vld [vmem:[%s10953_s1 + $0x49c] ss:$12 sps:$4 sm:$0xff]  }
 0x25f   : > { %2247 = vmatprep.subr.bf16.mxu0 %v8389_v2  ;;  %2372 = vmatprep.subr.bf16.mxu1 %v7905_v25 }
 0x262   : > { %2248 = vmatpush1.bf16.msra.mxu0 %v7881_v63  ;;  %2373 = vmatpush1.bf16.msra.mxu1 %v7903_v60 }
 0x263   : > { %2249 = vmatprep.subr.bf16.mxu0 %v8389_v2  ;;  %2374 = vmatprep.subr.bf16.mxu1 %v7911_v31 }
 0x266   : > { %2250 = vmatpush1.bf16.msra.mxu0 %v7882_v14  ;;  %2375 = vmatpush1.bf16.msra.mxu1 %v7909_v27 }
 0x267   : > { %2251 = vmatprep.subr.bf16.mxu0 %v8389_v2  ;;  %2497 = vmatprep.subr.bf16.mxu1 %v7917_v34 }
 0x26a   : > { %2252 = vmatpush1.bf16.msra.mxu0 %v7883_v40 }
 0x26b   : > { %2253 = vmatprep.subr.bf16.mxu0 %v8389_v2 }
 0x26e   : > { %2254 = vmatpush1.bf16.msra.mxu0 %v7884_v39 }
 0x26f   : > { %2648 = vmatprep.subr.bf16.mxu0 %v7890_v50 }
 0x31f   : > { %v1968_v62 = vpop.f32.mrb[60].mxu0  ;;  %v2051_v41 = vpop.f32.mrb[60].mxu1 }
 0x320   : > { %v9231_v1 = vmax.f32 %v1968_v62, %v2051_v41  ;;  %v1970_v52 = vpop.f32.mrb[61].mxu0  ;;  %v2053_v35 = vpop.f32.mrb[61].mxu1 }
 0x321   : > { %v9236_v55 = vmax.f32 %v1970_v52, %v2053_v35  ;;  %v1972_v58 = vpop.f32.mrb[62].mxu0  ;;  %v2055_v8 = vpop.f32.mrb[62].mxu1 }
 0x322   : > { %v9238_v51 = vmax.f32 %v1972_v58, %v2055_v8  ;;  %v1974_v3 = vpop.f32.mrb[63].mxu0  ;;  %v2057_v46 = vpop.f32.mrb[63].mxu1 }
 0x323   : > { %v9240_v26 = vmax.f32 %v1974_v3, %v2057_v46 }
 0x324   : > { %v7716_v32 = vpack.i.bf16 %v9238_v51, %v9231_v1 }
 0x325   : > { %v7711_v16 = vpack.i.bf16 %v9240_v26, %v9236_v55 }
 0x327   : > { %v2061_v21 = vpop.f32.mrb[64].mxu1  ;;  %7712 = vrot.lane.b32.xlu0 %v7711_v16, %s8391_s24  ;;  %v1978_v29 = vpop.f32.mrb[64].mxu0 }
 0x328   : > { %v9244_v30 = vmax.f32 %v1978_v29, %v2061_v21  ;;  %v1980_v22 = vpop.f32.mrb[65].mxu0  ;;  %v2063_v49 = vpop.f32.mrb[65].mxu1 }
 0x329   : > { %v9248_v18 = vmax.f32 %v1980_v22, %v2063_v49  ;;  %v1982_v23 = vpop.f32.mrb[66].mxu0  ;;  %v2065_v37 = vpop.f32.mrb[66].mxu1  ;;  %v7896_v22 = vld [vmem:[%s10953_s1 + $0x43c] ss:$12 sps:$4 sm:$0xff]  }
 0x32a   : > { %v9250_v4 = vmax.f32 %v1982_v23, %v2065_v37  ;;  %v1984_v43 = vpop.f32.mrb[67].mxu0  ;;  %v2067_v5 = vpop.f32.mrb[67].mxu1 }
 0x32b   : > { %v9252_v36 = vmax.f32 %v1984_v43, %v2067_v5  ;;  %7717 = vrot.lane.b32.xlu0 %v7716_v32, %s8391_s24  ;;  %v7894_v5 = vld [vmem:[%s10953_s1 + $0x438] ss:$12 sps:$4 sm:$0xff]  }
 0x32c   : > { %v7726_v44 = vpack.i.bf16 %v9250_v4, %v9244_v30 }
 0x32d   : > { %v7721_v42 = vpack.i.bf16 %v9252_v36, %v9248_v18 }
 0x32f   : > { %v2071_v7 = vpop.f32.mrb[68].mxu1  ;;  %7722 = vrot.lane.b32.xlu1 %v7721_v42, %s8391_s24  ;;  %v1988_v12 = vpop.f32.mrb[68].mxu0 }
 0x330   : > { %v9256_v56 = vmax.f32 %v1988_v12, %v2071_v7  ;;  %v1990_v57 = vpop.f32.mrb[69].mxu0  ;;  %v2073_v48 = vpop.f32.mrb[69].mxu1  ;;  %v7902_v12 = vld [vmem:[%s10953_s1 + $0x454] ss:$12 sps:$4 sm:$0xff]  }
 0x331   : > { %v9260_v33 = vmax.f32 %v1990_v57, %v2073_v48  ;;  %v2075_v28 = vpop.f32.mrb[70].mxu1  ;;  %v1992_v20 = vpop.f32.mrb[70].mxu0 }
 0x332   : > { %v1993_v59 = vpop.f32.mrb[71].mxu0  ;;  %v2076_v45 = vpop.f32.mrb[71].mxu1 }
 0x333   : > { %v7731_v24 = vpack.i.bf16 %v9256_v56, %v9260_v33  ;;  %7727 = vrot.lane.b32.xlu1 %v7726_v44, %s8391_s24  ;;  %v7900_v59 = vld [vmem:[%s10953_s1 + $0x450] ss:$12 sps:$4 sm:$0xff]  }
 0x335   : > { %7732 = vrot.lane.b32.xlu0 %v7731_v24, %s8391_s24 }
 0x399   : > { %v7713_v6 = vpop.permute.xlu0 %7712 }
 0x39a   : > { %v7715_v38 = vunpack.i.h.bf16 %v7713_v6  ;;  %v7714_v47 = vunpack.i.l.bf16 %v7713_v6 }
 0x39c   : > { %v2136_v63 = vsel %vm2134_vm5, %v7715_v38, 0.0  ;;  %v2135_v14 = vsel %vm2134_vm5, %v7714_v47, 0.0 }
 0x39d   : > { %v2143_v40 = vmax.f32 %v9240_v26, %v2136_v63  ;;  %v2141_v62 = vmax.f32 %v9236_v55, %v2135_v14  ;;  %v7718_v41 = vpop.permute.xlu0 %7717  ;;  %v7888_v55 = vld [vmem:[%s10953_s1 + $0x420] ss:$12 sps:$4 sm:$0xff]  }
 0x39e   : > { %v7720_v52 = vunpack.i.h.bf16 %v7718_v41  ;;  %v7719_v35 = vunpack.i.l.bf16 %v7718_v41  ;;  %v7920_v14 = vld [vmem:[%s10953_s1 + $0x4b4] ss:$12 sps:$4 sm:$0xff]  }
 0x39f   : > { %v2169_v39 = vpack.c.bf16 %v2143_v40, %v2141_v62  ;;  %v7918_v40 = vld [vmem:[%s10953_s1 + $0x4b0] ss:$12 sps:$4 sm:$0xff]   ;;  %v7923_v62 = vld [vmem:[%s10953_s1 + $0x4cc] ss:$12 sps:$4 sm:$0xff]  }
 0x3a0   : > { %v2119_v58 = vsel %vm2118_vm10, %v7719_v35, %v7714_v47  ;;  %v2120_v8 = vsel %vm2118_vm10, %v7720_v52, %v7715_v38  ;;  %v7915_v38 = vld [vmem:[%s10953_s1 + $0x498] ss:$12 sps:$4 sm:$0xff]  }
 0x3a1   : > { %v2140_v3 = vmax.f32 %v9231_v1, %v2119_v58  ;;  %v2142_v46 = vmax.f32 %v9238_v51, %v2120_v8  ;;  %7160 = vmatprep.mubr.msk.bf16.mxu0 %vm1198_vm11, %v2169_v39  ;;  %v7723_v16 = vpop.permute.xlu1 %7722  ;;  %v7921_v39 = vld [vmem:[%s10953_s1 + $0x4c8] ss:$12 sps:$4 sm:$0xff]  }
 0x3a2   : > { %v7725_v21 = vunpack.i.h.bf16 %v7723_v16  ;;  %v7724_v26 = vunpack.i.l.bf16 %v7723_v16  ;;  %v7929_v16 = vld [vmem:[%s10953_s1 + $0x4fc] ss:$12 sps:$4 sm:$0xff]  }
 0x3a3   : > { %v2168_v29 = vpack.c.bf16 %v2142_v46, %v2140_v3  ;;  %v7926_v3 = vld [vmem:[%s10953_s1 + $0x4e4] ss:$12 sps:$4 sm:$0xff]   ;;  %v7924_v46 = vld [vmem:[%s10953_s1 + $0x4e0] ss:$12 sps:$4 sm:$0xff]  }
 0x3a4   : > { %v2138_v49 = vsel %vm2134_vm5, %v7725_v21, 0.0  ;;  %v2137_v1 = vsel %vm2134_vm5, %v7724_v26, 0.0 }
 0x3a5   : > { %v2147_v51 = vmax.f32 %v9252_v36, %v2138_v49  ;;  %v2145_v32 = vmax.f32 %v9248_v18, %v2137_v1  ;;  %2270 = vmatmul.mubr.bf16.vlgmr.msra.gmra.mrb[72].mxu0 %v2168_v29  ;;  %v7728_v23 = vpop.permute.xlu1 %7727  ;;  %v7927_v29 = vld [vmem:[%s10953_s1 + $0x4f8] ss:$12 sps:$4 sm:$0xff]  }
 0x3a6   : > { %v7730_v37 = vunpack.i.h.bf16 %v7728_v23  ;;  %v7729_v43 = vunpack.i.l.bf16 %v7728_v23  ;;  %2649 = vmatpush1.bf16.msra.mxu0 %v7888_v55  ;;  %v7932_v1 = vld [vmem:[%s10953_s1 + $0x1504] ss:$12 sps:$4 sm:$0xff]  }
 0x3a7   : > { %v2171_v42 = vpack.c.bf16 %v2147_v51, %v2145_v32  ;;  %v7733_v7 = vpop.permute.xlu0 %7732  ;;  %2650 = vmatprep.subr.bf16.mxu0 %v7896_v22  ;;  %v7930_v51 = vld [vmem:[%s10953_s1 + $0x1500] ss:$12 sps:$4 sm:$0xff]   ;;  %v7935_v32 = vld [vmem:[%s10953_s1 + $0x151c] ss:$12 sps:$4 sm:$0xff]   ;;  %v7933_v23 = vld [vmem:[%s10953_s1 + $0x1518] ss:$12 sps:$4 sm:$0xff]  }
 0x3a8   : > { %v2121_v36 = vsel %vm2118_vm10, %v7729_v43, %v7724_v26  ;;  %v2122_v18 = vsel %vm2118_vm10, %v7730_v37, %v7725_v21  ;;  %v7735_v57 = vunpack.i.h.bf16 %v7733_v7  ;;  %v7734_v48 = vunpack.i.l.bf16 %v7733_v7  ;;  %v7938_v37 = vld [vmem:[%s10953_s1 + $0x1534] ss:$12 sps:$4 sm:$0xff]   ;;  %v7936_v43 = vld [vmem:[%s10953_s1 + $0x1530] ss:$12 sps:$4 sm:$0xff]  }
 0x3a9   : > { %7161 = vmatprep.mubr.msk.bf16.mxu0 %vm1198_vm11, %v2171_v42  ;;  %v2144_v44 = vmax.f32 %v9244_v30, %v2121_v36  ;;  %v2146_v28 = vmax.f32 %v9250_v4, %v2122_v18  ;;  %v7906_v4 = vld [vmem:[%s10953_s1 + $0x468] ss:$12 sps:$4 sm:$0xff]   ;;  %v7944_v7 = vld [vmem:[%s10953_s1 + $0x1564] ss:$12 sps:$4 sm:$0xff]  }
 0x3aa   : > { %v2139_v20 = vsel %vm2134_vm5, %v7734_v48, 0.0  ;;  %2651 = vmatpush1.bf16.msra.mxu0 %v7894_v5  ;;  %v2123_v61 = vsel %vm2118_vm10, %v7735_v57, %v7734_v48  ;;  %v7941_v5 = vld [vmem:[%s10953_s1 + $0x154c] ss:$12 sps:$4 sm:$0xff]   ;;  %v7939_v42 = vld [vmem:[%s10953_s1 + $0x1548] ss:$12 sps:$4 sm:$0xff]   ;;  %vm2841_vm5 = vcmp.le.s32.totalorder %v8833_v17, 38  ;;  %vm2829_vm10 = vmor %vm2799_vm0, %vm2814_vm1 }
 0x3ab   : > { %v2149_v45 = vmax.f32 %v9260_v33, %v2139_v20  ;;  %v2170_v24 = vpack.c.bf16 %v2146_v28, %v2144_v44  ;;  %2652 = vmatprep.subr.bf16.mxu0 %v7902_v12  ;;  %v2148_v50 = vmax.f32 %v9256_v56, %v2123_v61  ;;  %v7912_v56 = vld [vmem:[%s10953_s1 + $0x480] ss:$12 sps:$4 sm:$0xff]   ;;  %v7947_v36 = vld [vmem:[%s10953_s1 + $0x157c] ss:$12 sps:$4 sm:$0xff]   ;;  %v7945_v18 = vld [vmem:[%s10953_s1 + $0x1578] ss:$12 sps:$4 sm:$0xff]  }
 0x3ac   : > { %v7942_v12 = vld [vmem:[%s10953_s1 + $0x1560] ss:$12 sps:$4 sm:$0xff]   ;;  %v7948_v48 = vld [vmem:[%s10953_s1 + $0x1590] ss:$12 sps:$4 sm:$0xff]   ;;  %v7951_v28 = vld [vmem:[%s10953_s1 + $0x15a8] ss:$12 sps:$4 sm:$0xff]  }
 0x3ad   : > { %v2173_v30 = vpack.c.bf16 %v2149_v45, %v2149_v45  ;;  %2278 = vmatmul.mubr.bf16.gmra.mrb[76].mxu0 %v2170_v24  ;;  %v2172_v33 = vpack.c.bf16 %v2148_v50, %v2148_v50  ;;  %v7950_v57 = vld [vmem:[%s10953_s1 + $0x1594] ss:$12 sps:$4 sm:$0xff]   ;;  %v7953_v44 = vld [vmem:[%s10953_s1 + $0x15ac] ss:$12 sps:$4 sm:$0xff]   ;;  %v7956_v20 = vld [vmem:[%s10953_s1 + $0x15c4] ss:$12 sps:$4 sm:$0xff]  }
 0x3ae   : > { %2653 = vmatpush1.bf16.msra.mxu0 %v7900_v59  ;;  %v7954_v59 = vld [vmem:[%s10953_s1 + $0x15c0] ss:$12 sps:$4 sm:$0xff]   ;;  %v7959_v45 = vld [vmem:[%s10953_s1 + $0x15dc] ss:$12 sps:$4 sm:$0xff]   ;;  %v7957_v24 = vld [vmem:[%s10953_s1 + $0x15d8] ss:$12 sps:$4 sm:$0xff]  }
 0x3af   : > { %7162 = vmatprep.mubr.msk.bf16.mxu0 %vm1198_vm11, %v2173_v30  ;;  %2654 = vmatprep.subr.bf16.mxu0 %v7908_v0  ;;  %vm3903_vm0 = vcmp.le.s32.totalorder %v8652_v10, 4 }
 0x3b0   : > { %vm3906_vm1 = vmand %vm891_vm9, %vm3903_vm0 }
 0x3b2   : > { %2655 = vmatpush1.bf16.msra.mxu0 %v7906_v4 }
 0x3b3   : > { %2656 = vmatprep.subr.bf16.mxu0 %v7914_v15 }
 0x3b5   : > { %2286 = vmatmul.mubr.bf16.gmra.mrb[80].mxu0 %v2172_v33 }
 0x3b6   : > { %2680 = vmatprep.mubr.bf16.mxu0 %v8389_v2  ;;  %2657 = vmatpush1.bf16.msra.mxu0 %v7912_v56 }
 0x478   : > { %v2271_v25 = vpop.f32.mrb[72].mxu0 }
 0x479   : > { %v2273_v60 = vpop.f32.mrb[73].mxu0 }
 0x47a   : > { %v2274_v6 = vpop.f32.mrb[74].mxu0 }
 0x47b   : > { %v2293_v47 = vpack.c.bf16 %v2274_v6, %v2271_v25  ;;  %v2276_v63 = vpop.f32.mrb[75].mxu0 }
 0x47d   : > { %7173 = vmatmul.mubr.msk.bf16.vlgmr.msra.gmra.mrb[72].mxu1 %vm2356_vm12, %v2293_v47  ;;  %7199 = vmatmul.mubr.msk.bf16.vlgmr.msra.gmra.mrb[84].mxu0 %vm2356_vm12, %v2293_v47 }
 0x47e   : > { %2498 = vmatpush1.bf16.msra.mxu1 %v7915_v38  ;;  %2408 = vmatprep.mubr.bf16.mxu1 %v8389_v2 }
 0x47f   : > { %2690 = vmatprep.mubr.bf16.mxu0 %v8389_v2  ;;  %2499 = vmatprep.subr.bf16.mxu1 %v7920_v14 }
 0x480   : > { %v2279_v41 = vpop.f32.mrb[76].mxu0 }
 0x481   : > { %v2281_v52 = vpop.f32.mrb[77].mxu0 }
 0x482   : > { %v2282_v35 = vpop.f32.mrb[78].mxu0  ;;  %2500 = vmatpush1.bf16.msra.mxu1 %v7918_v40 }
 0x483   : > { %v2294_v58 = vpack.c.bf16 %v2282_v35, %v2279_v41  ;;  %v2284_v8 = vpop.f32.mrb[79].mxu0  ;;  %2501 = vmatprep.subr.bf16.mxu1 %v7923_v62 }
 0x485   : > { %7174 = vmatmul.mubr.msk.bf16.gmra.mrb[76].mxu1 %vm2356_vm12, %v2294_v58  ;;  %7200 = vmatmul.mubr.msk.bf16.gmra.mrb[88].mxu0 %vm2356_vm12, %v2294_v58 }
 0x486   : > { %2502 = vmatpush1.bf16.msra.mxu1 %v7921_v39  ;;  %2418 = vmatprep.mubr.bf16.mxu1 %v8389_v2 }
 0x487   : > { %2700 = vmatprep.mubr.bf16.mxu0 %v8389_v2  ;;  %2503 = vmatprep.subr.bf16.mxu1 %v7926_v3 }
 0x488   : > { %v2287_v21 = vpop.f32.mrb[80].mxu0 }
 0x489   : > { %v2289_v26 = vpop.f32.mrb[81].mxu0  ;;  %v2295_v22 = vpack.c.bf16 %v2287_v21, %v2287_v21 }
 0x48a   : > { %v2290_v55 = vpop.f32.mrb[82].mxu0  ;;  %2504 = vmatpush1.bf16.msra.mxu1 %v7924_v46 }
 0x48b   : > { %v2291_v49 = vpop.f32.mrb[83].mxu0  ;;  %2505 = vmatprep.subr.bf16.mxu1 %v7929_v16 }
 0x48d   : > { %7175 = vmatmul.mubr.msk.bf16.gmra.mrb[80].mxu1 %vm2356_vm12, %v2295_v22  ;;  %7201 = vmatmul.mubr.msk.bf16.gmra.mrb[92].mxu0 %vm2356_vm12, %v2295_v22 }
 0x48e   : > { %2506 = vmatpush1.bf16.msra.mxu1 %v7927_v29  ;;  %2529 = vmatprep.mubr.bf16.mxu1 %v8389_v2 }
 0x48f   : > { %3187 = vmatprep.mubr.bf16.mxu0 %v8389_v2  ;;  %3047 = vmatprep.subr.bf16.mxu1 %v7932_v1 }
 0x495   : > { %7186 = vmatmul.mubr.msk.bf16.vlgmr.msra.gmra.mrb[84].mxu1 %vm2356_vm12, %v2293_v47 }
 0x496   : > { %2539 = vmatprep.mubr.bf16.mxu1 %v8389_v2  ;;  %3048 = vmatpush1.bf16.msra.mxu1 %v7930_v51 }
 0x497   : > { %3049 = vmatprep.subr.bf16.mxu1 %v7935_v32 }
 0x49a   : > { %3050 = vmatpush1.bf16.msra.mxu1 %v7933_v23 }
 0x49b   : > { %3051 = vmatprep.subr.bf16.mxu1 %v7938_v37 }
 0x49d   : > { %7187 = vmatmul.mubr.msk.bf16.gmra.mrb[88].mxu1 %vm2356_vm12, %v2294_v58 }
 0x49e   : > { %2549 = vmatprep.mubr.bf16.mxu1 %v8389_v2  ;;  %3052 = vmatpush1.bf16.msra.mxu1 %v7936_v43 }
 0x49f   : > { %3053 = vmatprep.subr.bf16.mxu1 %v7941_v5 }
 0x4a2   : > { %3054 = vmatpush1.bf16.msra.mxu1 %v7939_v42 }
 0x4a3   : > { %3055 = vmatprep.subr.bf16.mxu1 %v7944_v7 }
 0x4a5   : > { %7188 = vmatmul.mubr.msk.bf16.gmra.mrb[92].mxu1 %vm2356_vm12, %v2295_v22 }
 0x4a6   : > { %3056 = vmatpush1.bf16.msra.mxu1 %v7942_v12 }
 0x4a7   : > { %3057 = vmatprep.subr.bf16.mxu1 %v7947_v36 }
 0x4aa   : > { %3058 = vmatpush1.bf16.msra.mxu1 %v7945_v18 }
 0x4ab   : > { %3059 = vmatprep.subr.bf16.mxu1 %v7950_v57 }
 0x4ae   : > { %3060 = vmatpush1.bf16.msra.mxu1 %v7948_v48 }
 0x4af   : > { %3061 = vmatprep.subr.bf16.mxu1 %v7953_v44 }
 0x4b2   : > { %3062 = vmatpush1.bf16.msra.mxu1 %v7951_v28 }
 0x4b3   : > { %3063 = vmatprep.subr.bf16.mxu1 %v7956_v20 }
 0x4b6   : > { %3064 = vmatpush1.bf16.msra.mxu1 %v7954_v59 }
 0x4b7   : > { %3065 = vmatprep.subr.bf16.mxu1 %v7959_v45 }
 0x4ba   : > { %3066 = vmatpush1.bf16.msra.mxu1 %v7957_v24 }
 0x4bb   : > { %3404 = vmatprep.subr.bf16.mxu1 %v8389_v2 }
 0x550   : > { %v2400_v0 = vpop.f32.mrb[72].mxu1  ;;  %v2682_v61 = vpop.f32.mrb[84].mxu0 }
 0x551   : > { %v2568_v30 = vrot.slane %v2400_v0, 7  ;;  %v2402_v4 = vpop.f32.mrb[73].mxu1  ;;  %v2684_v50 = vpop.f32.mrb[85].mxu0 }
 0x552   : > { %v2569_v33 = vrot.slane %v2402_v4, 7  ;;  %v2404_v31 = vpop.f32.mrb[74].mxu1  ;;  %v2686_v15 = vpop.f32.mrb[86].mxu0  ;;  %v9486_v4 = vadd.s32 8, %v8652_v10 }
 0x553   : > { %v2596_v27 = vsel %vm583_vm7, 0.0, %v2568_v30  ;;  %v2570_v56 = vrot.slane %v2404_v31, 7  ;;  %v2406_v34 = vpop.f32.mrb[75].mxu1  ;;  %v2688_v25 = vpop.f32.mrb[87].mxu0 }
 0x554   : > { %v2683_v60 = vadd.f32 %v2682_v61, %v2596_v27  ;;  %v2597_v6 = vsel %vm583_vm7, 0.0, %v2569_v33  ;;  %v2572_v38 = vrot.slane %v2406_v34, 7  ;;  %vm2783_vm13 = vcmp.le.s32.totalorder %v9486_v4, 8 }
 0x555   : > { %v2685_v47 = vadd.f32 %v2684_v50, %v2597_v6  ;;  %v2571_v63 = vsel %vm583_vm7, %v2568_v30, %v2570_v56  ;;  %v7202_v30 = vld [vmem:[%s10954_s2 + $0x2] ss:$8 sm:$0x3]  ;;  %vm2793_vm14 = vcmp.ge.s32.totalorder %v9486_v4, 11  ;;  %vm4577_vm0 = vcmp.ge.s32.totalorder %v9486_v4, 9 }
 0x556   : > { %v9459_v14 = vadd.f32 %v2686_v15, %v2571_v63  ;;  %v2573_v40 = vsel %vm583_vm7, %v2569_v33, %v2572_v38  ;;  %v9490_v34 = vrot.slane %v7202_v30, %v8766_v9  ;;  %vm2808_vm15 = vmor %vm2783_vm13, %vm2793_vm14  ;;  %vm3037_vm13 = vcmask 261120  }
 0x557   : > { %v9462_v62 = vadd.f32 %v2688_v25, %v2573_v40  ;;  %v9493_v25 = vrot.slane %v7202_v30, %v8778_v19  ;;  %v885_v40 = vadd.s32 24, %v8652_v10  ;;  %vm3142_vm14 = vcmask 326656  }
 0x558   : > { %v2410_v41 = vpop.f32.mrb[76].mxu1  ;;  %v2692_v52 = vpop.f32.mrb[88].mxu0 }
 0x559   : > { %v2574_v35 = vrot.slane %v2410_v41, 7  ;;  %v2412_v39 = vpop.f32.mrb[77].mxu1  ;;  %v2694_v58 = vpop.f32.mrb[89].mxu0  ;;  %vm2820_vm2 = vcmp.le.s32.totalorder %v885_v40, 28  ;;  %vm2835_vm4 = vcmp.ge.s32.totalorder %v885_v40, 31 }
 0x55a   : > { %v2576_v8 = vrot.slane %v2412_v39, 7  ;;  %v2414_v3 = vpop.f32.mrb[78].mxu1  ;;  %v2696_v46 = vpop.f32.mrb[90].mxu0  ;;  %vm2850_vm12 = vmor %vm2820_vm2, %vm2835_vm4  ;;  %vm3909_vm2 = vcmp.ge.s32.totalorder %v8652_v10, 7  ;;  %vm3913_vm4 = vcmp.le.s32.totalorder %v9486_v4, 10 }
 0x55b   : > { %v2575_v16 = vsel %vm583_vm7, %v2570_v56, %v2574_v35  ;;  %v2578_v21 = vrot.slane %v2414_v3, 7  ;;  %v2416_v26 = vpop.f32.mrb[79].mxu1  ;;  %v2698_v55 = vpop.f32.mrb[91].mxu0 }
 0x55c   : > { %v9465_v29 = vadd.f32 %v2692_v52, %v2575_v16  ;;  %v2577_v22 = vsel %vm583_vm7, %v2572_v38, %v2576_v8  ;;  %v2580_v49 = vrot.slane %v2416_v26, 7 }
 0x55d   : > { %v9468_v1 = vadd.f32 %v2694_v58, %v2577_v22  ;;  %v2579_v51 = vsel %vm583_vm7, %v2574_v35, %v2578_v21 }
 0x55e   : > { %v9471_v32 = vadd.f32 %v2696_v46, %v2579_v51  ;;  %v2581_v23 = vsel %vm583_vm7, %v2576_v8, %v2580_v49 }
 0x55f   : > { %v9474_v37 = vadd.f32 %v2698_v55, %v2581_v23  ;;  %v7204_v55 = vsel %vm2808_vm15, 1.0, %v8390_v53  ;;  %vm3295_vm15 = vcmask 916480  }
 0x560   : > { %v2420_v43 = vpop.f32.mrb[80].mxu1  ;;  %v2702_v5 = vpop.f32.mrb[92].mxu0 }
 0x561   : > { %v2582_v42 = vrot.slane %v2420_v43, 7  ;;  %v2422_v7 = vpop.f32.mrb[81].mxu1  ;;  %v2704_v12 = vpop.f32.mrb[93].mxu0 }
 0x562   : > { %v2584_v36 = vrot.slane %v2422_v7, 7  ;;  %v2424_v18 = vpop.f32.mrb[82].mxu1  ;;  %v2706_v57 = vpop.f32.mrb[94].mxu0  ;;  %v7207_v7 = vsel %vm2841_vm5, 1.0, %v8390_v53  ;;  %vm3922_vm5 = vcmp.ge.s32.totalorder %v9486_v4, 13 }
 0x563   : > { %v2583_v48 = vsel %vm583_vm7, %v2578_v21, %v2582_v42  ;;  %v2425_v44 = vpop.f32.mrb[83].mxu1  ;;  %v2707_v28 = vpop.f32.mrb[95].mxu0  ;;  %v7206_v57 = vsel %vm2850_vm12, 1.0, %v8390_v53  ;;  %vm3928_vm12 = vmor %vm3913_vm4, %vm3922_vm5 }
 0x564   : > { %v9477_v20 = vadd.f32 %v2702_v5, %v2583_v48  ;;  %v2585_v59 = vsel %vm583_vm7, %v2580_v49, %v2584_v36 }
 0x565   : > { %v9480_v45 = vadd.f32 %v2704_v12, %v2585_v59  ;;  %v7205_v12 = vsel %vm2829_vm10, 1.0, %v8390_v53  ;;  %vm3918_vm10 = vmor %vm3906_vm1, %vm3909_vm2  ;;  %vm4583_vm2 = vcmp.le.s32.totalorder %v9486_v4, 14 }
 0x568   : > { %v2531_v24 = vpop.f32.mrb[84].mxu1 }
 0x569   : > { %v2533_v0 = vpop.f32.mrb[85].mxu1  ;;  %v2719_v50 = vrot.slane %v2531_v24, 1 }
 0x56a   : > { %v2535_v61 = vpop.f32.mrb[86].mxu1  ;;  %v2722_v15 = vrot.slane %v2533_v0, 1 }
 0x56b   : > { %v2720_v33 = vrot.slane %v2535_v61, 1  ;;  %v2537_v31 = vpop.f32.mrb[87].mxu1 }
 0x56c   : > { %v2723_v27 = vrot.slane %v2537_v31, 1 }
 0x56d   : > { %v2721_v56 = vsel %vm778_vm8, %v2719_v50, %v2720_v33 }
 0x56e   : > { %v2749_v6 = vadd.f32 %v2721_v56, %v2683_v60  ;;  %v2724_v38 = vsel %vm778_vm8, %v2722_v15, %v2723_v27 }
 0x56f   : > { %v2750_v63 = vadd.f32 %v2724_v38, %v2685_v47 }
 0x570   : > { %v2541_v41 = vpop.f32.mrb[88].mxu1  ;;  %v2772_v52 = vadd.f32 %v9490_v34, %v2749_v6 }
 0x571   : > { %v2725_v35 = vrot.slane %v2541_v41, 1  ;;  %v2543_v39 = vpop.f32.mrb[89].mxu1  ;;  %v2773_v58 = vadd.f32 %v9493_v25, %v2750_v63 }
 0x572   : > { %v2727_v8 = vrot.slane %v2543_v39, 1  ;;  %v2545_v3 = vpop.f32.mrb[90].mxu1  ;;  %v9511_v51 = vmul.f32 %v8814_v54, %v2772_v52 }
 0x573   : > { %v2726_v60 = vsel %vm778_vm8, %v2720_v33, %v2725_v35  ;;  %v2729_v46 = vrot.slane %v2545_v3, 1  ;;  %v2547_v47 = vpop.f32.mrb[91].mxu1  ;;  %v9519_v5 = vmul.f32 %v8814_v54, %v2773_v58 }
 0x574   : > { %v2751_v16 = vadd.f32 %v2726_v60, %v9459_v14  ;;  %v2728_v21 = vsel %vm778_vm8, %v2723_v27, %v2727_v8  ;;  %v2731_v26 = vrot.slane %v2547_v47, 1  ;;  %v2872_v54 = vmax.f32 %v9511_v51, 0.0 }
 0x575   : > { %v2752_v22 = vadd.f32 %v2728_v21, %v9462_v62  ;;  %v2730_v49 = vsel %vm778_vm8, %v2725_v35, %v2729_v46 }
 0x576   : > { %v2774_v23 = vadd.f32 %v9490_v34, %v2751_v16  ;;  %v2753_v14 = vadd.f32 %v2730_v49, %v9465_v29  ;;  %v2732_v43 = vsel %vm778_vm8, %v2727_v8, %v2731_v26 }
 0x577   : > { %v2775_v62 = vadd.f32 %v9493_v25, %v2752_v22  ;;  %v2754_v17 = vadd.f32 %v2732_v43, %v9468_v1  ;;  %v2873_v1 = vmax.f32 %v9519_v5, 0.0 }
 0x578   : > { %v2551_v42 = vpop.f32.mrb[92].mxu1  ;;  %v9525_v11 = vmul.f32 %v7204_v55, %v2774_v23  ;;  %v2776_v48 = vadd.f32 %v9490_v34, %v2753_v14 }
 0x579   : > { %v2733_v36 = vrot.slane %v2551_v42, 1  ;;  %v2553_v29 = vpop.f32.mrb[93].mxu1  ;;  %v9528_v18 = vmul.f32 %v7204_v55, %v2775_v62  ;;  %v2777_v24 = vadd.f32 %v9493_v25, %v2754_v17  ;;  %v7960_v62 = vld [vmem:[%s10953_s1 + $0x1368] ss:$12 sps:$4 sm:$0xff]   ;;  %v7961_v42 = vld [vmem:[%s10953_s1 + $0x1380] ss:$0 sps:$4 sm:$0xff]  }
 0x57a   : > { %v2735_v44 = vrot.slane %v2553_v29, 1  ;;  %v2555_v28 = vpop.f32.mrb[94].mxu1  ;;  %v2874_v59 = vmax.f32 %v9525_v11, 0.0  ;;  %v9555_v40 = vmul.f32 %v7205_v12, %v2776_v48  ;;  %v7965_v29 = vld [vmem:[%s10953_s1 + $0x13e0] ss:$12 sps:$4 sm:$0xff]  }
 0x57b   : > { %v2734_v0 = vsel %vm778_vm8, %v2729_v46, %v2733_v36  ;;  %v2747_v61 = vsel %vm778_vm8, %v2733_v36, 0.0  ;;  %v2556_v30 = vpop.f32.mrb[95].mxu1  ;;  %v2875_v50 = vmax.f32 %v9528_v18, 0.0  ;;  %v9559_v52 = vmul.f32 %v7205_v12, %v2777_v24  ;;  %v7963_v12 = vld [vmem:[%s10953_s1 + $0x13b0] ss:$0 sps:$4 sm:$0xff]  }
 0x57c   : > { %v2755_v33 = vadd.f32 %v2734_v0, %v9471_v32  ;;  %v2757_v31 = vadd.f32 %v2747_v61, %v9477_v20  ;;  %v2736_v15 = vsel %vm778_vm8, %v2731_v26, %v2735_v44  ;;  %v2748_v27 = vsel %vm778_vm8, %v2735_v44, 0.0  ;;  %v7964_v36 = vld [vmem:[%s10953_s1 + $0x13c8] ss:$12 sps:$4 sm:$0xff]   ;;  %v7967_v48 = vld [vmem:[%s10953_s1 + $0x1410] ss:$12 sps:$4 sm:$0xff]  }
 0x57d   : > { %v2756_v56 = vadd.f32 %v2736_v15, %v9474_v37  ;;  %v2758_v6 = vadd.f32 %v2748_v27, %v9480_v45  ;;  %v2883_v38 = vpack.c.bf16 %v2875_v50, %v2873_v1  ;;  %v2882_v20 = vpack.c.bf16 %v2874_v59, %v2872_v54  ;;  %v7968_v44 = vld [vmem:[%s10953_s1 + $0x1428] ss:$12 sps:$4 sm:$0xff]   ;;  %v7969_v28 = vld [vmem:[%s10953_s1 + $0x1440] ss:$12 sps:$4 sm:$0xff]   ;;  %v7970_v24 = vld [vmem:[%s10953_s1 + $0x1458] ss:$12 sps:$4 sm:$0xff]  }
 0x57e   : > { %v2778_v63 = vadd.f32 %v9490_v34, %v2755_v33  ;;  %v2780_v32 = vadd.f32 %v9490_v34, %v2757_v31  ;;  %v2876_v3 = vmax.f32 %v9555_v40, 0.0  ;;  %v2877_v46 = vmax.f32 %v9559_v52, 0.0  ;;  %v7971_v0 = vld [vmem:[%s10953_s1 + $0x1470] ss:$12 sps:$4 sm:$0xff]   ;;  %v7972_v52 = vld [vmem:[%s10953_s1 + $0x1488] ss:$12 sps:$4 sm:$0xff]  }
 0x57f   : > { %v2779_v37 = vadd.f32 %v9493_v25, %v2756_v56  ;;  %v2781_v45 = vadd.f32 %v9493_v25, %v2758_v6  ;;  %3155 = vmatprep.subr.bf16.mxu0 %v2883_v38  ;;  %v2909_v41 = vmul.bf16 %v2883_v38, %v2883_v38  ;;  %v2908_v39 = vmul.bf16 %v2882_v20, %v2882_v20 }
 0x580   : > { %v2870_v35 = vmul.f32 %v7207_v7, %v2780_v32  ;;  %3156 = vmatpush1.bf16.msra.mxu0 %v2882_v20  ;;  %v9561_v58 = vmul.f32 %v7206_v57, %v2778_v63 }
 0x581   : > { %v2871_v34 = vmul.f32 %v7207_v7, %v2781_v45  ;;  %7229 = vmatprep.mubr.msk.bf16.mxu1 %vm3037_vm13, %v2909_v41  ;;  %v9564_v8 = vmul.f32 %v7206_v57, %v2779_v37  ;;  %v7962_v7 = vld [vmem:[%s10953_s1 + $0x1398] ss:$12 sps:$4 sm:$0xff]  }
 0x582   : > { %3080 = vmatmul.mubr.bf16.vlgmr.msra.gmra.mrb[96].mxu1 %v2908_v39  ;;  %v2878_v60 = vmax.f32 %v9561_v58, 0.0  ;;  %v9572_v16 = vmax.f32 %v2870_v35, 0.0  ;;  %v7966_v57 = vld [vmem:[%s10953_s1 + $0x13f8] ss:$12 sps:$4 sm:$0xff]  }
 0x583   : > { %v9568_v25 = vmax.f32 %v2871_v34, 0.0  ;;  %v2879_v47 = vmax.f32 %v9564_v8, 0.0  ;;  %3405 = vmatpush1.bf16.msra.mxu1 %v7964_v36 }
 0x584   : > { %v2884_v21 = vpack.c.bf16 %v2878_v60, %v2876_v3  ;;  %v2886_v49 = vpack.c.bf16 %v9572_v16, %v9572_v16  ;;  %3406 = vmatprep.subr.bf16.mxu1 %v8389_v2 }
 0x585   : > { %v2885_v26 = vpack.c.bf16 %v2879_v47, %v2877_v46  ;;  %v2887_v55 = vpack.c.bf16 %v9568_v25, %v9568_v25 }
 0x586   : > { %v2910_v23 = vmul.bf16 %v2884_v21, %v2884_v21  ;;  %v3150_v43 = vsel %vm1927_vm3, %v2886_v49, 0  ;;  %v2912_v17 = vmul.bf16 %v2886_v49, %v2886_v49 }
 0x587   : > { %3157 = vmatprep.subr.bf16.mxu0 %v2885_v26  ;;  %v2911_v22 = vmul.bf16 %v2885_v26, %v2885_v26  ;;  %v2913_v14 = vmul.bf16 %v2887_v55, %v2887_v55  ;;  %3407 = vmatpush1.bf16.msra.mxu1 %v7965_v29 }
 0x588   : > { %3158 = vmatpush1.bf16.msra.mxu0 %v2884_v21  ;;  %3408 = vmatprep.subr.bf16.mxu1 %v8389_v2 }
 0x589   : > { %7230 = vmatprep.mubr.msk.bf16.mxu1 %vm3037_vm13, %v2911_v22  ;;  %7234 = vmatprep.subr.msk.bf16.mxu0 %vm1927_vm3, %v2887_v55 }
 0x58a   : > { %3090 = vmatmul.mubr.bf16.gmra.mrb[100].mxu1 %v2910_v23 }
 0x58b   : > { %7231 = vmatprep.mubr.msk.bf16.mxu1 %vm3037_vm13, %v2913_v14  ;;  %3409 = vmatpush1.bf16.msra.mxu1 %v7966_v57 }
 0x58c   : > { %3160 = vmatpush1.bf16.msra.mxu0 %v3150_v43  ;;  %3410 = vmatprep.subr.bf16.mxu1 %v8389_v2 }
 0x58d   : > { %3220 = vmatprep.subr.bf16.mxu0 %v2883_v38  ;;  %v7208_v38 = vld [vmem:[%s10954_s2 + $0x19] ss:$8 sm:$0x3] }
 0x58e   : > { %v2920_v63 = vrot.slane %v7208_v38, %v8766_v9 }
 0x58f   : > { %7235 = vmatmul.mubr.msk.bf16.vlgmr.msra.gmra.mrb[96].mxu0 %vm3142_vm14, %v7960_v62  ;;  %3411 = vmatpush1.bf16.msra.mxu1 %v7967_v48 }
 0x590   : > { %3221 = vmatpush1.bf16.msra.mxu0 %v2882_v20  ;;  %3197 = vmatprep.mubr.bf16.mxu0 %v8389_v2  ;;  %v2924_v20 = vrot.slane %v7208_v38, %v8778_v19  ;;  %v2929_v14 = vmul.f32 %v2920_v63, %v2874_v59  ;;  %v2931_v18 = vmul.f32 %v2920_v63, %v2876_v3 }
 0x591   : > { %3222 = vmatprep.subr.bf16.mxu0 %v2885_v26  ;;  %3412 = vmatprep.subr.bf16.mxu1 %v8389_v2 }
 0x592   : > { %3100 = vmatmul.mubr.bf16.gmra.mrb[104].mxu1 %v2912_v17  ;;  %v2928_v22 = vmul.f32 %v2924_v20, %v2873_v1  ;;  %v2930_v51 = vmul.f32 %v2924_v20, %v2875_v50  ;;  %v2936_v8 = vmul.f32 %v2924_v20, %v9568_v25 }
 0x593   : > { %3413 = vmatpush1.bf16.msra.mxu1 %v7968_v44 }
 0x594   : > { %3223 = vmatpush1.bf16.msra.mxu0 %v2884_v21  ;;  %3414 = vmatprep.subr.bf16.mxu1 %v8389_v2  ;;  %v2927_v21 = vmul.f32 %v2920_v63, %v2872_v54 }
 0x595   : > { %7239 = vmatprep.subr.msk.bf16.mxu0 %vm1927_vm3, %v2887_v55 }
 0x597   : > { %7236 = vmatmul.mubr.msk.bf16.gmra.mrb[100].mxu0 %vm3142_vm14, %v7961_v42  ;;  %3415 = vmatpush1.bf16.msra.mxu1 %v7969_v28 }
 0x598   : > { %3225 = vmatpush1.bf16.msra.mxu0 %v3150_v43  ;;  %3252 = vmatprep.mubr.bf16.mxu0 %v8389_v2 }
 0x599   : > { %3416 = vmatprep.subr.bf16.mxu1 %v8389_v2 }
 0x59b   : > { %3417 = vmatpush1.bf16.msra.mxu1 %v7970_v24  ;;  %v2932_v24 = vmul.f32 %v2924_v20, %v2877_v46 }
 0x59c   : > { %3418 = vmatprep.subr.bf16.mxu1 %v8389_v2 }
 0x59f   : > { %7240 = vmatmul.mubr.msk.bf16.vlgmr.msra.gmra.mrb[104].mxu0 %vm3142_vm14, %v7962_v7  ;;  %3419 = vmatpush1.bf16.msra.mxu1 %v7971_v0 }
 0x5a0   : > { %3262 = vmatprep.mubr.bf16.mxu0 %v8389_v2  ;;  %3420 = vmatprep.subr.bf16.mxu1 %v8389_v2 }
 0x5a3   : > { %3421 = vmatpush1.bf16.msra.mxu1 %v7972_v52  ;;  %v7977_v52 = vld [vmem:[%s10953_s1 + $0x5a0] ss:$12 sps:$4 sm:$0xff]  }
 0x5a4   : > { %3422 = vmatprep.subr.bf16.mxu1 %v8389_v2 }
 0x5a7   : > { %7241 = vmatmul.mubr.msk.bf16.gmra.mrb[108].mxu0 %vm3142_vm14, %v7963_v12  ;;  %vm4058_vm14 = vcmask 523264  }
 0x5a8   : > { %3565 = vmatprep.mubr.bf16.mxu0 %v8389_v2 }
 0x655   : > { %v3081_v61 = vpop.f32.mrb[96].mxu1 }
 0x656   : > { %v3082_v30 = vadd.f32 1e-12, %v3081_v61  ;;  %v3083_v33 = vpop.f32.mrb[97].mxu1 }
 0x657   : > { %v3084_v31 = vadd.f32 1e-12, %v3083_v33  ;;  %v3085_v15 = vpop.f32.mrb[98].mxu1 }
 0x658   : > { %8361 = vrsqrt.f32 %v3082_v30  ;;  %v3086_v27 = vadd.f32 1e-12, %v3085_v15  ;;  %v3087_v56 = vpop.f32.mrb[99].mxu1  ;;  %v2933_v30 = vmul.f32 %v2920_v63, %v2878_v60  ;;  %v2935_v60 = vmul.f32 %v2920_v63, %v9572_v16 }
 0x659   : > { %8363 = vrsqrt.f32 %v3084_v31  ;;  %v3088_v6 = vadd.f32 1e-12, %v3087_v56 }
 0x65a   : > { %8365 = vrsqrt.f32 %v3086_v27  ;;  %v2934_v27 = vmul.f32 %v2924_v20, %v2879_v47 }
 0x65b   : > { %8367 = vrsqrt.f32 %v3088_v6 }
 0x65d   : > { %v3091_v32 = vpop.f32.mrb[100].mxu1 }
 0x65e   : > { %v3092_v37 = vadd.f32 1e-12, %v3091_v32  ;;  %v3093_v45 = vpop.f32.mrb[101].mxu1 }
 0x65f   : > { %v3094_v41 = vadd.f32 1e-12, %v3093_v45  ;;  %v3095_v35 = vpop.f32.mrb[102].mxu1 }
 0x660   : > { %8369 = vrsqrt.f32 %v3092_v37  ;;  %v3096_v39 = vadd.f32 1e-12, %v3095_v35  ;;  %v3097_v34 = vpop.f32.mrb[103].mxu1 }
 0x661   : > { %8371 = vrsqrt.f32 %v3094_v41  ;;  %v3098_v26 = vadd.f32 1e-12, %v3097_v34  ;;  %v7973_v34 = vld [vmem:[%s10953_s1 + $0x14a0] ss:$12 sps:$4 sm:$0xff]  }
 0x662   : > { %v8362_v55 = vpop.eup %8361  ;;  %8373 = vrsqrt.f32 %v3096_v39  ;;  %v3189_v49 = vpop.f32.mrb[96].mxu0  ;;  %3423 = vmatpush1.bf16.msra.mxu1 %v7973_v34 }
 0x663   : > { %v8364_v23 = vpop.eup %8363  ;;  %v3118_v43 = vmul.f32 %v8362_v55, %v2927_v21  ;;  %8375 = vrsqrt.f32 %v3098_v26  ;;  %v3191_v62 = vpop.f32.mrb[97].mxu0 }
 0x664   : > { %v8366_v17 = vpop.eup %8365  ;;  %v3119_v54 = vmul.f32 %v8364_v23, %v2928_v22  ;;  %v3193_v42 = vpop.f32.mrb[98].mxu0 }
 0x665   : > { %v8368_v7 = vpop.eup %8367  ;;  %v3120_v12 = vmul.f32 %v8366_v17, %v2929_v14  ;;  %v3101_v36 = vpop.f32.mrb[104].mxu1 }
 0x666   : > { %v3195_v5 = vpop.f32.mrb[99].mxu0  ;;  %v3121_v1 = vmul.f32 %v8368_v7, %v2930_v51  ;;  %v3102_v29 = vadd.f32 1e-12, %v3101_v36  ;;  %v3103_v57 = vpop.f32.mrb[105].mxu1  ;;  %v7979_v7 = vld [vmem:[%s10953_s1 + $0x5a4] ss:$12 sps:$4 sm:$0xff]  }
 0x667   : > { %v9656_v48 = vpack.c.bf16 %v3120_v12, %v3118_v43  ;;  %v3104_v11 = vadd.f32 1e-12, %v3103_v57  ;;  %v3105_v59 = vpop.f32.mrb[106].mxu1  ;;  %v7982_v12 = vld [vmem:[%s10953_s1 + $0x52c] ss:$12 sps:$4 sm:$0xff]   ;;  %3803 = vmatprep.subr.bf16.mxu1 %v7979_v7 }
 0x668   : > { %v9658_v44 = vpack.c.bf16 %v3121_v1, %v3119_v54  ;;  %8377 = vrsqrt.f32 %v3102_v29  ;;  %v3106_v28 = vpop.f32.mrb[107].mxu1  ;;  %v7976_v54 = vld [vmem:[%s10953_s1 + $0x514] ss:$12 sps:$4 sm:$0xff]   ;;  %v7994_v29 = vld [vmem:[%s10953_s1 + $0x55c] ss:$12 sps:$4 sm:$0xff]  }
 0x669   : > { %8379 = vrsqrt.f32 %v3104_v11  ;;  %3533 = vmatprep.subr.bf16.mxu0 %v7976_v54  ;;  %v7980_v36 = vld [vmem:[%s10953_s1 + $0x528] ss:$12 sps:$4 sm:$0xff]   ;;  %v7986_v1 = vld [vmem:[%s10953_s1 + $0x540] ss:$12 sps:$4 sm:$0xff]   ;;  %v7992_v57 = vld [vmem:[%s10953_s1 + $0x558] ss:$12 sps:$4 sm:$0xff]  }
 0x66a   : > { %v8370_v50 = vpop.eup %8369  ;;  %v3199_v0 = vpop.f32.mrb[100].mxu0  ;;  %v8000_v11 = vld [vmem:[%s10953_s1 + $0x574] ss:$12 sps:$4 sm:$0xff]   ;;  %v7998_v59 = vld [vmem:[%s10953_s1 + $0x570] ss:$12 sps:$4 sm:$0xff]  }
 0x66b   : > { %v8372_v61 = vpop.eup %8371  ;;  %v3122_v33 = vmul.f32 %v8370_v50, %v2931_v18  ;;  %v3201_v31 = vpop.f32.mrb[101].mxu0  ;;  %v8010_v7 = vld [vmem:[%s10953_s1 + $0x630] ss:$12 sps:$4 sm:$0xff]  }
 0x66c   : > { %v8374_v15 = vpop.eup %8373  ;;  %v3123_v56 = vmul.f32 %v8372_v61, %v2932_v24  ;;  %v3203_v6 = vpop.f32.mrb[102].mxu0 }
 0x66d   : > { %v8376_v40 = vpop.eup %8375  ;;  %v3124_v3 = vmul.f32 %v8374_v15, %v2933_v30  ;;  %v3204_v38 = vpop.f32.mrb[103].mxu0 }
 0x66e   : > { %v3125_v32 = vmul.f32 %v8376_v40, %v2934_v27 }
 0x66f   : > { %v9668_v37 = vpack.c.bf16 %v3124_v3, %v3122_v33 }
 0x670   : > { %v9673_v58 = vpack.c.bf16 %v3125_v32, %v3123_v56 }
 0x672   : > { %v8378_v46 = vpop.eup %8377  ;;  %v3254_v47 = vpop.f32.mrb[104].mxu0 }
 0x673   : > { %v8380_v45 = vpop.eup %8379  ;;  %v9678_v41 = vmul.f32 %v8378_v46, %v2935_v60  ;;  %v3271_v35 = vmax.f32 %v3189_v49, %v3254_v47  ;;  %v3256_v39 = vpop.f32.mrb[105].mxu0 }
 0x674   : > { %v9683_v21 = vmul.f32 %v8380_v45, %v2936_v8  ;;  %v3272_v26 = vmax.f32 %v3191_v62, %v3256_v39  ;;  %v3258_v16 = vpop.f32.mrb[106].mxu0  ;;  %v7974_v62 = vld [vmem:[%s10953_s1 + $0x510] ss:$12 sps:$4 sm:$0xff]   ;;  %v7983_v39 = vld [vmem:[%s10953_s1 + $0x5b8] ss:$12 sps:$4 sm:$0xff]  }
 0x675   : > { %v3273_v63 = vmax.f32 %v3193_v42, %v3258_v16  ;;  %v3260_v55 = vpop.f32.mrb[107].mxu0  ;;  %3534 = vmatpush1.bf16.msra.mxu0 %v7974_v62  ;;  %v7985_v8 = vld [vmem:[%s10953_s1 + $0x5bc] ss:$12 sps:$4 sm:$0xff]  }
 0x676   : > { %v3274_v25 = vmax.f32 %v3195_v5, %v3260_v55  ;;  %3535 = vmatprep.subr.bf16.mxu0 %v7982_v12  ;;  %v7988_v5 = vld [vmem:[%s10953_s1 + $0x544] ss:$12 sps:$4 sm:$0xff]  }
 0x677   : > { %v7741_v20 = vpack.i.bf16 %v3273_v63, %v3271_v35 }
 0x678   : > { %v7736_v22 = vpack.i.bf16 %v3274_v25, %v3272_v26 }
 0x679   : > { %7742 = vrot.lane.b32.xlu0 %v7741_v20, %s8392_s20  ;;  %3536 = vmatpush1.bf16.msra.mxu0 %v7980_v36  ;;  %v7995_v20 = vld [vmem:[%s10953_s1 + $0x5e8] ss:$12 sps:$4 sm:$0xff]  }
 0x67a   : > { %7737 = vrot.lane.b32.xlu1 %v7736_v22, %s8392_s20  ;;  %v3264_v23 = vpop.f32.mrb[108].mxu0  ;;  %3537 = vmatprep.subr.bf16.mxu0 %v7988_v5  ;;  %v8003_v22 = vld [vmem:[%s10953_s1 + $0x604] ss:$12 sps:$4 sm:$0xff]   ;;  %v8015_v5 = vld [vmem:[%s10953_s1 + $0x64c] ss:$12 sps:$4 sm:$0xff]  }
 0x67b   : > { %v3275_v49 = vmax.f32 %v3199_v0, %v3264_v23  ;;  %v3266_v14 = vpop.f32.mrb[109].mxu0  ;;  %v8001_v23 = vld [vmem:[%s10953_s1 + $0x600] ss:$12 sps:$4 sm:$0xff]  }
 0x67c   : > { %v3276_v43 = vmax.f32 %v3201_v31, %v3266_v14  ;;  %v3268_v17 = vpop.f32.mrb[110].mxu0  ;;  %v8006_v14 = vld [vmem:[%s10953_s1 + $0x58c] ss:$12 sps:$4 sm:$0xff]  }
 0x67d   : > { %v3269_v51 = vpop.f32.mrb[111].mxu0  ;;  %3538 = vmatpush1.bf16.msra.mxu0 %v7986_v1  ;;  %v8009_v17 = vld [vmem:[%s10953_s1 + $0x61c] ss:$12 sps:$4 sm:$0xff]  }
 0x67e   : > { %v7746_v42 = vpack.i.bf16 %v3275_v49, %v3276_v43  ;;  %3539 = vmatprep.subr.bf16.mxu0 %v7994_v29  ;;  %v8012_v51 = vld [vmem:[%s10953_s1 + $0x634] ss:$12 sps:$4 sm:$0xff]   ;;  %v8018_v29 = vld [vmem:[%s10953_s1 + $0x664] ss:$12 sps:$4 sm:$0xff]  }
 0x67f   : > { %v8013_v1 = vld [vmem:[%s10953_s1 + $0x648] ss:$12 sps:$4 sm:$0xff]  }
 0x680   : > { %7747 = vrot.lane.b32.xlu1 %v7746_v42, %s8392_s20 }
 0x681   : > { %3540 = vmatpush1.bf16.msra.mxu0 %v7992_v57 }
 0x682   : > { %3541 = vmatprep.subr.bf16.mxu0 %v8000_v11 }
 0x685   : > { %3542 = vmatpush1.bf16.msra.mxu0 %v7998_v59 }
 0x686   : > { %3543 = vmatprep.subr.bf16.mxu0 %v8006_v14 }
 0x6eb   : > { %v7743_v28 = vpop.permute.xlu0 %7742 }
 0x6ec   : > { %v7745_v18 = vunpack.i.h.bf16 %v7743_v28  ;;  %v7744_v50 = vunpack.i.l.bf16 %v7743_v28  ;;  %v7738_v24 = vpop.permute.xlu1 %7737  ;;  %v8016_v28 = vld [vmem:[%s10953_s1 + $0x660] ss:$12 sps:$4 sm:$0xff]  }
 0x6ed   : > { %v7740_v0 = vunpack.i.h.bf16 %v7738_v24  ;;  %v7739_v61 = vunpack.i.l.bf16 %v7738_v24  ;;  %v8021_v24 = vld [vmem:[%s10953_s1 + $0x67c] ss:$12 sps:$4 sm:$0xff]  }
 0x6ef   : > { %v3297_v30 = vsel %vm3295_vm15, %v7745_v18, %v7740_v0  ;;  %v3306_v33 = vsel %vm1198_vm11, %v7740_v0, 0.0  ;;  %v3296_v31 = vsel %vm3295_vm15, %v7744_v50, %v7739_v61  ;;  %v3305_v15 = vsel %vm1198_vm11, %v7739_v61, 0.0  ;;  %v8019_v0 = vld [vmem:[%s10953_s1 + $0x678] ss:$12 sps:$4 sm:$0xff]   ;;  %v8024_v61 = vld [vmem:[%s10953_s1 + $0x694] ss:$12 sps:$4 sm:$0xff]  }
 0x6f0   : > { %v3310_v27 = vmax.f32 %v3273_v63, %v3297_v30  ;;  %v3311_v56 = vmax.f32 %v3274_v25, %v3306_v33  ;;  %v3308_v6 = vmax.f32 %v3271_v35, %v3296_v31  ;;  %v3309_v40 = vmax.f32 %v3272_v26, %v3305_v15  ;;  %v7991_v26 = vld [vmem:[%s10953_s1 + $0x5d4] ss:$12 sps:$4 sm:$0xff]   ;;  %v7989_v63 = vld [vmem:[%s10953_s1 + $0x5d0] ss:$12 sps:$4 sm:$0xff]   ;;  %v7997_v25 = vld [vmem:[%s10953_s1 + $0x5ec] ss:$12 sps:$4 sm:$0xff]  }
 0x6f1   : > { %v8022_v30 = vld [vmem:[%s10953_s1 + $0x690] ss:$12 sps:$4 sm:$0xff]   ;;  %v8027_v33 = vld [vmem:[%s10953_s1 + $0x6ac] ss:$12 sps:$4 sm:$0xff]   ;;  %v8025_v31 = vld [vmem:[%s10953_s1 + $0x6a8] ss:$12 sps:$4 sm:$0xff]  }
 0x6f2   : > { %v3334_v3 = vpack.c.bf16 %v3310_v27, %v3308_v6  ;;  %v3335_v38 = vpack.c.bf16 %v3311_v56, %v3309_v40  ;;  %v7748_v32 = vpop.permute.xlu1 %7747  ;;  %v8028_v15 = vld [vmem:[%s10953_s1 + $0x6c0] ss:$12 sps:$4 sm:$0xff]   ;;  %v8029_v27 = vld [vmem:[%s10953_s1 + $0x6d8] ss:$12 sps:$4 sm:$0xff]   ;;  %v8030_v56 = vld [vmem:[%s10953_s1 + $0x6f0] ss:$12 sps:$4 sm:$0xff]  }
 0x6f3   : > { %v7750_v60 = vunpack.i.h.bf16 %v7748_v32  ;;  %v7749_v46 = vunpack.i.l.bf16 %v7748_v32  ;;  %v8031_v6 = vld [vmem:[%s10953_s1 + $0x708] ss:$12 sps:$4 sm:$0xff]   ;;  %v8032_v40 = vld [vmem:[%s10953_s1 + $0x720] ss:$12 sps:$4 sm:$0xff]  }
 0x6f4   : > { %7252 = vmatprep.mubr.msk.bf16.mxu1 %vm3037_vm13, %v3335_v38  ;;  %v8034_v38 = vld [vmem:[%s10953_s1 + $0x750] ss:$12 sps:$4 sm:$0xff]   ;;  %v8035_v32 = vld [vmem:[%s10953_s1 + $0x768] ss:$12 sps:$4 sm:$0xff]  }
 0x6f5   : > { %v3298_v47 = vsel %vm3295_vm15, %v7750_v60, %v7749_v46  ;;  %v3307_v45 = vsel %vm1198_vm11, %v7749_v46, 0.0  ;;  %3437 = vmatmul.mubr.bf16.vlgmr.msra.gmra.mrb[108].mxu1 %v3334_v3  ;;  %vm3526_vm11 = vcmask 785408   ;;  %v8033_v3 = vld [vmem:[%s10953_s1 + $0x738] ss:$12 sps:$4 sm:$0xff]   ;;  %v8038_v46 = vld [vmem:[%s10953_s1 + $0x7b0] ss:$12 sps:$4 sm:$0xff]  }
 0x6f6   : > { %v3313_v35 = vmax.f32 %v3276_v43, %v3307_v45  ;;  %3804 = vmatpush1.bf16.msra.mxu1 %v7977_v52  ;;  %v3312_v34 = vmax.f32 %v3275_v49, %v3298_v47  ;;  %v8004_v49 = vld [vmem:[%s10953_s1 + $0x588] ss:$12 sps:$4 sm:$0xff]   ;;  %v8007_v43 = vld [vmem:[%s10953_s1 + $0x618] ss:$12 sps:$4 sm:$0xff]   ;;  %v8036_v52 = vld [vmem:[%s10953_s1 + $0x780] ss:$12 sps:$4 sm:$0xff]  }
 0x6f7   : > { %3805 = vmatprep.subr.bf16.mxu1 %v7985_v8  ;;  %3544 = vmatpush1.bf16.msra.mxu0 %v8004_v49  ;;  %v8037_v60 = vld [vmem:[%s10953_s1 + $0x798] ss:$12 sps:$4 sm:$0xff]   ;;  %v8039_v8 = vld [vmem:[%s10953_s1 + $0x7c8] ss:$12 sps:$4 sm:$0xff]   ;;  %vm4129_vm15 = vcmask 195584  }
 0x6f8   : > { %v3337_v16 = vpack.c.bf16 %v3313_v35, %v3313_v35  ;;  %v3336_v55 = vpack.c.bf16 %v3312_v34, %v3312_v34  ;;  %3668 = vmatprep.subr.bf16.mxu0 %v8012_v51 }
 0x6fa   : > { %7253 = vmatprep.mubr.msk.bf16.mxu1 %vm3037_vm13, %v3337_v16  ;;  %3806 = vmatpush1.bf16.msra.mxu1 %v7983_v39 }
 0x6fb   : > { %3807 = vmatprep.subr.bf16.mxu1 %v7991_v26 }
 0x6fd   : > { %3445 = vmatmul.mubr.bf16.gmra.mrb[112].mxu1 %v3336_v55 }
 0x6fe   : > { %3808 = vmatpush1.bf16.msra.mxu1 %v7989_v63  ;;  %3835 = vmatprep.mubr.bf16.mxu1 %v8389_v2 }
 0x6ff   : > { %3809 = vmatprep.subr.bf16.mxu1 %v7997_v25 }
 0x702   : > { %3810 = vmatpush1.bf16.msra.mxu1 %v7995_v20 }
 0x703   : > { %3811 = vmatprep.subr.bf16.mxu1 %v8003_v22 }
 0x706   : > { %3812 = vmatpush1.bf16.msra.mxu1 %v8001_v23 }
 0x707   : > { %3813 = vmatprep.subr.bf16.mxu1 %v8009_v17 }
 0x70a   : > { %3814 = vmatpush1.bf16.msra.mxu1 %v8007_v43 }
 0x70b   : > { %7621 = vmatprep.subr.bf16.mxu1 %v8390_v53 }
 0x7c8   : > { %v3438_v62 = vpop.f32.mrb[108].mxu1 }
 0x7c9   : > { %v3440_v54 = vpop.f32.mrb[109].mxu1 }
 0x7ca   : > { %v3441_v42 = vpop.f32.mrb[110].mxu1 }
 0x7cb   : > { %v3452_v12 = vpack.c.bf16 %v3441_v42, %v3438_v62  ;;  %v3443_v36 = vpop.f32.mrb[111].mxu1 }
 0x7cd   : > { %7266 = vmatmul.mubr.msk.bf16.vlgmr.msra.gmra.mrb[112].mxu0 %vm3526_vm11, %v3452_v12  ;;  %7294 = vmatmul.mubr.msk.bf16.vlgmr.msra.gmra.mrb[116].mxu1 %vm3526_vm11, %v3452_v12 }
 0x7ce   : > { %3669 = vmatpush1.bf16.msra.mxu0 %v8010_v7  ;;  %3575 = vmatprep.mubr.bf16.mxu0 %v8389_v2 }
 0x7cf   : > { %3670 = vmatprep.subr.bf16.mxu0 %v8015_v5  ;;  %3845 = vmatprep.mubr.bf16.mxu1 %v8389_v2 }
 0x7d0   : > { %v3446_v57 = vpop.f32.mrb[112].mxu1 }
 0x7d1   : > { %v3448_v11 = vpop.f32.mrb[113].mxu1  ;;  %v3453_v18 = vpack.c.bf16 %v3446_v57, %v3446_v57 }
 0x7d2   : > { %3671 = vmatpush1.bf16.msra.mxu0 %v8013_v1  ;;  %v3449_v59 = vpop.f32.mrb[114].mxu1 }
 0x7d3   : > { %v3450_v50 = vpop.f32.mrb[115].mxu1  ;;  %3672 = vmatprep.subr.bf16.mxu0 %v8018_v29 }
 0x7d5   : > { %7267 = vmatmul.mubr.msk.bf16.gmra.mrb[116].mxu0 %vm3526_vm11, %v3453_v18  ;;  %7295 = vmatmul.mubr.msk.bf16.gmra.mrb[120].mxu1 %vm3526_vm11, %v3453_v18 }
 0x7d6   : > { %3673 = vmatpush1.bf16.msra.mxu0 %v8016_v28  ;;  %3700 = vmatprep.mubr.bf16.mxu0 %v8389_v2 }
 0x7d7   : > { %3674 = vmatprep.subr.bf16.mxu0 %v8021_v24 }
 0x7da   : > { %3675 = vmatpush1.bf16.msra.mxu0 %v8019_v0 }
 0x7db   : > { %3676 = vmatprep.subr.bf16.mxu0 %v8024_v61 }
 0x7de   : > { %3677 = vmatpush1.bf16.msra.mxu0 %v8022_v30 }
 0x7df   : > { %3678 = vmatprep.subr.bf16.mxu0 %v8027_v33 }
 0x7e2   : > { %3679 = vmatpush1.bf16.msra.mxu0 %v8025_v31 }
 0x7e3   : > { %4065 = vmatprep.subr.bf16.mxu0 %v8389_v2 }
 0x7e5   : > { %7280 = vmatmul.mubr.msk.bf16.vlgmr.msra.gmra.mrb[120].mxu0 %vm3526_vm11, %v3452_v12 }
 0x7e6   : > { %3710 = vmatprep.mubr.bf16.mxu0 %v8389_v2  ;;  %4066 = vmatpush1.bf16.msra.mxu0 %v8028_v15  ;;  %v7296_v15 = vld [vmem:[%s10954_s2 + $0x3] ss:$8 sm:$0x3] }
 0x7e7   : > { %4067 = vmatprep.subr.bf16.mxu0 %v8389_v2 }
 0x7ea   : > { %4068 = vmatpush1.bf16.msra.mxu0 %v8029_v27 }
 0x7eb   : > { %4069 = vmatprep.subr.bf16.mxu0 %v8389_v2 }
 0x7ed   : > { %7281 = vmatmul.mubr.msk.bf16.gmra.mrb[124].mxu0 %vm3526_vm11, %v3453_v18 }
 0x7ee   : > { %4070 = vmatpush1.bf16.msra.mxu0 %v8030_v56 }
 0x7ef   : > { %4071 = vmatprep.subr.bf16.mxu0 %v8389_v2 }
 0x7f2   : > { %4072 = vmatpush1.bf16.msra.mxu0 %v8031_v6 }
 0x7f3   : > { %4073 = vmatprep.subr.bf16.mxu0 %v8389_v2 }
 0x7f6   : > { %4074 = vmatpush1.bf16.msra.mxu0 %v8032_v40 }
 0x7f7   : > { %4075 = vmatprep.subr.bf16.mxu0 %v8389_v2 }
 0x7fa   : > { %4076 = vmatpush1.bf16.msra.mxu0 %v8033_v3 }
 0x7fb   : > { %4077 = vmatprep.subr.bf16.mxu0 %v8389_v2 }
 0x7fe   : > { %4078 = vmatpush1.bf16.msra.mxu0 %v8034_v38  ;;  %v3890_v38 = vrot.slane %v7296_v15, %v8766_v9 }
 0x7ff   : > { %4079 = vmatprep.subr.bf16.mxu0 %v8389_v2 }
 0x802   : > { %4080 = vmatpush1.bf16.msra.mxu0 %v8035_v32 }
 0x803   : > { %4081 = vmatprep.subr.bf16.mxu0 %v8389_v2 }
 0x806   : > { %4082 = vmatpush1.bf16.msra.mxu0 %v8036_v52 }
 0x807   : > { %4083 = vmatprep.subr.bf16.mxu0 %v8389_v2 }
 0x80a   : > { %4084 = vmatpush1.bf16.msra.mxu0 %v8037_v60  ;;  %v3894_v60 = vrot.slane %v7296_v15, %v8778_v19 }
 0x80b   : > { %4085 = vmatprep.subr.bf16.mxu0 %v8389_v2 }
 0x80e   : > { %4086 = vmatpush1.bf16.msra.mxu0 %v8038_v46 }
 0x80f   : > { %4087 = vmatprep.subr.bf16.mxu0 %v8389_v2 }
 0x812   : > { %4088 = vmatpush1.bf16.msra.mxu0 %v8039_v8 }
 0x813   : > { %7613 = vmatprep.subr.bf16.mxu0 %v8390_v53 }
 0x8a0   : > { %v3567_v47 = vpop.f32.mrb[112].mxu0  ;;  %v3837_v45 = vpop.f32.mrb[116].mxu1 }
 0x8a1   : > { %v3725_v35 = vrot.slane %v3567_v47, 7  ;;  %v3569_v39 = vpop.f32.mrb[113].mxu0  ;;  %v3839_v34 = vpop.f32.mrb[117].mxu1 }
 0x8a2   : > { %v3726_v26 = vrot.slane %v3569_v39, 7  ;;  %v3571_v16 = vpop.f32.mrb[114].mxu0  ;;  %v3841_v63 = vpop.f32.mrb[118].mxu1 }
 0x8a3   : > { %v3741_v55 = vsel %vm583_vm7, 0.0, %v3725_v35  ;;  %v3727_v25 = vrot.slane %v3571_v16, 7  ;;  %v3573_v20 = vpop.f32.mrb[115].mxu0  ;;  %v3843_v22 = vpop.f32.mrb[119].mxu1 }
 0x8a4   : > { %v3838_v23 = vadd.f32 %v3837_v45, %v3741_v55  ;;  %v3742_v49 = vsel %vm583_vm7, 0.0, %v3726_v26  ;;  %v3729_v14 = vrot.slane %v3573_v20, 7 }
 0x8a5   : > { %v3840_v43 = vadd.f32 %v3839_v34, %v3742_v49  ;;  %v3728_v17 = vsel %vm583_vm7, %v3725_v35, %v3727_v25  ;;  %v7297_v34 = vsel %vm3918_vm10, 1.0, %v8390_v53 }
 0x8a6   : > { %v3842_v51 = vadd.f32 %v3841_v63, %v3728_v17  ;;  %v3730_v62 = vsel %vm583_vm7, %v3726_v26, %v3729_v14 }
 0x8a7   : > { %v3844_v54 = vadd.f32 %v3843_v22, %v3730_v62 }
 0x8a8   : > { %v3577_v42 = vpop.f32.mrb[116].mxu0  ;;  %v3847_v7 = vpop.f32.mrb[120].mxu1 }
 0x8a9   : > { %v3731_v12 = vrot.slane %v3577_v42, 7  ;;  %v3579_v36 = vpop.f32.mrb[117].mxu0  ;;  %v3849_v5 = vpop.f32.mrb[121].mxu1  ;;  %v7299_v42 = vsel %vm8667_vm6, 1.0, %v8390_v53  ;;  %vm8393_vm6 = vmmov 0  }
 0x8aa   : > { %v3733_v1 = vrot.slane %v3579_v36, 7  ;;  %v3581_v29 = vpop.f32.mrb[118].mxu0  ;;  %v3851_v57 = vpop.f32.mrb[122].mxu1  ;;  %7633 = vmatprep.mubr.msk.bf16.mxu1 %vm8393_vm6, %v8390_v53 }
 0x8ab   : > { %v3732_v11 = vsel %vm583_vm7, %v3727_v25, %v3731_v12  ;;  %v3582_v59 = vpop.f32.mrb[119].mxu0  ;;  %v3852_v28 = vpop.f32.mrb[123].mxu1 }
 0x8ac   : > { %v3848_v18 = vadd.f32 %v3847_v7, %v3732_v11  ;;  %v3734_v50 = vsel %vm583_vm7, %v3729_v14, %v3733_v1 }
 0x8ad   : > { %v3850_v24 = vadd.f32 %v3849_v5, %v3734_v50 }
 0x8b8   : > { %v3702_v0 = vpop.f32.mrb[120].mxu0 }
 0x8b9   : > { %v3704_v61 = vpop.f32.mrb[121].mxu0  ;;  %v3860_v33 = vrot.slane %v3702_v0, 1 }
 0x8ba   : > { %v3706_v30 = vpop.f32.mrb[122].mxu0  ;;  %v3863_v56 = vrot.slane %v3704_v61, 1 }
 0x8bb   : > { %v3861_v31 = vrot.slane %v3706_v30, 1  ;;  %v3708_v27 = vpop.f32.mrb[123].mxu0  ;;  %v3985_v30 = vld [vmem:[%s10954_s2 + $0x4] ss:$0 sm:$0xff] }
 0x8bc   : > { %v3864_v6 = vrot.slane %v3708_v27, 1 }
 0x8bd   : > { %v3862_v40 = vsel %vm778_vm8, %v3860_v33, %v3861_v31 }
 0x8be   : > { %v3878_v3 = vadd.f32 %v3862_v40, %v3838_v23  ;;  %v3865_v32 = vsel %vm778_vm8, %v3863_v56, %v3864_v6  ;;  %v7298_v23 = vsel %vm3928_vm12, 1.0, %v8390_v53  ;;  %vm4579_vm12 = vmand %vm4577_vm0, %vm3913_vm4 }
 0x8bf   : > { %v3879_v52 = vadd.f32 %v3865_v32, %v3840_v43 }
 0x8c0   : > { %v3712_v46 = vpop.f32.mrb[124].mxu0  ;;  %v3897_v45 = vadd.f32 %v3890_v38, %v3878_v3 }
 0x8c1   : > { %v3866_v8 = vrot.slane %v3712_v46, 1  ;;  %v3714_v47 = vpop.f32.mrb[125].mxu0  ;;  %v3898_v26 = vadd.f32 %v3894_v60, %v3879_v52 }
 0x8c2   : > { %v3868_v35 = vrot.slane %v3714_v47, 1  ;;  %v3716_v39 = vpop.f32.mrb[126].mxu0  ;;  %v3945_v43 = vmul.f32 %v7297_v34, %v3897_v45 }
 0x8c3   : > { %v3867_v16 = vsel %vm778_vm8, %v3861_v31, %v3866_v8  ;;  %v3876_v63 = vsel %vm778_vm8, %v3866_v8, 0.0  ;;  %v3717_v55 = vpop.f32.mrb[127].mxu0  ;;  %v3946_v12 = vmul.f32 %v7297_v34, %v3898_v26 }
 0x8c4   : > { %v3880_v25 = vadd.f32 %v3867_v16, %v3842_v51  ;;  %v3882_v20 = vadd.f32 %v3876_v63, %v3848_v18  ;;  %v3869_v22 = vsel %vm778_vm8, %v3864_v6, %v3868_v35  ;;  %v3877_v49 = vsel %vm778_vm8, %v3868_v35, 0.0  ;;  %v8040_v16 = vld [vmem:[%s10953_s1 + $0x14b8] ss:$12 sps:$4 sm:$0xff]   ;;  %v8044_v63 = vld [vmem:[%s10953_s1 + $0x994] ss:$12 sps:$4 sm:$0xff]  }
 0x8c5   : > { %v3881_v14 = vadd.f32 %v3869_v22, %v3844_v54  ;;  %v3883_v62 = vadd.f32 %v3877_v49, %v3850_v24  ;;  %v3951_v1 = vmax.f32 %v3945_v43, 0.0  ;;  %v3952_v59 = vmax.f32 %v3946_v12, 0.0  ;;  %v8041_v55 = vld [vmem:[%s10953_s1 + $0x14e8] ss:$12 sps:$4 sm:$0xff]   ;;  %v8048_v49 = vld [vmem:[%s10953_s1 + $0x9c0] ss:$12 sps:$4 sm:$0xff]  }
 0x8c6   : > { %v3899_v17 = vadd.f32 %v3890_v38, %v3880_v25  ;;  %v3901_v29 = vadd.f32 %v3890_v38, %v3882_v20  ;;  %v8042_v25 = vld [vmem:[%s10953_s1 + $0x990] ss:$12 sps:$4 sm:$0xff]   ;;  %v8047_v20 = vld [vmem:[%s10953_s1 + $0x9ac] ss:$12 sps:$4 sm:$0xff]   ;;  %v8045_v22 = vld [vmem:[%s10953_s1 + $0x9a8] ss:$12 sps:$4 sm:$0xff]  }
 0x8c7   : > { %v3900_v7 = vadd.f32 %v3894_v60, %v3881_v14  ;;  %v3902_v5 = vadd.f32 %v3894_v60, %v3883_v62  ;;  %v8053_v14 = vld [vmem:[%s10953_s1 + $0x9dc] ss:$12 sps:$4 sm:$0xff]   ;;  %v8051_v43 = vld [vmem:[%s10953_s1 + $0x9d8] ss:$12 sps:$4 sm:$0xff]  }
 0x8c8   : > { %v3947_v36 = vmul.f32 %v7298_v23, %v3899_v17  ;;  %v3949_v24 = vmul.f32 %v7299_v42, %v3901_v29  ;;  %v8056_v17 = vld [vmem:[%s10953_s1 + $0x9f4] ss:$12 sps:$4 sm:$0xff]   ;;  %v8054_v62 = vld [vmem:[%s10953_s1 + $0x9f0] ss:$12 sps:$4 sm:$0xff]  }
 0x8c9   : > { %v3948_v51 = vmul.f32 %v7298_v23, %v3900_v7  ;;  %v3950_v11 = vmul.f32 %v7299_v42, %v3902_v5  ;;  %v8057_v7 = vld [vmem:[%s10953_s1 + $0xa08] ss:$12 sps:$4 sm:$0xff]   ;;  %v8062_v12 = vld [vmem:[%s10953_s1 + $0xa24] ss:$12 sps:$4 sm:$0xff]  }
 0x8ca   : > { %v3953_v57 = vmax.f32 %v3947_v36, 0.0  ;;  %v3955_v0 = vmax.f32 %v3949_v24, 0.0  ;;  %v8060_v36 = vld [vmem:[%s10953_s1 + $0xa20] ss:$12 sps:$4 sm:$0xff]   ;;  %v8065_v5 = vld [vmem:[%s10953_s1 + $0xa3c] ss:$12 sps:$4 sm:$0xff]  }
 0x8cb   : > { %v3954_v28 = vmax.f32 %v3948_v51, 0.0  ;;  %v3956_v18 = vmax.f32 %v3950_v11, 0.0  ;;  %v8063_v51 = vld [vmem:[%s10953_s1 + $0xa38] ss:$12 sps:$4 sm:$0xff]   ;;  %v8066_v29 = vld [vmem:[%s10953_s1 + $0xa50] ss:$12 sps:$4 sm:$0xff]  }
 0x8cc   : > { %v9894_v54 = vpack.c.bf16 %v3953_v57, %v3951_v1  ;;  %v9905_v61 = vpack.c.bf16 %v3955_v0, %v3955_v0  ;;  %v8068_v1 = vld [vmem:[%s10953_s1 + $0xa54] ss:$12 sps:$4 sm:$0xff]   ;;  %v8071_v57 = vld [vmem:[%s10953_s1 + $0xa6c] ss:$12 sps:$4 sm:$0xff]   ;;  %v8080_v0 = vld [vmem:[%s10953_s1 + $0xba4] ss:$12 sps:$4 sm:$0xff]  }
 0x8cd   : > { %v9896_v50 = vpack.c.bf16 %v3954_v28, %v3952_v59  ;;  %v9900_v13 = vpack.c.bf16 %v3956_v18, %v3956_v18  ;;  %v8069_v11 = vld [vmem:[%s10953_s1 + $0xa68] ss:$12 sps:$4 sm:$0xff]   ;;  %v8072_v28 = vld [vmem:[%s10953_s1 + $0xb70] ss:$12 sps:$4 sm:$0xff]   ;;  %v8077_v18 = vld [vmem:[%s10953_s1 + $0xb8c] ss:$12 sps:$4 sm:$0xff]  }
 0x8ce   : > { %v8074_v59 = vld [vmem:[%s10953_s1 + $0xb74] ss:$12 sps:$4 sm:$0xff]  }
 0x8cf   : > { %7312 = vmatprep.mubr.msk.bf16.mxu0 %vm4058_vm14, %v9896_v50  ;;  %v8075_v24 = vld [vmem:[%s10953_s1 + $0xb88] ss:$12 sps:$4 sm:$0xff]  }
 0x8d0   : > { %4098 = vmatmul.mubr.bf16.vlgmr.msra.gmra.mrb[128].mxu0 %v9894_v54 }
 0x8d1   : > { %7313 = vmatprep.mubr.msk.bf16.mxu0 %vm4058_vm14, %v9900_v13 }
 0x8d8   : > { %4106 = vmatmul.mubr.bf16.gmra.mrb[132].mxu0 %v9905_v61 }
 0x8d9   : > { %7617 = vmatprep.mubr.msk.bf16.mxu0 %vm8393_vm6, %v8390_v53 }
 0x9a3   : > { %v4099_v33 = vpop.f32.mrb[128].mxu0 }
 0x9a4   : > { %v4100_v31 = vadd.f32 %v4099_v33, %v3985_v30  ;;  %v4101_v15 = vpop.f32.mrb[129].mxu0  ;;  %v8083_v33 = vld [vmem:[%s10953_s1 + $0xbbc] ss:$12 sps:$4 sm:$0xff]  }
 0x9a5   : > { %v4102_v27 = vpop.f32.mrb[130].mxu0  ;;  %v8081_v15 = vld [vmem:[%s10953_s1 + $0xbb8] ss:$12 sps:$4 sm:$0xff]  }
 0x9a6   : > { %v4113_v56 = vmul.f32 %v7297_v34, %v4100_v31  ;;  %v4103_v6 = vadd.f32 %v4102_v27, %v3985_v30  ;;  %v4104_v40 = vpop.f32.mrb[131].mxu0  ;;  %v10025_v31 = vpack.c.bf16 %v9683_v21, %v9683_v21  ;;  %v8086_v27 = vld [vmem:[%s10953_s1 + $0xbd4] ss:$12 sps:$4 sm:$0xff]   ;;  %v8084_v21 = vld [vmem:[%s10953_s1 + $0xbd0] ss:$12 sps:$4 sm:$0xff]  }
 0x9a7   : > { %v8089_v40 = vld [vmem:[%s10953_s1 + $0xbec] ss:$12 sps:$4 sm:$0xff]  }
 0x9a8   : > { %v4114_v3 = vmul.f32 %v7298_v23, %v4103_v6  ;;  %v4116_v38 = vmax.f32 %v4113_v56, 0.0  ;;  %v8050_v23 = vld [vmem:[%s10953_s1 + $0x9c4] ss:$12 sps:$4 sm:$0xff]   ;;  %v8180_v56 = vld [vmem:[%s10953_s1 + $0x7e0] ss:$12 sps:$4 sm:$0xff]   ;;  %v10044_v6 = vpack.c.bf16 %v9678_v41, %v9678_v41 }
 0x9a9   : > { %7622 = vmatpush3.bf16.msra.mxu1 %v8180_v56  ;;  %v8184_v41 = vld [vmem:[%s10953_s1 + $0x7f8] ss:$12 sps:$4 sm:$0xff]   ;;  %v8149_v56 = vld [vmem:[%s10953_s1 + $0xcdc] ss:$12 sps:$4 sm:$0xff]  }
 0x9aa   : > { %v4117_v32 = vmax.f32 %v4114_v3, 0.0  ;;  %7623 = vmatprep.subr.bf16.mxu1 %v8390_v53  ;;  %v8087_v3 = vld [vmem:[%s10953_s1 + $0xbe8] ss:$12 sps:$4 sm:$0xff]  }
 0x9ab   : > { %v4107_v52 = vpop.f32.mrb[132].mxu0 }
 0x9ac   : > { %v9915_v60 = vpack.c.bf16 %v4117_v32, %v4116_v38  ;;  %v4108_v46 = vadd.f32 %v4107_v52, %v3985_v30  ;;  %v4109_v8 = vpop.f32.mrb[133].mxu0  ;;  %v8078_v30 = vld [vmem:[%s10953_s1 + $0xba0] ss:$12 sps:$4 sm:$0xff]   ;;  %v8092_v38 = vld [vmem:[%s10953_s1 + $0xc04] ss:$12 sps:$4 sm:$0xff]  }
 0x9ad   : > { %v4110_v47 = vpop.f32.mrb[134].mxu0  ;;  %7624 = vmatpush3.bf16.msra.mxu1 %v8184_v41  ;;  %v8090_v32 = vld [vmem:[%s10953_s1 + $0xc00] ss:$12 sps:$4 sm:$0xff]   ;;  %v8188_v52 = vld [vmem:[%s10953_s1 + $0x810] ss:$12 sps:$4 sm:$0xff]  }
 0x9ae   : > { %v4115_v45 = vmul.f32 %v7299_v42, %v4108_v46  ;;  %v4111_v35 = vpop.f32.mrb[135].mxu0  ;;  %7614 = vmatpush3.bf16.msra.mxu0 %v9915_v60  ;;  %v8059_v42 = vld [vmem:[%s10953_s1 + $0xa0c] ss:$12 sps:$4 sm:$0xff]   ;;  %7625 = vmatprep.subr.bf16.mxu1 %v8390_v53  ;;  %v8095_v46 = vld [vmem:[%s10953_s1 + $0xc1c] ss:$12 sps:$4 sm:$0xff]  }
 0x9af   : > { %7615 = vmatprep.subr.bf16.mxu0 %v8390_v53  ;;  %v8093_v8 = vld [vmem:[%s10953_s1 + $0xc18] ss:$12 sps:$4 sm:$0xff]   ;;  %v8192_v47 = vld [vmem:[%s10953_s1 + $0x828] ss:$12 sps:$4 sm:$0xff]   ;;  %v8096_v35 = vld [vmem:[%s10953_s1 + $0xc30] ss:$12 sps:$4 sm:$0xff]  }
 0x9b0   : > { %v4118_v39 = vmax.f32 %v4115_v45, 0.0  ;;  %v8098_v45 = vld [vmem:[%s10953_s1 + $0xc34] ss:$12 sps:$4 sm:$0xff]   ;;  %v8150_v41 = vld [vmem:[%s10953_s1 + $0xcf0] ss:$12 sps:$4 sm:$0xff]  }
 0x9b1   : > { %7626 = vmatpush3.bf16.msra.mxu1 %v8188_v52  ;;  %v8158_v52 = vld [vmem:[%s10953_s1 + $0xd24] ss:$12 sps:$4 sm:$0xff]  }
 0x9b2   : > { %v4120_v26 = vpack.c.bf16 %v4118_v39, %v4118_v39  ;;  %7627 = vmatprep.subr.bf16.mxu1 %v8390_v53  ;;  %v8196_v39 = vld [vmem:[%s10953_s1 + $0x840] ss:$12 sps:$4 sm:$0xff]  }
 0x9b4   : > { %v9920_v34 = vsel %vm1927_vm3, %v4120_v26, 0  ;;  %v8101_v26 = vld [vmem:[%s10953_s1 + $0xc4c] ss:$12 sps:$4 sm:$0xff]   ;;  %vm4564_vm3 = vcmp.le.s32.totalorder %v8652_v10, 2 }
 0x9b5   : > { %7616 = vmatpush3.bf16.msra.mxu0 %v9920_v34  ;;  %7628 = vmatpush3.bf16.msra.mxu1 %v8192_v47  ;;  %v8159_v47 = vld [vmem:[%s10953_s1 + $0xd38] ss:$12 sps:$4 sm:$0xff]   ;;  %vm4566_vm1 = vmand %vm891_vm9, %vm4564_vm3 }
 0x9b6   : > { %7661 = vmatprep.subr.bf16.mxu0 %v8390_v53  ;;  %7629 = vmatprep.subr.bf16.mxu1 %v8390_v53 }
 0x9b8   : > { %7618 = vmatmul.mubr.msk.bf16.vlgmr.msra.gmra.mrb[136].mxu0 %vm4129_vm15, %v8040_v16  ;;  %v8099_v16 = vld [vmem:[%s10953_s1 + $0xc48] ss:$12 sps:$4 sm:$0xff]  }
 0x9b9   : > { %7662 = vmatpush3.bf16.msra.mxu0 %v9915_v60  ;;  %7665 = vmatprep.mubr.msk.bf16.mxu0 %vm8393_vm6, %v8390_v53 }
 0x9ba   : > { %7663 = vmatprep.subr.bf16.mxu0 %v8390_v53  ;;  %7630 = vmatpush3.bf16.msra.mxu1 %v8196_v39  ;;  %v8167_v39 = vld [vmem:[%s10953_s1 + $0xd6c] ss:$12 sps:$4 sm:$0xff]  }
 0x9bb   : > { %7631 = vmatprep.subr.bf16.mxu1 %v8390_v53 }
 0x9bd   : > { %7664 = vmatpush3.bf16.msra.mxu0 %v9920_v34 }
 0x9be   : > { %4811 = vmatprep.subr.bf16.mxu0 %v8044_v63  ;;  %v8104_v63 = vld [vmem:[%s10953_s1 + $0xa84] ss:$12 sps:$4 sm:$0xff]  }
 0x9c0   : > { %7666 = vmatmul.mubr.msk.bf16.vlgmr.msra.gmra.mrb[140].mxu0 %vm4129_vm15, %v8041_v55  ;;  %v8200_v55 = vld [vmem:[%s10953_s1 + $0x858] ss:$12 sps:$4 sm:$0xff]  }
 0x9c1   : > { %4812 = vmatpush1.bf16.msra.mxu0 %v8042_v25  ;;  %7373 = vmatprep.mubr.msk.bf16.mxu0 %vm3037_vm13, %v9658_v44  ;;  %v8102_v25 = vld [vmem:[%s10953_s1 + $0xa80] ss:$12 sps:$4 sm:$0xff]  }
 0x9c2   : > { %4813 = vmatprep.subr.bf16.mxu0 %v8047_v20  ;;  %v8107_v20 = vld [vmem:[%s10953_s1 + $0xa9c] ss:$12 sps:$4 sm:$0xff]   ;;  %7632 = vmatpush3.bf16.msra.mxu1 %v8200_v55 }
 0x9c3   : > { %7637 = vmatprep.subr.bf16.mxu1 %v8390_v53  ;;  %v8173_v55 = vld [vmem:[%s10953_s1 + $0xd9c] ss:$12 sps:$4 sm:$0xff]  }
 0x9c5   : > { %4814 = vmatpush1.bf16.msra.mxu0 %v8045_v22  ;;  %v8105_v22 = vld [vmem:[%s10953_s1 + $0xa98] ss:$12 sps:$4 sm:$0xff]  }
 0x9c6   : > { %4815 = vmatprep.subr.bf16.mxu0 %v8050_v23  ;;  %v8110_v23 = vld [vmem:[%s10953_s1 + $0xab4] ss:$12 sps:$4 sm:$0xff]  }
 0x9c9   : > { %4816 = vmatpush1.bf16.msra.mxu0 %v8048_v49  ;;  %v8108_v49 = vld [vmem:[%s10953_s1 + $0xab0] ss:$12 sps:$4 sm:$0xff]  }
 0x9ca   : > { %4817 = vmatprep.subr.bf16.mxu0 %v8053_v14  ;;  %v8113_v14 = vld [vmem:[%s10953_s1 + $0xacc] ss:$12 sps:$4 sm:$0xff]  }
 0x9cd   : > { %4818 = vmatpush1.bf16.msra.mxu0 %v8051_v43  ;;  %v8111_v43 = vld [vmem:[%s10953_s1 + $0xac8] ss:$12 sps:$4 sm:$0xff]  }
 0x9ce   : > { %4819 = vmatprep.subr.bf16.mxu0 %v8056_v17  ;;  %v8116_v17 = vld [vmem:[%s10953_s1 + $0xae4] ss:$12 sps:$4 sm:$0xff]  }
 0x9d1   : > { %4820 = vmatpush1.bf16.msra.mxu0 %v8054_v62  ;;  %v8114_v62 = vld [vmem:[%s10953_s1 + $0xae0] ss:$12 sps:$4 sm:$0xff]  }
 0x9d2   : > { %4821 = vmatprep.subr.bf16.mxu0 %v8059_v42  ;;  %v8119_v42 = vld [vmem:[%s10953_s1 + $0xafc] ss:$12 sps:$4 sm:$0xff]  }
 0x9d5   : > { %4822 = vmatpush1.bf16.msra.mxu0 %v8057_v7  ;;  %v8117_v7 = vld [vmem:[%s10953_s1 + $0xaf8] ss:$12 sps:$4 sm:$0xff]  }
 0x9d6   : > { %4823 = vmatprep.subr.bf16.mxu0 %v8062_v12  ;;  %v8122_v12 = vld [vmem:[%s10953_s1 + $0xb14] ss:$12 sps:$4 sm:$0xff]  }
 0x9d9   : > { %4824 = vmatpush1.bf16.msra.mxu0 %v8060_v36  ;;  %v8120_v36 = vld [vmem:[%s10953_s1 + $0xb10] ss:$12 sps:$4 sm:$0xff]  }
 0x9da   : > { %4825 = vmatprep.subr.bf16.mxu0 %v8065_v5  ;;  %v8125_v5 = vld [vmem:[%s10953_s1 + $0xb2c] ss:$12 sps:$4 sm:$0xff]  }
 0x9dd   : > { %4826 = vmatpush1.bf16.msra.mxu0 %v8063_v51  ;;  %v8123_v51 = vld [vmem:[%s10953_s1 + $0xb28] ss:$12 sps:$4 sm:$0xff]  }
 0x9de   : > { %4827 = vmatprep.subr.bf16.mxu0 %v8068_v1  ;;  %v8128_v1 = vld [vmem:[%s10953_s1 + $0xb44] ss:$12 sps:$4 sm:$0xff]  }
 0x9e1   : > { %4828 = vmatpush1.bf16.msra.mxu0 %v8066_v29  ;;  %v8126_v29 = vld [vmem:[%s10953_s1 + $0xb40] ss:$12 sps:$4 sm:$0xff]  }
 0x9e2   : > { %4829 = vmatprep.subr.bf16.mxu0 %v8071_v57  ;;  %v8131_v57 = vld [vmem:[%s10953_s1 + $0xb5c] ss:$12 sps:$4 sm:$0xff]  }
 0x9e5   : > { %4830 = vmatpush1.bf16.msra.mxu0 %v8069_v11  ;;  %v8129_v11 = vld [vmem:[%s10953_s1 + $0xb58] ss:$12 sps:$4 sm:$0xff]  }
 0x9e6   : > { %5168 = vmatprep.subr.bf16.mxu0 %v8074_v59  ;;  %v8134_v59 = vld [vmem:[%s10953_s1 + $0xc64] ss:$12 sps:$4 sm:$0xff]  }
 0x9e8   : > { %4844 = vmatmul.mubr.bf16.vlgmr.msra.gmra.mrb[144].mxu0 %v9656_v48 }
 0x9e9   : > { %7374 = vmatprep.mubr.msk.bf16.mxu0 %vm3037_vm13, %v9673_v58  ;;  %5169 = vmatpush1.bf16.msra.mxu0 %v8072_v28  ;;  %v8132_v28 = vld [vmem:[%s10953_s1 + $0xc60] ss:$12 sps:$4 sm:$0xff]  }
 0x9ea   : > { %5170 = vmatprep.subr.bf16.mxu0 %v8077_v18  ;;  %v8137_v18 = vld [vmem:[%s10953_s1 + $0xc7c] ss:$12 sps:$4 sm:$0xff]  }
 0x9ed   : > { %5171 = vmatpush1.bf16.msra.mxu0 %v8075_v24  ;;  %v8135_v24 = vld [vmem:[%s10953_s1 + $0xc78] ss:$12 sps:$4 sm:$0xff]  }
 0x9ee   : > { %5172 = vmatprep.subr.bf16.mxu0 %v8080_v0  ;;  %v8140_v0 = vld [vmem:[%s10953_s1 + $0xc94] ss:$12 sps:$4 sm:$0xff]  }
 0x9f0   : > { %4854 = vmatmul.mubr.bf16.gmra.mrb[148].mxu0 %v9668_v37 }
 0x9f1   : > { %7375 = vmatprep.mubr.msk.bf16.mxu0 %vm3037_vm13, %v10025_v31  ;;  %5173 = vmatpush1.bf16.msra.mxu0 %v8078_v30  ;;  %v8138_v30 = vld [vmem:[%s10953_s1 + $0xc90] ss:$12 sps:$4 sm:$0xff]  }
 0x9f2   : > { %5174 = vmatprep.subr.bf16.mxu0 %v8083_v33  ;;  %v8143_v33 = vld [vmem:[%s10953_s1 + $0xcac] ss:$12 sps:$4 sm:$0xff]  }
 0x9f5   : > { %5175 = vmatpush1.bf16.msra.mxu0 %v8081_v15  ;;  %v8141_v15 = vld [vmem:[%s10953_s1 + $0xca8] ss:$12 sps:$4 sm:$0xff]  }
 0x9f6   : > { %5176 = vmatprep.subr.bf16.mxu0 %v8086_v27  ;;  %v8146_v27 = vld [vmem:[%s10953_s1 + $0xcc4] ss:$12 sps:$4 sm:$0xff]  }
 0x9f8   : > { %4864 = vmatmul.mubr.bf16.gmra.mrb[152].mxu0 %v10044_v6 }
 0x9f9   : > { %5177 = vmatpush1.bf16.msra.mxu0 %v8084_v21  ;;  %7409 = vmatprep.mubr.msk.bf16.mxu0 %vm3037_vm13, %v9658_v44  ;;  %v8144_v21 = vld [vmem:[%s10953_s1 + $0xcc0] ss:$12 sps:$4 sm:$0xff]  }
 0x9fa   : > { %5178 = vmatprep.subr.bf16.mxu0 %v8089_v40  ;;  %v8147_v40 = vld [vmem:[%s10953_s1 + $0xcd8] ss:$12 sps:$4 sm:$0xff]  }
 0x9fd   : > { %5179 = vmatpush1.bf16.msra.mxu0 %v8087_v3  ;;  %v8152_v3 = vld [vmem:[%s10953_s1 + $0xcf4] ss:$12 sps:$4 sm:$0xff]  }
 0x9fe   : > { %5180 = vmatprep.subr.bf16.mxu0 %v8092_v38  ;;  %v8155_v38 = vld [vmem:[%s10953_s1 + $0xd0c] ss:$12 sps:$4 sm:$0xff]  }
 0xa01   : > { %5181 = vmatpush1.bf16.msra.mxu0 %v8090_v32  ;;  %v8153_v32 = vld [vmem:[%s10953_s1 + $0xd08] ss:$12 sps:$4 sm:$0xff]  }
 0xa02   : > { %5182 = vmatprep.subr.bf16.mxu0 %v8095_v46  ;;  %v8156_v46 = vld [vmem:[%s10953_s1 + $0xd20] ss:$12 sps:$4 sm:$0xff]  }
 0xa05   : > { %5183 = vmatpush1.bf16.msra.mxu0 %v8093_v8  ;;  %v8161_v8 = vld [vmem:[%s10953_s1 + $0xd3c] ss:$12 sps:$4 sm:$0xff]  }
 0xa06   : > { %5184 = vmatprep.subr.bf16.mxu0 %v8098_v45  ;;  %v8164_v45 = vld [vmem:[%s10953_s1 + $0xd54] ss:$12 sps:$4 sm:$0xff]  }
 0xa09   : > { %5185 = vmatpush1.bf16.msra.mxu0 %v8096_v35  ;;  %v8162_v35 = vld [vmem:[%s10953_s1 + $0xd50] ss:$12 sps:$4 sm:$0xff]  }
 0xa0a   : > { %5186 = vmatprep.subr.bf16.mxu0 %v8101_v26  ;;  %v8165_v26 = vld [vmem:[%s10953_s1 + $0xd68] ss:$12 sps:$4 sm:$0xff]  }
 0xa0d   : > { %5187 = vmatpush1.bf16.msra.mxu0 %v8099_v16  ;;  %v8170_v16 = vld [vmem:[%s10953_s1 + $0xd84] ss:$12 sps:$4 sm:$0xff]  }
 0xa0e   : > { %5505 = vmatprep.subr.bf16.mxu0 %v8104_v63  ;;  %v8168_v63 = vld [vmem:[%s10953_s1 + $0xd80] ss:$12 sps:$4 sm:$0xff]  }
 0xa10   : > { %5201 = vmatmul.mubr.bf16.vlgmr.msra.gmra.mrb[156].mxu0 %v9656_v48 }
 0xa11   : > { %7410 = vmatprep.mubr.msk.bf16.mxu0 %vm3037_vm13, %v9673_v58  ;;  %5506 = vmatpush1.bf16.msra.mxu0 %v8102_v25  ;;  %v8171_v25 = vld [vmem:[%s10953_s1 + $0xd98] ss:$12 sps:$4 sm:$0xff]  }
 0xa12   : > { %5507 = vmatprep.subr.bf16.mxu0 %v8107_v20  ;;  %v8176_v20 = vld [vmem:[%s10953_s1 + $0xdb4] ss:$12 sps:$4 sm:$0xff]  }
 0xa15   : > { %5508 = vmatpush1.bf16.msra.mxu0 %v8105_v22  ;;  %v8174_v22 = vld [vmem:[%s10953_s1 + $0xdb0] ss:$12 sps:$4 sm:$0xff]  }
 0xa16   : > { %5509 = vmatprep.subr.bf16.mxu0 %v8110_v23  ;;  %v8179_v23 = vld [vmem:[%s10953_s1 + $0xdcc] ss:$12 sps:$4 sm:$0xff]  }
 0xa18   : > { %5211 = vmatmul.mubr.bf16.gmra.mrb[160].mxu0 %v9668_v37 }
 0xa19   : > { %7411 = vmatprep.mubr.msk.bf16.mxu0 %vm3037_vm13, %v10025_v31  ;;  %5510 = vmatpush1.bf16.msra.mxu0 %v8108_v49  ;;  %v8177_v49 = vld [vmem:[%s10953_s1 + $0xdc8] ss:$12 sps:$4 sm:$0xff]  }
 0xa1a   : > { %5511 = vmatprep.subr.bf16.mxu0 %v8113_v14  ;;  %v8183_v14 = vld [vmem:[%s10953_s1 + $0xde4] ss:$12 sps:$4 sm:$0xff]  }
 0xa1d   : > { %5512 = vmatpush1.bf16.msra.mxu0 %v8111_v43  ;;  %v8181_v43 = vld [vmem:[%s10953_s1 + $0xde0] ss:$12 sps:$4 sm:$0xff]  }
 0xa1e   : > { %5513 = vmatprep.subr.bf16.mxu0 %v8116_v17  ;;  %v8187_v17 = vld [vmem:[%s10953_s1 + $0xdfc] ss:$12 sps:$4 sm:$0xff]  }
 0xa20   : > { %5221 = vmatmul.mubr.bf16.gmra.mrb[164].mxu0 %v10044_v6 }
 0xa21   : > { %5514 = vmatpush1.bf16.msra.mxu0 %v8114_v62  ;;  %7445 = vmatprep.mubr.msk.bf16.mxu0 %vm3037_vm13, %v9658_v44  ;;  %v8185_v62 = vld [vmem:[%s10953_s1 + $0xdf8] ss:$12 sps:$4 sm:$0xff]  }
 0xa22   : > { %5515 = vmatprep.subr.bf16.mxu0 %v8119_v42  ;;  %v8191_v42 = vld [vmem:[%s10953_s1 + $0xe14] ss:$12 sps:$4 sm:$0xff]  }
 0xa25   : > { %5516 = vmatpush1.bf16.msra.mxu0 %v8117_v7  ;;  %v8189_v7 = vld [vmem:[%s10953_s1 + $0xe10] ss:$12 sps:$4 sm:$0xff]  }
 0xa26   : > { %5517 = vmatprep.subr.bf16.mxu0 %v8122_v12  ;;  %v8195_v12 = vld [vmem:[%s10953_s1 + $0xe2c] ss:$12 sps:$4 sm:$0xff]  }
 0xa29   : > { %5518 = vmatpush1.bf16.msra.mxu0 %v8120_v36  ;;  %v8193_v36 = vld [vmem:[%s10953_s1 + $0xe28] ss:$12 sps:$4 sm:$0xff]  }
 0xa2a   : > { %5519 = vmatprep.subr.bf16.mxu0 %v8125_v5  ;;  %v8199_v5 = vld [vmem:[%s10953_s1 + $0xe44] ss:$12 sps:$4 sm:$0xff]  }
 0xa2d   : > { %5520 = vmatpush1.bf16.msra.mxu0 %v8123_v51  ;;  %v8197_v51 = vld [vmem:[%s10953_s1 + $0xe40] ss:$12 sps:$4 sm:$0xff]  }
 0xa2e   : > { %5521 = vmatprep.subr.bf16.mxu0 %v8128_v1  ;;  %v8203_v1 = vld [vmem:[%s10953_s1 + $0xe5c] ss:$12 sps:$4 sm:$0xff]  }
 0xa31   : > { %5522 = vmatpush1.bf16.msra.mxu0 %v8126_v29  ;;  %v8201_v29 = vld [vmem:[%s10953_s1 + $0xe58] ss:$12 sps:$4 sm:$0xff]  }
 0xa32   : > { %5523 = vmatprep.subr.bf16.mxu0 %v8131_v57  ;;  %v8206_v57 = vld [vmem:[%s10953_s1 + $0xe74] ss:$12 sps:$4 sm:$0xff]  }
 0xa35   : > { %5524 = vmatpush1.bf16.msra.mxu0 %v8129_v11 }
 0xa36   : > { %5889 = vmatprep.subr.bf16.mxu0 %v8134_v59 }
 0xa38   : > { %5538 = vmatmul.mubr.bf16.vlgmr.msra.gmra.mrb[168].mxu0 %v9656_v48 }
 0xa39   : > { %7446 = vmatprep.mubr.msk.bf16.mxu0 %vm3037_vm13, %v9673_v58  ;;  %5890 = vmatpush1.bf16.msra.mxu0 %v8132_v28 }
 0xa3a   : > { %5891 = vmatprep.subr.bf16.mxu0 %v8137_v18  ;;  %v8204_v18 = vld [vmem:[%s10953_s1 + $0xe70] ss:$12 sps:$4 sm:$0xff]  }
 0xa3d   : > { %5892 = vmatpush1.bf16.msra.mxu0 %v8135_v24 }
 0xa3e   : > { %5893 = vmatprep.subr.bf16.mxu0 %v8140_v0 }
 0xa40   : > { %5548 = vmatmul.mubr.bf16.gmra.mrb[172].mxu0 %v9668_v37 }
 0xa41   : > { %7447 = vmatprep.mubr.msk.bf16.mxu0 %vm3037_vm13, %v10025_v31  ;;  %5894 = vmatpush1.bf16.msra.mxu0 %v8138_v30  ;;  %v8209_v30 = vld [vmem:[%s10953_s1 + $0xe8c] ss:$12 sps:$4 sm:$0xff]  }
 0xa42   : > { %5895 = vmatprep.subr.bf16.mxu0 %v8143_v33  ;;  %v8207_v33 = vld [vmem:[%s10953_s1 + $0xe88] ss:$12 sps:$4 sm:$0xff]  }
 0xa45   : > { %5896 = vmatpush1.bf16.msra.mxu0 %v8141_v15 }
 0xa46   : > { %5897 = vmatprep.subr.bf16.mxu0 %v8146_v27  ;;  %v8210_v27 = vld [vmem:[%s10953_s1 + $0x14d0] ss:$12 sps:$4 sm:$0xff]  }
 0xa48   : > { %5558 = vmatmul.mubr.bf16.gmra.mrb[176].mxu0 %v10044_v6 }
 0xa49   : > { %5898 = vmatpush1.bf16.msra.mxu0 %v8144_v21  ;;  %7476 = vmatprep.mubr.msk.bf16.mxu0 %vm4058_vm14, %v9896_v50 }
 0xa4a   : > { %5899 = vmatprep.subr.bf16.mxu0 %v8149_v56 }
 0xa4d   : > { %5900 = vmatpush1.bf16.msra.mxu0 %v8147_v40 }
 0xa4e   : > { %5901 = vmatprep.subr.bf16.mxu0 %v8152_v3 }
 0xa51   : > { %5902 = vmatpush1.bf16.msra.mxu0 %v8150_v41 }
 0xa52   : > { %5903 = vmatprep.subr.bf16.mxu0 %v8155_v38 }
 0xa55   : > { %5904 = vmatpush1.bf16.msra.mxu0 %v8153_v32 }
 0xa56   : > { %5905 = vmatprep.subr.bf16.mxu0 %v8158_v52 }
 0xa59   : > { %5906 = vmatpush1.bf16.msra.mxu0 %v8156_v46 }
 0xa5a   : > { %5907 = vmatprep.subr.bf16.mxu0 %v8161_v8 }
 0xa5d   : > { %5908 = vmatpush1.bf16.msra.mxu0 %v8159_v47 }
 0xa5e   : > { %5909 = vmatprep.subr.bf16.mxu0 %v8164_v45 }
 0xa61   : > { %5910 = vmatpush1.bf16.msra.mxu0 %v8162_v35 }
 0xa62   : > { %5911 = vmatprep.subr.bf16.mxu0 %v8167_v39 }
 0xa65   : > { %5912 = vmatpush1.bf16.msra.mxu0 %v8165_v26 }
 0xa66   : > { %6303 = vmatprep.subr.bf16.mxu0 %v8170_v16 }
 0xa68   : > { %5922 = vmatmul.mubr.bf16.vlgmr.msra.gmra.mrb[180].mxu0 %v9894_v54 }
 0xa69   : > { %7477 = vmatprep.mubr.msk.bf16.mxu0 %vm4058_vm14, %v9900_v13  ;;  %6304 = vmatpush1.bf16.msra.mxu0 %v8168_v63 }
 0xa6a   : > { %6305 = vmatprep.subr.bf16.mxu0 %v8173_v55 }
 0xa6d   : > { %6306 = vmatpush1.bf16.msra.mxu0 %v8171_v25 }
 0xa6e   : > { %6307 = vmatprep.subr.bf16.mxu0 %v8176_v20 }
 0xa70   : > { %5932 = vmatmul.mubr.bf16.gmra.mrb[184].mxu0 %v9905_v61 }
 0xa71   : > { %6308 = vmatpush1.bf16.msra.mxu0 %v8174_v22  ;;  %7528 = vmatprep.mubr.msk.bf16.mxu0 %vm4058_vm14, %v9896_v50  ;;  %v8211_v22 = vld [vmem:[%s10953_s1 + $0x870] ss:$12 sps:$4 sm:$0xff]  }
 0xa72   : > { %6309 = vmatprep.subr.bf16.mxu0 %v8179_v23 }
 0xa75   : > { %6310 = vmatpush1.bf16.msra.mxu0 %v8177_v49 }
 0xa76   : > { %6311 = vmatprep.subr.bf16.mxu0 %v8183_v14 }
 0xa79   : > { %6312 = vmatpush1.bf16.msra.mxu0 %v8181_v43  ;;  %v8212_v43 = vld [vmem:[%s10953_s1 + $0x888] ss:$12 sps:$4 sm:$0xff]  }
 0xa7a   : > { %6313 = vmatprep.subr.bf16.mxu0 %v8187_v17 }
 0xa7d   : > { %6314 = vmatpush1.bf16.msra.mxu0 %v8185_v62 }
 0xa7e   : > { %6315 = vmatprep.subr.bf16.mxu0 %v8191_v42 }
 0xa81   : > { %6316 = vmatpush1.bf16.msra.mxu0 %v8189_v7 }
 0xa82   : > { %6317 = vmatprep.subr.bf16.mxu0 %v8195_v12  ;;  %v8213_v12 = vld [vmem:[%s10953_s1 + $0x8a0] ss:$12 sps:$4 sm:$0xff]  }
 0xa85   : > { %6318 = vmatpush1.bf16.msra.mxu0 %v8193_v36 }
 0xa86   : > { %6319 = vmatprep.subr.bf16.mxu0 %v8199_v5 }
 0xa89   : > { %6320 = vmatpush1.bf16.msra.mxu0 %v8197_v51 }
 0xa8a   : > { %6321 = vmatprep.subr.bf16.mxu0 %v8203_v1 }
 0xa8b   : > { %v4170_v11 = vpop.f32.mrb[136].mxu0 }
 0xa8c   : > { %v7619_v59 = vpop.f32.mrb[137].mxu0 }
 0xa8d   : > { %v4173_v28 = vpop.f32.mrb[138].mxu0  ;;  %6322 = vmatpush1.bf16.msra.mxu0 %v8201_v29 }
 0xa8e   : > { %v4177_v24 = vpack.c.bf16 %v4173_v28, %v4170_v11  ;;  %6323 = vmatprep.subr.bf16.mxu0 %v8206_v57  ;;  %v7620_v0 = vpop.f32.mrb[139].mxu0  ;;  %v8214_v57 = vld [vmem:[%s10953_s1 + $0x8b8] ss:$12 sps:$4 sm:$0xff]   ;;  %v8215_v11 = vld [vmem:[%s10953_s1 + $0x8d0] ss:$12 sps:$4 sm:$0xff]  }
 0xa90   : > { %7634 = vmatmul.mubr.msk.bf16.vlgmr.msra.gmra.mrb[124].mxu1 %vm3526_vm11, %v4177_v24 }
 0xa91   : > { %7638 = vmatpush3.bf16.msra.mxu1 %v9915_v60  ;;  %6324 = vmatpush1.bf16.msra.mxu0 %v8204_v18 }
 0xa92   : > { %7639 = vmatprep.subr.bf16.mxu1 %v8390_v53  ;;  %6325 = vmatprep.subr.bf16.mxu0 %v8209_v30 }
 0xa93   : > { %7641 = vmatprep.mubr.msk.bf16.mxu1 %vm8393_vm6, %v8390_v53  ;;  %v10333_v15 = vpop.f32.mrb[140].mxu0 }
 0xa94   : > { %v7667_v21 = vpop.f32.mrb[141].mxu0 }
 0xa95   : > { %7640 = vmatpush3.bf16.msra.mxu1 %v9920_v34  ;;  %6326 = vmatpush1.bf16.msra.mxu0 %v8207_v33  ;;  %v10339_v60 = vpop.f32.mrb[142].mxu0 }
 0xa96   : > { %v4469_v56 = vpack.c.bf16 %v10339_v60, %v10333_v15  ;;  %v7668_v40 = vpop.f32.mrb[143].mxu0  ;;  %7645 = vmatprep.subr.bf16.mxu1 %v8390_v53  ;;  %v8226_v15 = vld [vmem:[%s10953_s1 + $0x9e0] ss:$12 sps:$4 sm:$0xff]   ;;  %v8227_v60 = vld [vmem:[%s10953_s1 + $0x9f8] ss:$12 sps:$4 sm:$0xff]  }
 0xa98   : > { %7642 = vmatmul.mubr.msk.bf16.vlgmr.msra.gmra.mrb[128].mxu1 %vm4129_vm15, %v8210_v27  ;;  %6336 = vmatmul.mubr.bf16.vlgmr.msra.gmra.mrb[188].mxu0 %v9894_v54 }
 0xa99   : > { %7529 = vmatprep.mubr.msk.bf16.mxu0 %vm4058_vm14, %v9900_v13  ;;  %7657 = vmatprep.mubr.msk.bf16.mxu1 %vm8393_vm6, %v8390_v53 }
 0xa9a   : > { %7646 = vmatpush3.bf16.msra.mxu1 %v8211_v22 }
 0xa9b   : > { %7647 = vmatprep.subr.bf16.mxu1 %v8390_v53 }
 0xa9e   : > { %7648 = vmatpush3.bf16.msra.mxu1 %v8212_v43 }
 0xa9f   : > { %7649 = vmatprep.subr.bf16.mxu1 %v8390_v53 }
 0xaa0   : > { %6346 = vmatmul.mubr.bf16.gmra.mrb[192].mxu0 %v9905_v61 }
 0xaa1   : > { %6693 = vmatprep.mubr.bf16.mxu0 %v8389_v2 }
 0xaa2   : > { %7650 = vmatpush3.bf16.msra.mxu1 %v8213_v12 }
 0xaa3   : > { %7651 = vmatprep.subr.bf16.mxu1 %v8390_v53 }
 0xaa6   : > { %7652 = vmatpush3.bf16.msra.mxu1 %v8214_v57  ;;  %v10421_v57 = vld [vmem:[%s10954_s2 + $0x6] ss:$8 sm:$0x7] }
 0xaa7   : > { %7653 = vmatprep.subr.bf16.mxu1 %v8390_v53 }
 0xaaa   : > { %7654 = vmatpush3.bf16.msra.mxu1 %v8215_v11 }
 0xaab   : > { %7655 = vmatprep.subr.bf16.mxu1 %v8390_v53 }
 0xabb   : > { %v10352_v34 = vpop.f32.mrb[144].mxu0 }
 0xabc   : > { %v10354_v3 = vpop.f32.mrb[145].mxu0  ;;  %v5300_v38 = vrot.slane %v10352_v34, 7 }
 0xabd   : > { %v4849_v41 = vpop.f32.mrb[146].mxu0  ;;  %v5301_v46 = vrot.slane %v10354_v3, 7 }
 0xabe   : > { %v5303_v32 = vrot.slane %v4849_v41, 7  ;;  %v4851_v52 = vpop.f32.mrb[147].mxu0  ;;  %v5342_v11 = vsel %vm583_vm7, 0.0, %v5300_v38 }
 0xabf   : > { %v5305_v8 = vrot.slane %v4851_v52, 7 }
 0xac0   : > { %v10361_v47 = vsel %vm583_vm7, %v5300_v38, %v5303_v32 }
 0xac1   : > { %v10366_v45 = vsel %vm583_vm7, %v5301_v46, %v5305_v8 }
 0xac3   : > { %v4855_v35 = vpop.f32.mrb[148].mxu0 }
 0xac4   : > { %v5309_v39 = vrot.slane %v4855_v35, 7  ;;  %v4857_v26 = vpop.f32.mrb[149].mxu0 }
 0xac5   : > { %v5311_v16 = vrot.slane %v4857_v26, 7  ;;  %v4859_v63 = vpop.f32.mrb[150].mxu0 }
 0xac6   : > { %v5315_v55 = vrot.slane %v4859_v63, 7  ;;  %v4861_v25 = vpop.f32.mrb[151].mxu0  ;;  %v10369_v20 = vsel %vm583_vm7, %v5303_v32, %v5309_v39 }
 0xac7   : > { %v5317_v23 = vrot.slane %v4861_v25, 7  ;;  %v10375_v49 = vsel %vm583_vm7, %v5305_v8, %v5311_v16  ;;  %v8216_v8 = vld [vmem:[%s10953_s1 + $0x8e8] ss:$12 sps:$4 sm:$0xff]  }
 0xac8   : > { %v10378_v14 = vsel %vm583_vm7, %v5309_v39, %v5315_v55  ;;  %7656 = vmatpush3.bf16.msra.mxu1 %v8216_v8 }
 0xac9   : > { %v10384_v17 = vsel %vm583_vm7, %v5311_v16, %v5317_v23  ;;  %7669 = vmatprep.subr.bf16.mxu1 %v8390_v53 }
 0xacb   : > { %v4865_v62 = vpop.f32.mrb[152].mxu0 }
 0xacc   : > { %v5321_v42 = vrot.slane %v4865_v62, 7  ;;  %v4867_v7 = vpop.f32.mrb[153].mxu0 }
 0xacd   : > { %v5323_v36 = vrot.slane %v4867_v7, 7  ;;  %v4869_v5 = vpop.f32.mrb[154].mxu0 }
 0xace   : > { %v4870_v51 = vpop.f32.mrb[155].mxu0  ;;  %v10392_v1 = vsel %vm583_vm7, %v5315_v55, %v5321_v42 }
 0xacf   : > { %v10395_v29 = vsel %vm583_vm7, %v5317_v23, %v5323_v36 }
 0xae3   : > { %v5202_v59 = vpop.f32.mrb[156].mxu0 }
 0xae4   : > { %v5204_v28 = vpop.f32.mrb[157].mxu0  ;;  %v5637_v24 = vrot.slane %v5202_v59, 1 }
 0xae5   : > { %v5206_v18 = vpop.f32.mrb[158].mxu0  ;;  %v5640_v33 = vrot.slane %v5204_v28, 1 }
 0xae6   : > { %v5638_v0 = vrot.slane %v5206_v18, 1  ;;  %v5208_v30 = vpop.f32.mrb[159].mxu0  ;;  %v5703_v18 = vrot.slane %v10421_v57, %v8766_v9 }
 0xae7   : > { %v5641_v27 = vrot.slane %v5208_v30, 1 }
 0xae8   : > { %v5639_v21 = vsel %vm778_vm8, %v5637_v24, %v5638_v0  ;;  %v5343_v24 = vsel %vm583_vm7, 0.0, %v5301_v46 }
 0xae9   : > { %v5642_v40 = vsel %vm778_vm8, %v5640_v33, %v5641_v27  ;;  %v5707_v33 = vrot.slane %v10421_v57, %v8778_v19 }
 0xaeb   : > { %v5212_v41 = vpop.f32.mrb[160].mxu0 }
 0xaec   : > { %v5646_v32 = vrot.slane %v5212_v41, 1  ;;  %v5214_v52 = vpop.f32.mrb[161].mxu0 }
 0xaed   : > { %v5648_v35 = vrot.slane %v5214_v52, 1  ;;  %v5216_v39 = vpop.f32.mrb[162].mxu0 }
 0xaee   : > { %v5652_v26 = vrot.slane %v5216_v39, 1  ;;  %v5218_v16 = vpop.f32.mrb[163].mxu0  ;;  %v5647_v63 = vsel %vm778_vm8, %v5638_v0, %v5646_v32 }
 0xaef   : > { %v5654_v55 = vrot.slane %v5218_v16, 1  ;;  %v5649_v25 = vsel %vm778_vm8, %v5641_v27, %v5648_v35 }
 0xaf0   : > { %v5653_v22 = vsel %vm778_vm8, %v5646_v32, %v5652_v26 }
 0xaf1   : > { %v5655_v23 = vsel %vm778_vm8, %v5648_v35, %v5654_v55 }
 0xaf3   : > { %v5222_v43 = vpop.f32.mrb[164].mxu0 }
 0xaf4   : > { %v5658_v62 = vrot.slane %v5222_v43, 1  ;;  %v5224_v42 = vpop.f32.mrb[165].mxu0 }
 0xaf5   : > { %v5660_v7 = vrot.slane %v5224_v42, 1  ;;  %v5226_v12 = vpop.f32.mrb[166].mxu0 }
 0xaf6   : > { %v5227_v36 = vpop.f32.mrb[167].mxu0  ;;  %v5659_v5 = vsel %vm778_vm8, %v5652_v26, %v5658_v62 }
 0xaf7   : > { %v5661_v51 = vsel %vm778_vm8, %v5654_v55, %v5660_v7 }
 0xb0b   : > { %v5539_v59 = vpop.f32.mrb[168].mxu0 }
 0xb0c   : > { %v5540_v28 = vadd.f32 %v5539_v59, %v5342_v11  ;;  %v5541_v0 = vpop.f32.mrb[169].mxu0 }
 0xb0d   : > { %v5542_v30 = vadd.f32 %v5541_v0, %v5343_v24  ;;  %v5543_v27 = vpop.f32.mrb[170].mxu0  ;;  %v5679_v24 = vsel %vm778_vm8, %v5658_v62, 0.0 }
 0xb0e   : > { %v5682_v41 = vadd.f32 %v5639_v21, %v5540_v28  ;;  %v5544_v34 = vadd.f32 %v5543_v27, %v10361_v47  ;;  %v5545_v32 = vpop.f32.mrb[171].mxu0 }
 0xb0f   : > { %v5683_v3 = vadd.f32 %v5642_v40, %v5542_v30  ;;  %v5546_v38 = vadd.f32 %v5545_v32, %v10366_v45 }
 0xb10   : > { %v5715_v46 = vadd.f32 %v5703_v18, %v5682_v41  ;;  %v5685_v52 = vadd.f32 %v5647_v63, %v5544_v34 }
 0xb11   : > { %v5716_v8 = vadd.f32 %v5707_v33, %v5683_v3  ;;  %v5686_v35 = vadd.f32 %v5649_v25, %v5546_v38 }
 0xb12   : > { %5730 = vst [vmem:[%s10438_s26] sm:$0xff] %v5715_v46  ;;  %v5718_v21 = vadd.f32 %v5703_v18, %v5685_v52 }
 0xb13   : > { %5731 = vst [vmem:[%s10438_s26 + $0x8] sm:$0xff] %v5716_v8  ;;  %v5719_v47 = vadd.f32 %v5707_v33, %v5686_v35  ;;  %v5549_v39 = vpop.f32.mrb[172].mxu0 }
 0xb14   : > { %5733 = vst [vmem:[%s10438_s26 + $0x18] sm:$0xff] %v5718_v21  ;;  %v5550_v26 = vadd.f32 %v5549_v39, %v10369_v20  ;;  %v5551_v16 = vpop.f32.mrb[173].mxu0 }
 0xb15   : > { %5734 = vst [vmem:[%s10438_s26 + $0x20] sm:$0xff] %v5719_v47  ;;  %v5552_v40 = vadd.f32 %v5551_v16, %v10375_v49  ;;  %v5553_v45 = vpop.f32.mrb[174].mxu0 }
 0xb16   : > { %v5688_v55 = vadd.f32 %v5653_v22, %v5550_v26  ;;  %v5554_v63 = vadd.f32 %v5553_v45, %v10378_v14  ;;  %v5555_v25 = vpop.f32.mrb[175].mxu0 }
 0xb17   : > { %v5689_v43 = vadd.f32 %v5655_v23, %v5552_v40  ;;  %v5556_v42 = vadd.f32 %v5555_v25, %v10384_v17 }
 0xb18   : > { %v5721_v12 = vadd.f32 %v5703_v18, %v5688_v55  ;;  %v5691_v36 = vadd.f32 %v5659_v5, %v5554_v63  ;;  %v5680_v5 = vsel %vm778_vm8, %v5660_v7, 0.0 }
 0xb19   : > { %v5722_v11 = vadd.f32 %v5707_v33, %v5689_v43  ;;  %v5692_v59 = vadd.f32 %v5661_v51, %v5556_v42 }
 0xb1a   : > { %5736 = vst [vmem:[%s10438_s26 + $0x30] sm:$0xff] %v5721_v12  ;;  %v5724_v20 = vadd.f32 %v5703_v18, %v5691_v36 }
 0xb1b   : > { %5737 = vst [vmem:[%s10438_s26 + $0x38] sm:$0xff] %v5722_v11  ;;  %v5725_v28 = vadd.f32 %v5707_v33, %v5692_v59  ;;  %v5559_v49 = vpop.f32.mrb[176].mxu0  ;;  %v8217_v11 = vld [vmem:[%s10953_s1 + $0x900] ss:$12 sps:$4 sm:$0xff]  }
 0xb1c   : > { %5739 = vst [vmem:[%s10438_s26 + $0x48] sm:$0xff] %v5724_v20  ;;  %v5560_v22 = vadd.f32 %v5559_v49, %v10392_v1  ;;  %v5561_v14 = vpop.f32.mrb[177].mxu0 }
 0xb1d   : > { %5740 = vst [vmem:[%s10438_s26 + $0x50] sm:$0xff] %v5725_v28  ;;  %v5562_v17 = vadd.f32 %v5561_v14, %v10395_v29  ;;  %v5563_v23 = vpop.f32.mrb[178].mxu0  ;;  %v8218_v14 = vld [vmem:[%s10953_s1 + $0x918] ss:$12 sps:$4 sm:$0xff]  }
 0xb1e   : > { %v5694_v51 = vadd.f32 %v5679_v24, %v5560_v22  ;;  %v5564_v0 = vpop.f32.mrb[179].mxu0 }
 0xb1f   : > { %v5695_v30 = vadd.f32 %v5680_v5, %v5562_v17  ;;  %v8219_v0 = vld [vmem:[%s10953_s1 + $0x930] ss:$12 sps:$4 sm:$0xff]  }
 0xb20   : > { %v5727_v27 = vadd.f32 %v5703_v18, %v5694_v51 }
 0xb21   : > { %v5728_v41 = vadd.f32 %v5707_v33, %v5695_v30 }
 0xb22   : > { %5742 = vst [vmem:[%s10438_s26 + $0x60] sm:$0xff] %v5727_v27  ;;  %v8220_v27 = vld [vmem:[%s10953_s1 + $0x948] ss:$12 sps:$4 sm:$0xff]  }
 0xb23   : > { %5743 = vst [vmem:[%s10438_s26 + $0x68] sm:$0xff] %v5728_v41  ;;  %v8221_v41 = vld [vmem:[%s10953_s1 + $0x960] ss:$12 sps:$4 sm:$0xff]  }
 0xb3b   : > { %v5923_v34 = vpop.f32.mrb[180].mxu0 }
 0xb3c   : > { %v5925_v32 = vpop.f32.mrb[181].mxu0  ;;  %v6165_v1 = vrot.slane %v5923_v34, 7  ;;  %v8222_v34 = vld [vmem:[%s10953_s1 + $0x978] ss:$12 sps:$4 sm:$0xff]  }
 0xb3d   : > { %v5927_v3 = vpop.f32.mrb[182].mxu0  ;;  %v6166_v62 = vrot.slane %v5925_v32, 7  ;;  %v8223_v32 = vld [vmem:[%s10953_s1 + $0x998] ss:$12 sps:$4 sm:$0xff]  }
 0xb3e   : > { %v6167_v38 = vrot.slane %v5927_v3, 7  ;;  %v5929_v46 = vpop.f32.mrb[183].mxu0  ;;  %v6181_v40 = vsel %vm583_vm7, 0.0, %v6165_v1  ;;  %v8224_v3 = vld [vmem:[%s10953_s1 + $0x9b0] ss:$12 sps:$4 sm:$0xff]  }
 0xb3f   : > { %v6169_v52 = vrot.slane %v5929_v46, 7  ;;  %v6182_v25 = vsel %vm583_vm7, 0.0, %v6166_v62  ;;  %v8230_v46 = vld [vmem:[%s10953_s1 + $0xa40] ss:$12 sps:$4 sm:$0xff]  }
 0xb40   : > { %v6168_v29 = vsel %vm583_vm7, %v6165_v1, %v6167_v38  ;;  %v8225_v1 = vld [vmem:[%s10953_s1 + $0x9c8] ss:$12 sps:$4 sm:$0xff]  }
 0xb41   : > { %v6170_v8 = vsel %vm583_vm7, %v6166_v62, %v6169_v52  ;;  %v8231_v62 = vld [vmem:[%s10953_s1 + $0xa58] ss:$12 sps:$4 sm:$0xff]  }
 0xb43   : > { %v5933_v7 = vpop.f32.mrb[184].mxu0 }
 0xb44   : > { %v6171_v35 = vrot.slane %v5933_v7, 7  ;;  %v5935_v21 = vpop.f32.mrb[185].mxu0  ;;  %v8235_v7 = vld [vmem:[%s10953_s1 + $0xba8] ss:$12 sps:$4 sm:$0xff]  }
 0xb45   : > { %v6173_v47 = vrot.slane %v5935_v21, 7  ;;  %v5937_v18 = vpop.f32.mrb[186].mxu0  ;;  %v8236_v21 = vld [vmem:[%s10953_s1 + $0xbc0] ss:$12 sps:$4 sm:$0xff]  }
 0xb46   : > { %v5938_v33 = vpop.f32.mrb[187].mxu0  ;;  %v6172_v39 = vsel %vm583_vm7, %v6167_v38, %v6171_v35  ;;  %v8229_v38 = vld [vmem:[%s10953_s1 + $0xa28] ss:$12 sps:$4 sm:$0xff]   ;;  %v8292_v35 = vld [vmem:[%s10953_s1 + $0x1140] ss:$12 sps:$4 sm:$0xff]  }
 0xb47   : > { %v6174_v26 = vsel %vm583_vm7, %v6169_v52, %v6173_v47  ;;  %v8232_v52 = vld [vmem:[%s10953_s1 + $0xa70] ss:$12 sps:$4 sm:$0xff]   ;;  %v8298_v33 = vld [vmem:[%s10953_s1 + $0x1158] ss:$12 sps:$4 sm:$0xff]  }
 0xb48   : > { %v8294_v47 = vld [vmem:[%s10953_s1 + $0x1144] ss:$12 sps:$4 sm:$0xff]   ;;  %v8300_v18 = vld [vmem:[%s10953_s1 + $0x115c] ss:$12 sps:$4 sm:$0xff]  }
 0xb49   : > { %6661 = vmatprep.subr.bf16.mxu0 %v8294_v47  ;;  %v8277_v47 = vld [vmem:[%s10953_s1 + $0xf60] ss:$12 sps:$4 sm:$0xff]  }
 0xb4a   : > { %6662 = vmatpush1.bf16.msra.mxu0 %v8292_v35  ;;  %v8271_v35 = vld [vmem:[%s10953_s1 + $0xf30] ss:$12 sps:$4 sm:$0xff]  }
 0xb4b   : > { %6663 = vmatprep.subr.bf16.mxu0 %v8300_v18  ;;  %v8282_v18 = vld [vmem:[%s10953_s1 + $0xf7c] ss:$12 sps:$4 sm:$0xff]  }
 0xb4e   : > { %6664 = vmatpush1.bf16.msra.mxu0 %v8298_v33  ;;  %v8280_v33 = vld [vmem:[%s10953_s1 + $0xf78] ss:$12 sps:$4 sm:$0xff]  }
 0xb6b   : > { %v4316_v16 = vpop.f32.mrb[128].mxu1  ;;  %v6337_v45 = vpop.f32.mrb[188].mxu0 }
 0xb6c   : > { %v10464_v55 = vadd.f32 %v6337_v45, %v6181_v40  ;;  %v7643_v63 = vpop.f32.mrb[129].mxu1  ;;  %v6339_v43 = vpop.f32.mrb[189].mxu0  ;;  %v8238_v40 = vld [vmem:[%s10953_s1 + $0xbf0] ss:$12 sps:$4 sm:$0xff]   ;;  %v8312_v45 = vld [vmem:[%s10953_s1 + $0x118c] ss:$12 sps:$4 sm:$0xff]  }
 0xb6d   : > { %v10467_v42 = vadd.f32 %v6339_v43, %v6182_v25  ;;  %v4319_v12 = vpop.f32.mrb[130].mxu1  ;;  %v6341_v36 = vpop.f32.mrb[190].mxu0  ;;  %v8310_v63 = vld [vmem:[%s10953_s1 + $0x1188] ss:$12 sps:$4 sm:$0xff]   ;;  %v8318_v43 = vld [vmem:[%s10953_s1 + $0x11a4] ss:$12 sps:$4 sm:$0xff]  }
 0xb6e   : > { %v4323_v59 = vpack.c.bf16 %v4319_v12, %v4316_v16  ;;  %v10472_v20 = vadd.f32 %v6341_v36, %v6168_v29  ;;  %v6343_v28 = vpop.f32.mrb[191].mxu0  ;;  %v7644_v49 = vpop.f32.mrb[131].mxu1  ;;  %v8233_v29 = vld [vmem:[%s10953_s1 + $0xb78] ss:$12 sps:$4 sm:$0xff]   ;;  %v8304_v16 = vld [vmem:[%s10953_s1 + $0x1170] ss:$12 sps:$4 sm:$0xff]  }
 0xb6f   : > { %v10474_v22 = vadd.f32 %v6343_v28, %v6170_v8  ;;  %v8234_v8 = vld [vmem:[%s10953_s1 + $0xb90] ss:$12 sps:$4 sm:$0xff]   ;;  %v8239_v25 = vld [vmem:[%s10953_s1 + $0xc08] ss:$12 sps:$4 sm:$0xff]   ;;  %v8316_v12 = vld [vmem:[%s10953_s1 + $0x11a0] ss:$12 sps:$4 sm:$0xff]  }
 0xb70   : > { %7658 = vmatmul.mubr.msk.bf16.vlgmr.msra.gmra.mrb[124].mxu1 %vm3526_vm11, %v4323_v59  ;;  %v8240_v36 = vld [vmem:[%s10953_s1 + $0xc20] ss:$12 sps:$4 sm:$0xff]   ;;  %v8322_v59 = vld [vmem:[%s10953_s1 + $0x11b8] ss:$12 sps:$4 sm:$0xff]   ;;  %v8242_v49 = vld [vmem:[%s10953_s1 + $0xc50] ss:$12 sps:$4 sm:$0xff]  }
 0xb71   : > { %7670 = vmatpush3.bf16.msra.mxu1 %v8217_v11  ;;  %7681 = vmatprep.mubr.msk.bf16.mxu1 %vm8393_vm6, %v8390_v53  ;;  %v8324_v11 = vld [vmem:[%s10953_s1 + $0x11bc] ss:$12 sps:$4 sm:$0xff]   ;;  %v8241_v28 = vld [vmem:[%s10953_s1 + $0xc38] ss:$12 sps:$4 sm:$0xff]  }
 0xb72   : > { %7671 = vmatprep.subr.bf16.mxu1 %v8390_v53 }
 0xb73   : > { %v6347_v24 = vpop.f32.mrb[192].mxu0 }
 0xb74   : > { %v10483_v17 = vadd.f32 %v6347_v24, %v6172_v39  ;;  %v6349_v23 = vpop.f32.mrb[193].mxu0  ;;  %v8237_v39 = vld [vmem:[%s10953_s1 + $0xbd8] ss:$12 sps:$4 sm:$0xff]   ;;  %v8244_v24 = vld [vmem:[%s10953_s1 + $0xaa0] ss:$12 sps:$4 sm:$0xff]  }
 0xb75   : > { %7672 = vmatpush3.bf16.msra.mxu1 %v8218_v14  ;;  %v10485_v5 = vadd.f32 %v6349_v23, %v6174_v26  ;;  %v6351_v51 = vpop.f32.mrb[194].mxu0  ;;  %v8306_v26 = vld [vmem:[%s10953_s1 + $0x1174] ss:$12 sps:$4 sm:$0xff]   ;;  %v8245_v23 = vld [vmem:[%s10953_s1 + $0xab8] ss:$12 sps:$4 sm:$0xff]  }
 0xb76   : > { %v6352_v30 = vpop.f32.mrb[195].mxu0  ;;  %7673 = vmatprep.subr.bf16.mxu1 %v8390_v53  ;;  %6665 = vmatprep.subr.bf16.mxu0 %v8306_v26  ;;  %v8243_v14 = vld [vmem:[%s10953_s1 + $0xa88] ss:$12 sps:$4 sm:$0xff]   ;;  %v8283_v26 = vld [vmem:[%s10953_s1 + $0xf90] ss:$12 sps:$4 sm:$0xff]  }
 0xb77   : > { %6666 = vmatpush1.bf16.msra.mxu0 %v8304_v16  ;;  %v8330_v51 = vld [vmem:[%s10953_s1 + $0x11d4] ss:$12 sps:$4 sm:$0xff]   ;;  %v8246_v30 = vld [vmem:[%s10953_s1 + $0xad0] ss:$12 sps:$4 sm:$0xff]   ;;  %v8288_v16 = vld [vmem:[%s10953_s1 + $0xfac] ss:$12 sps:$4 sm:$0xff]  }
 0xb78   : > { %6667 = vmatprep.subr.bf16.mxu0 %v8312_v45  ;;  %v8291_v45 = vld [vmem:[%s10953_s1 + $0xfc4] ss:$12 sps:$4 sm:$0xff]  }
 0xb79   : > { %7674 = vmatpush3.bf16.msra.mxu1 %v8219_v0  ;;  %v8328_v0 = vld [vmem:[%s10953_s1 + $0x11d0] ss:$12 sps:$4 sm:$0xff]  }
 0xb7a   : > { %7675 = vmatprep.subr.bf16.mxu1 %v8390_v53 }
 0xb7b   : > { %6668 = vmatpush1.bf16.msra.mxu0 %v8310_v63  ;;  %v8289_v63 = vld [vmem:[%s10953_s1 + $0xfc0] ss:$12 sps:$4 sm:$0xff]  }
 0xb7c   : > { %6669 = vmatprep.subr.bf16.mxu0 %v8318_v43  ;;  %v8295_v43 = vld [vmem:[%s10953_s1 + $0xfd8] ss:$12 sps:$4 sm:$0xff]  }
 0xb7d   : > { %7676 = vmatpush3.bf16.msra.mxu1 %v8220_v27  ;;  %v8336_v27 = vld [vmem:[%s10953_s1 + $0x11ec] ss:$12 sps:$4 sm:$0xff]  }
 0xb7e   : > { %7677 = vmatprep.subr.bf16.mxu1 %v8390_v53 }
 0xb7f   : > { %6670 = vmatpush1.bf16.msra.mxu0 %v8316_v12  ;;  %v8303_v12 = vld [vmem:[%s10953_s1 + $0xff4] ss:$12 sps:$4 sm:$0xff]  }
 0xb80   : > { %6671 = vmatprep.subr.bf16.mxu0 %v8324_v11  ;;  %v8315_v11 = vld [vmem:[%s10953_s1 + $0x1024] ss:$12 sps:$4 sm:$0xff]  }
 0xb81   : > { %7678 = vmatpush3.bf16.msra.mxu1 %v8221_v41  ;;  %v8334_v41 = vld [vmem:[%s10953_s1 + $0x11e8] ss:$12 sps:$4 sm:$0xff]  }
 0xb82   : > { %7679 = vmatprep.subr.bf16.mxu1 %v8390_v53 }
 0xb83   : > { %6672 = vmatpush1.bf16.msra.mxu0 %v8322_v59  ;;  %v8313_v59 = vld [vmem:[%s10953_s1 + $0x1020] ss:$12 sps:$4 sm:$0xff]  }
 0xb84   : > { %6673 = vmatprep.subr.bf16.mxu0 %v8330_v51  ;;  %v8339_v51 = vld [vmem:[%s10953_s1 + $0x1084] ss:$12 sps:$4 sm:$0xff]  }
 0xb85   : > { %7680 = vmatpush3.bf16.msra.mxu1 %v8222_v34  ;;  %v8247_v34 = vld [vmem:[%s10953_s1 + $0xae8] ss:$12 sps:$4 sm:$0xff]  }
 0xb86   : > { %4872 = vmatprep.subr.bf16.mxu1 %v8389_v2 }
 0xb87   : > { %6674 = vmatpush1.bf16.msra.mxu0 %v8328_v0  ;;  %v4121_v0 = vld [vmem:[%s10954_s2 + $0x5] ss:$0 sm:$0xff] }
 0xb88   : > { %7682 = vmatmul.mubr.msk.bf16.vlgmr.msra.gmra.mrb[124].mxu1 %vm3526_vm11, %v4469_v56  ;;  %v8228_v56 = vld [vmem:[%s10953_s1 + $0xa10] ss:$12 sps:$4 sm:$0xff]   ;;  %6675 = vmatprep.subr.bf16.mxu0 %v8336_v27  ;;  %vm4570_vm11 = vcmp.le.s32.totalorder %v8652_v10, 6 }
 0xb89   : > { %4873 = vmatpush1.bf16.msra.mxu1 %v8223_v32  ;;  %7376 = vmatprep.mubr.msk.bf16.mxu1 %vm3037_vm13, %v9658_v44  ;;  %v8248_v32 = vld [vmem:[%s10953_s1 + $0xb00] ss:$12 sps:$4 sm:$0xff]  }
 0xb8a   : > { %4874 = vmatprep.subr.bf16.mxu1 %v8389_v2 }
 0xb8b   : > { %6676 = vmatpush1.bf16.msra.mxu0 %v8334_v41 }
 0xb8d   : > { %4875 = vmatpush1.bf16.msra.mxu1 %v8224_v3  ;;  %v8249_v3 = vld [vmem:[%s10953_s1 + $0xb18] ss:$12 sps:$4 sm:$0xff]  }
 0xb8e   : > { %4876 = vmatprep.subr.bf16.mxu1 %v8389_v2 }
 0xb91   : > { %4877 = vmatpush1.bf16.msra.mxu1 %v8225_v1  ;;  %v8250_v1 = vld [vmem:[%s10953_s1 + $0xb30] ss:$12 sps:$4 sm:$0xff]  }
 0xb92   : > { %4878 = vmatprep.subr.bf16.mxu1 %v8389_v2 }
 0xb95   : > { %4879 = vmatpush1.bf16.msra.mxu1 %v8226_v15  ;;  %v8252_v15 = vld [vmem:[%s10953_s1 + $0xb60] ss:$12 sps:$4 sm:$0xff]  }
 0xb96   : > { %4880 = vmatprep.subr.bf16.mxu1 %v8389_v2 }
 0xb99   : > { %4881 = vmatpush1.bf16.msra.mxu1 %v8227_v60  ;;  %v8255_v60 = vld [vmem:[%s10953_s1 + $0xea4] ss:$12 sps:$4 sm:$0xff]  }
 0xb9a   : > { %4882 = vmatprep.subr.bf16.mxu1 %v8389_v2 }
 0xb9d   : > { %4883 = vmatpush1.bf16.msra.mxu1 %v8228_v56  ;;  %v8253_v56 = vld [vmem:[%s10953_s1 + $0xea0] ss:$12 sps:$4 sm:$0xff]  }
 0xb9e   : > { %4884 = vmatprep.subr.bf16.mxu1 %v8389_v2 }
 0xba1   : > { %4885 = vmatpush1.bf16.msra.mxu1 %v8229_v38  ;;  %v8258_v38 = vld [vmem:[%s10953_s1 + $0xebc] ss:$12 sps:$4 sm:$0xff]  }
 0xba2   : > { %4886 = vmatprep.subr.bf16.mxu1 %v8389_v2 }
 0xba5   : > { %4887 = vmatpush1.bf16.msra.mxu1 %v8230_v46  ;;  %v8256_v46 = vld [vmem:[%s10953_s1 + $0xeb8] ss:$12 sps:$4 sm:$0xff]  }
 0xba6   : > { %4888 = vmatprep.subr.bf16.mxu1 %v8389_v2 }
 0xba9   : > { %4889 = vmatpush1.bf16.msra.mxu1 %v8231_v62  ;;  %v8261_v62 = vld [vmem:[%s10953_s1 + $0xed4] ss:$12 sps:$4 sm:$0xff]  }
 0xbaa   : > { %4890 = vmatprep.subr.bf16.mxu1 %v8389_v2 }
 0xbad   : > { %4891 = vmatpush1.bf16.msra.mxu1 %v8232_v52  ;;  %v8259_v52 = vld [vmem:[%s10953_s1 + $0xed0] ss:$12 sps:$4 sm:$0xff]  }
 0xbae   : > { %5229 = vmatprep.subr.bf16.mxu1 %v8389_v2 }
 0xbb0   : > { %4905 = vmatmul.mubr.bf16.vlgmr.msra.gmra.mrb[132].mxu1 %v9656_v48 }
 0xbb1   : > { %7377 = vmatprep.mubr.msk.bf16.mxu1 %vm3037_vm13, %v9673_v58  ;;  %5230 = vmatpush1.bf16.msra.mxu1 %v8233_v29  ;;  %v8267_v29 = vld [vmem:[%s10953_s1 + $0xf04] ss:$12 sps:$4 sm:$0xff]  }
 0xbb2   : > { %5231 = vmatprep.subr.bf16.mxu1 %v8389_v2 }
 0xbb5   : > { %5232 = vmatpush1.bf16.msra.mxu1 %v8234_v8  ;;  %v8265_v8 = vld [vmem:[%s10953_s1 + $0xf00] ss:$12 sps:$4 sm:$0xff]  }
 0xbb6   : > { %5233 = vmatprep.subr.bf16.mxu1 %v8389_v2 }
 0xbb8   : > { %4913 = vmatmul.mubr.bf16.gmra.mrb[136].mxu1 %v9668_v37 }
 0xbb9   : > { %7378 = vmatprep.mubr.msk.bf16.mxu1 %vm3037_vm13, %v10025_v31  ;;  %5234 = vmatpush1.bf16.msra.mxu1 %v8235_v7  ;;  %v8273_v7 = vld [vmem:[%s10953_s1 + $0xf34] ss:$12 sps:$4 sm:$0xff]  }
 0xbba   : > { %5235 = vmatprep.subr.bf16.mxu1 %v8389_v2 }
 0xbbd   : > { %5236 = vmatpush1.bf16.msra.mxu1 %v8236_v21  ;;  %v8279_v21 = vld [vmem:[%s10953_s1 + $0xf64] ss:$12 sps:$4 sm:$0xff]  }
 0xbbe   : > { %5237 = vmatprep.subr.bf16.mxu1 %v8389_v2 }
 0xbc0   : > { %4921 = vmatmul.mubr.bf16.gmra.mrb[140].mxu1 %v10044_v6 }
 0xbc1   : > { %5238 = vmatpush1.bf16.msra.mxu1 %v8237_v39  ;;  %7412 = vmatprep.mubr.msk.bf16.mxu1 %vm3037_vm13, %v9658_v44  ;;  %v8285_v39 = vld [vmem:[%s10953_s1 + $0xf94] ss:$12 sps:$4 sm:$0xff]  }
 0xbc2   : > { %5239 = vmatprep.subr.bf16.mxu1 %v8389_v2 }
 0xbc5   : > { %5240 = vmatpush1.bf16.msra.mxu1 %v8238_v40  ;;  %v8286_v40 = vld [vmem:[%s10953_s1 + $0xfa8] ss:$12 sps:$4 sm:$0xff]  }
 0xbc6   : > { %5241 = vmatprep.subr.bf16.mxu1 %v8389_v2 }
 0xbc9   : > { %5242 = vmatpush1.bf16.msra.mxu1 %v8239_v25  ;;  %v8297_v25 = vld [vmem:[%s10953_s1 + $0xfdc] ss:$12 sps:$4 sm:$0xff]  }
 0xbca   : > { %5243 = vmatprep.subr.bf16.mxu1 %v8389_v2 }
 0xbcd   : > { %5244 = vmatpush1.bf16.msra.mxu1 %v8240_v36  ;;  %v8301_v36 = vld [vmem:[%s10953_s1 + $0xff0] ss:$12 sps:$4 sm:$0xff]  }
 0xbce   : > { %5245 = vmatprep.subr.bf16.mxu1 %v8389_v2 }
 0xbd1   : > { %5246 = vmatpush1.bf16.msra.mxu1 %v8241_v28  ;;  %v8319_v28 = vld [vmem:[%s10953_s1 + $0x1038] ss:$12 sps:$4 sm:$0xff]  }
 0xbd2   : > { %5247 = vmatprep.subr.bf16.mxu1 %v8389_v2 }
 0xbd5   : > { %5248 = vmatpush1.bf16.msra.mxu1 %v8242_v49  ;;  %v8327_v49 = vld [vmem:[%s10953_s1 + $0x1054] ss:$12 sps:$4 sm:$0xff]  }
 0xbd6   : > { %5566 = vmatprep.subr.bf16.mxu1 %v8389_v2 }
 0xbd8   : > { %5262 = vmatmul.mubr.bf16.vlgmr.msra.gmra.mrb[144].mxu1 %v9656_v48 }
 0xbd9   : > { %7413 = vmatprep.mubr.msk.bf16.mxu1 %vm3037_vm13, %v9673_v58  ;;  %5567 = vmatpush1.bf16.msra.mxu1 %v8243_v14  ;;  %v8325_v14 = vld [vmem:[%s10953_s1 + $0x1050] ss:$12 sps:$4 sm:$0xff]  }
 0xbda   : > { %5568 = vmatprep.subr.bf16.mxu1 %v8389_v2 }
 0xbdd   : > { %5569 = vmatpush1.bf16.msra.mxu1 %v8244_v24  ;;  %v8333_v24 = vld [vmem:[%s10953_s1 + $0x106c] ss:$12 sps:$4 sm:$0xff]  }
 0xbde   : > { %5570 = vmatprep.subr.bf16.mxu1 %v8389_v2 }
 0xbe0   : > { %5270 = vmatmul.mubr.bf16.gmra.mrb[148].mxu1 %v9668_v37 }
 0xbe1   : > { %7414 = vmatprep.mubr.msk.bf16.mxu1 %vm3037_vm13, %v10025_v31  ;;  %5571 = vmatpush1.bf16.msra.mxu1 %v8245_v23  ;;  %v8331_v23 = vld [vmem:[%s10953_s1 + $0x1068] ss:$12 sps:$4 sm:$0xff]  }
 0xbe2   : > { %5572 = vmatprep.subr.bf16.mxu1 %v8389_v2 }
 0xbe5   : > { %5573 = vmatpush1.bf16.msra.mxu1 %v8246_v30 }
 0xbe6   : > { %5574 = vmatprep.subr.bf16.mxu1 %v8389_v2 }
 0xbe8   : > { %5278 = vmatmul.mubr.bf16.gmra.mrb[152].mxu1 %v10044_v6 }
 0xbe9   : > { %5575 = vmatpush1.bf16.msra.mxu1 %v8247_v34  ;;  %7448 = vmatprep.mubr.msk.bf16.mxu1 %vm3037_vm13, %v9658_v44  ;;  %v8251_v44 = vld [vmem:[%s10953_s1 + $0xb48] ss:$12 sps:$4 sm:$0xff]  }
 0xbea   : > { %5576 = vmatprep.subr.bf16.mxu1 %v8389_v2 }
 0xbed   : > { %5577 = vmatpush1.bf16.msra.mxu1 %v8248_v32 }
 0xbee   : > { %5578 = vmatprep.subr.bf16.mxu1 %v8389_v2 }
 0xbf1   : > { %5579 = vmatpush1.bf16.msra.mxu1 %v8249_v3 }
 0xbf2   : > { %5580 = vmatprep.subr.bf16.mxu1 %v8389_v2 }
 0xbf5   : > { %5581 = vmatpush1.bf16.msra.mxu1 %v8250_v1 }
 0xbf6   : > { %5582 = vmatprep.subr.bf16.mxu1 %v8389_v2 }
 0xbf9   : > { %5583 = vmatpush1.bf16.msra.mxu1 %v8251_v44 }
 0xbfa   : > { %5584 = vmatprep.subr.bf16.mxu1 %v8389_v2 }
 0xbfd   : > { %5585 = vmatpush1.bf16.msra.mxu1 %v8252_v15 }
 0xbfe   : > { %6108 = vmatprep.subr.bf16.mxu1 %v8255_v60 }
 0xc00   : > { %5599 = vmatmul.mubr.bf16.vlgmr.msra.gmra.mrb[156].mxu1 %v9656_v48  ;;  %v8264_v48 = vld [vmem:[%s10953_s1 + $0xeec] ss:$12 sps:$4 sm:$0xff]  }
 0xc01   : > { %7449 = vmatprep.mubr.msk.bf16.mxu1 %vm3037_vm13, %v9673_v58  ;;  %6109 = vmatpush1.bf16.msra.mxu1 %v8253_v56  ;;  %v8262_v58 = vld [vmem:[%s10953_s1 + $0xee8] ss:$12 sps:$4 sm:$0xff]  }
 0xc02   : > { %6110 = vmatprep.subr.bf16.mxu1 %v8258_v38  ;;  %v8337_v38 = vld [vmem:[%s10953_s1 + $0x1080] ss:$12 sps:$4 sm:$0xff]  }
 0xc05   : > { %6111 = vmatpush1.bf16.msra.mxu1 %v8256_v46 }
 0xc06   : > { %6112 = vmatprep.subr.bf16.mxu1 %v8261_v62  ;;  %v8342_v62 = vld [vmem:[%s10953_s1 + $0x109c] ss:$12 sps:$4 sm:$0xff]  }
 0xc08   : > { %5607 = vmatmul.mubr.bf16.gmra.mrb[160].mxu1 %v9668_v37  ;;  %v8270_v37 = vld [vmem:[%s10953_s1 + $0xf1c] ss:$12 sps:$4 sm:$0xff]  }
 0xc09   : > { %7450 = vmatprep.mubr.msk.bf16.mxu1 %vm3037_vm13, %v10025_v31  ;;  %6113 = vmatpush1.bf16.msra.mxu1 %v8259_v52  ;;  %v8268_v31 = vld [vmem:[%s10953_s1 + $0xf18] ss:$12 sps:$4 sm:$0xff]   ;;  %vm4568_vm13 = vcmp.ge.s32.totalorder %v8652_v10, 5  ;;  %v8345_v52 = vld [vmem:[%s10953_s1 + $0x10b4] ss:$12 sps:$4 sm:$0xff]  }
 0xc0a   : > { %6114 = vmatprep.subr.bf16.mxu1 %v8264_v48  ;;  %vm4572_vm10 = vmand %vm4568_vm13, %vm4570_vm11  ;;  %v8343_v48 = vld [vmem:[%s10953_s1 + $0x10b0] ss:$12 sps:$4 sm:$0xff]  }
 0xc0b   : > { %vm4574_vm6 = vmor %vm4566_vm1, %vm4572_vm10 }
 0xc0c   : > { %v7341_v27 = vsel %vm4574_vm6, 1.0, %v8390_v53 }
 0xc0d   : > { %6115 = vmatpush1.bf16.msra.mxu1 %v8262_v58  ;;  %v8348_v58 = vld [vmem:[%s10953_s1 + $0x10cc] ss:$12 sps:$4 sm:$0xff]  }
 0xc0e   : > { %6116 = vmatprep.subr.bf16.mxu1 %v8267_v29  ;;  %v8351_v29 = vld [vmem:[%s10953_s1 + $0x10e4] ss:$12 sps:$4 sm:$0xff]  }
 0xc10   : > { %5615 = vmatmul.mubr.bf16.gmra.mrb[164].mxu1 %v10044_v6  ;;  %v8276_v6 = vld [vmem:[%s10953_s1 + $0xf4c] ss:$12 sps:$4 sm:$0xff]  }
 0xc11   : > { %6117 = vmatpush1.bf16.msra.mxu1 %v8265_v8  ;;  %7502 = vmatprep.mubr.msk.bf16.mxu1 %vm4058_vm14, %v9896_v50  ;;  %v8274_v50 = vld [vmem:[%s10953_s1 + $0xf48] ss:$12 sps:$4 sm:$0xff]   ;;  %v8349_v8 = vld [vmem:[%s10953_s1 + $0x10e0] ss:$12 sps:$4 sm:$0xff]  }
 0xc12   : > { %6118 = vmatprep.subr.bf16.mxu1 %v8270_v37  ;;  %v8354_v37 = vld [vmem:[%s10953_s1 + $0x10fc] ss:$12 sps:$4 sm:$0xff]  }
 0xc15   : > { %6119 = vmatpush1.bf16.msra.mxu1 %v8268_v31  ;;  %v8352_v31 = vld [vmem:[%s10953_s1 + $0x10f8] ss:$12 sps:$4 sm:$0xff]  }
 0xc16   : > { %6120 = vmatprep.subr.bf16.mxu1 %v8273_v7  ;;  %v8357_v7 = vld [vmem:[%s10953_s1 + $0x1114] ss:$12 sps:$4 sm:$0xff]  }
 0xc19   : > { %6121 = vmatpush1.bf16.msra.mxu1 %v8271_v35  ;;  %v8355_v35 = vld [vmem:[%s10953_s1 + $0x1110] ss:$12 sps:$4 sm:$0xff]  }
 0xc1a   : > { %6122 = vmatprep.subr.bf16.mxu1 %v8276_v6  ;;  %v8360_v6 = vld [vmem:[%s10953_s1 + $0x112c] ss:$12 sps:$4 sm:$0xff]  }
 0xc1d   : > { %6123 = vmatpush1.bf16.msra.mxu1 %v8274_v50  ;;  %v8358_v50 = vld [vmem:[%s10953_s1 + $0x1128] ss:$12 sps:$4 sm:$0xff]  }
 0xc1e   : > { %6124 = vmatprep.subr.bf16.mxu1 %v8279_v21 }
 0xc21   : > { %6125 = vmatpush1.bf16.msra.mxu1 %v8277_v47 }
 0xc22   : > { %6126 = vmatprep.subr.bf16.mxu1 %v8282_v18 }
 0xc25   : > { %6127 = vmatpush1.bf16.msra.mxu1 %v8280_v33 }
 0xc26   : > { %6128 = vmatprep.subr.bf16.mxu1 %v8285_v39 }
 0xc29   : > { %6129 = vmatpush1.bf16.msra.mxu1 %v8283_v26 }
 0xc2a   : > { %6130 = vmatprep.subr.bf16.mxu1 %v8288_v16 }
 0xc2d   : > { %6131 = vmatpush1.bf16.msra.mxu1 %v8286_v40 }
 0xc2e   : > { %6506 = vmatprep.subr.bf16.mxu1 %v8291_v45 }
 0xc30   : > { %6141 = vmatmul.mubr.bf16.vlgmr.msra.gmra.mrb[168].mxu1 %v9894_v54  ;;  %v8309_v54 = vld [vmem:[%s10953_s1 + $0x100c] ss:$12 sps:$4 sm:$0xff]  }
 0xc31   : > { %7503 = vmatprep.mubr.msk.bf16.mxu1 %vm4058_vm14, %v9900_v13  ;;  %6507 = vmatpush1.bf16.msra.mxu1 %v8289_v63  ;;  %v8307_v13 = vld [vmem:[%s10953_s1 + $0x1008] ss:$12 sps:$4 sm:$0xff]   ;;  %vm4585_vm14 = vmand %vm3922_vm5, %vm4583_vm2 }
 0xc32   : > { %6508 = vmatprep.subr.bf16.mxu1 %v8297_v25  ;;  %vm4587_vm15 = vmor %vm4579_vm12, %vm4585_vm14 }
 0xc33   : > { %v7342_v3 = vsel %vm4587_vm15, 1.0, %v8390_v53  ;;  %v8340_v53 = vld [vmem:[%s10953_s1 + $0x1098] ss:$12 sps:$4 sm:$0xff]  }
 0xc35   : > { %6509 = vmatpush1.bf16.msra.mxu1 %v8295_v43 }
 0xc36   : > { %6510 = vmatprep.subr.bf16.mxu1 %v8303_v12 }
 0xc38   : > { %6151 = vmatmul.mubr.bf16.gmra.mrb[172].mxu1 %v9905_v61  ;;  %v8321_v61 = vld [vmem:[%s10953_s1 + $0x103c] ss:$12 sps:$4 sm:$0xff]  }
 0xc39   : > { %6511 = vmatpush1.bf16.msra.mxu1 %v8301_v36  ;;  %6538 = vmatprep.mubr.bf16.mxu1 %v8389_v2 }
 0xc3a   : > { %6512 = vmatprep.subr.bf16.mxu1 %v8309_v54 }
 0xc3d   : > { %6513 = vmatpush1.bf16.msra.mxu1 %v8307_v13 }
 0xc3e   : > { %6514 = vmatprep.subr.bf16.mxu1 %v8315_v11 }
 0xc41   : > { %6515 = vmatpush1.bf16.msra.mxu1 %v8313_v59 }
 0xc42   : > { %6516 = vmatprep.subr.bf16.mxu1 %v8321_v61 }
 0xc45   : > { %6517 = vmatpush1.bf16.msra.mxu1 %v8319_v28 }
 0xc46   : > { %6518 = vmatprep.subr.bf16.mxu1 %v8327_v49 }
 0xc49   : > { %6519 = vmatpush1.bf16.msra.mxu1 %v8325_v14 }
 0xc4a   : > { %6520 = vmatprep.subr.bf16.mxu1 %v8333_v24 }
 0xc4d   : > { %6521 = vmatpush1.bf16.msra.mxu1 %v8331_v23 }
 0xc4e   : > { %6800 = vmatprep.subr.bf16.mxu1 %v8339_v51 }
 0xc5b   : > { %v4555_v30 = vpop.f32.mrb[124].mxu1 }
 0xc5c   : > { %v7685_v41 = vadd.f32 %v4555_v30, %v4121_v0  ;;  %v7683_v34 = vpop.f32.mrb[125].mxu1 }
 0xc5d   : > { %v4558_v32 = vpop.f32.mrb[126].mxu1 }
 0xc5e   : > { %v4592_v1 = vmul.f32 %v7685_v41, %v7341_v27  ;;  %v7686_v44 = vadd.f32 %v4558_v32, %v4121_v0  ;;  %v7684_v15 = vpop.f32.mrb[127].mxu1 }
 0xc60   : > { %v4593_v60 = vmul.f32 %v7686_v44, %v7342_v3  ;;  %v4594_v4 = vmax.f32 %v4592_v1, 0.0 }
 0xc62   : > { %v4595_v56 = vmax.f32 %v4593_v60, 0.0 }
 0xc64   : > { %v6409_v46 = vpack.c.bf16 %v4595_v56, %v4594_v4 }
 0xc66   : > { %6539 = vmatmul.mubr.bf16.vlgmr.msra.gmra.mrb[176].mxu1 %v6409_v46  ;;  %6694 = vmatmul.mubr.bf16.vlgmr.msra.gmra.mrb[196].mxu0 %v6409_v46 }
 0xc67   : > { %6801 = vmatpush1.bf16.msra.mxu1 %v8337_v38  ;;  %6832 = vmatprep.mubr.bf16.mxu1 %v8389_v2  ;;  %v8346_v2 = vld [vmem:[%s10953_s1 + $0x10c8] ss:$12 sps:$4 sm:$0xff]  }
 0xc68   : > { %6802 = vmatprep.subr.bf16.mxu1 %v8342_v62 }
 0xc6b   : > { %6803 = vmatpush1.bf16.msra.mxu1 %v8340_v53 }
 0xc6c   : > { %6804 = vmatprep.subr.bf16.mxu1 %v8345_v52  ;;  %v5710_v52 = vsub.s32 2, %v8652_v10 }
 0xc6f   : > { %6805 = vmatpush1.bf16.msra.mxu1 %v8343_v48 }
 0xc70   : > { %6806 = vmatprep.subr.bf16.mxu1 %v8348_v58 }
 0xc73   : > { %6807 = vmatpush1.bf16.msra.mxu1 %v8346_v2 }
 0xc74   : > { %6808 = vmatprep.subr.bf16.mxu1 %v8351_v29  ;;  %v5711_v29 = vrot.slane %v10421_v57, %v5710_v52 }
 0xc77   : > { %6809 = vmatpush1.bf16.msra.mxu1 %v8349_v8 }
 0xc78   : > { %6810 = vmatprep.subr.bf16.mxu1 %v8354_v37 }
 0xc7b   : > { %6811 = vmatpush1.bf16.msra.mxu1 %v8352_v31 }
 0xc7c   : > { %6812 = vmatprep.subr.bf16.mxu1 %v8357_v7 }
 0xc7f   : > { %6813 = vmatpush1.bf16.msra.mxu1 %v8355_v35 }
 0xc80   : > { %6814 = vmatprep.subr.bf16.mxu1 %v8360_v6 }
 0xc83   : > { %6815 = vmatpush1.bf16.msra.mxu1 %v8358_v50  ;;  %v4906_v21 = vpop.f32.mrb[132].mxu1 }
 0xc84   : > { %v4908_v47 = vpop.f32.mrb[133].mxu1  ;;  %v5302_v33 = vrot.slane %v4906_v21, 7 }
 0xc85   : > { %v4909_v18 = vpop.f32.mrb[134].mxu1 }
 0xc86   : > { %v5307_v39 = vrot.slane %v4909_v18, 7  ;;  %6833 = vmatmul.mubr.bf16.vlgmr.msra.gmra.mrb[180].mxu1 %v6409_v46  ;;  %v4911_v26 = vpop.f32.mrb[135].mxu1  ;;  %v5344_v48 = vsel %vm583_vm7, 0.0, %v5302_v33 }
 0xc88   : > { %v5308_v16 = vsel %vm583_vm7, %v5302_v33, %v5307_v39 }
 0xc8b   : > { %v4914_v40 = vpop.f32.mrb[136].mxu1 }
 0xc8c   : > { %v5313_v45 = vrot.slane %v4914_v40, 7  ;;  %v4916_v63 = vpop.f32.mrb[137].mxu1 }
 0xc8d   : > { %v4917_v25 = vpop.f32.mrb[138].mxu1 }
 0xc8e   : > { %v5319_v43 = vrot.slane %v4917_v25, 7  ;;  %v4919_v12 = vpop.f32.mrb[139].mxu1  ;;  %v5314_v36 = vsel %vm583_vm7, %v5307_v39, %v5313_v45 }
 0xc90   : > { %v5320_v54 = vsel %vm583_vm7, %v5313_v45, %v5319_v43 }
 0xc93   : > { %v4922_v13 = vpop.f32.mrb[140].mxu1 }
 0xc94   : > { %v5325_v11 = vrot.slane %v4922_v13, 7  ;;  %v4924_v59 = vpop.f32.mrb[141].mxu1 }
 0xc95   : > { %v4925_v61 = vpop.f32.mrb[142].mxu1 }
 0xc96   : > { %v4926_v28 = vpop.f32.mrb[143].mxu1  ;;  %v5326_v49 = vsel %vm583_vm7, %v5319_v43, %v5325_v11 }
 0xcab   : > { %v5263_v14 = vpop.f32.mrb[144].mxu1 }
 0xcac   : > { %v5265_v24 = vpop.f32.mrb[145].mxu1  ;;  %v5643_v51 = vrot.slane %v5263_v14, 1 }
 0xcad   : > { %v5266_v23 = vpop.f32.mrb[146].mxu1 }
 0xcae   : > { %v5644_v0 = vrot.slane %v5266_v23, 1  ;;  %v5268_v30 = vpop.f32.mrb[147].mxu1 }
 0xcb0   : > { %v5645_v27 = vsel %vm778_vm8, %v5643_v51, %v5644_v0 }
 0xcb3   : > { %v5271_v41 = vpop.f32.mrb[148].mxu1 }
 0xcb4   : > { %v5650_v34 = vrot.slane %v5271_v41, 1  ;;  %v5273_v32 = vpop.f32.mrb[149].mxu1 }
 0xcb5   : > { %v5274_v3 = vpop.f32.mrb[150].mxu1 }
 0xcb6   : > { %v5656_v1 = vrot.slane %v5274_v3, 1  ;;  %v5276_v44 = vpop.f32.mrb[151].mxu1  ;;  %v5651_v15 = vsel %vm778_vm8, %v5644_v0, %v5650_v34 }
 0xcb8   : > { %v5657_v60 = vsel %vm778_vm8, %v5650_v34, %v5656_v1 }
 0xcbb   : > { %v5279_v4 = vpop.f32.mrb[152].mxu1 }
 0xcbc   : > { %v5662_v56 = vrot.slane %v5279_v4, 1  ;;  %v5281_v38 = vpop.f32.mrb[153].mxu1 }
 0xcbd   : > { %v5282_v46 = vpop.f32.mrb[154].mxu1 }
 0xcbe   : > { %v5283_v62 = vpop.f32.mrb[155].mxu1  ;;  %v5663_v53 = vsel %vm778_vm8, %v5656_v1, %v5662_v56  ;;  %v5681_v12 = vsel %vm778_vm8, %v5662_v56, 0.0 }
 0xcd3   : > { %v5600_v58 = vpop.f32.mrb[156].mxu1 }
 0xcd4   : > { %v5601_v2 = vadd.f32 %v5600_v58, %v5344_v48  ;;  %v5602_v8 = vpop.f32.mrb[157].mxu1 }
 0xcd5   : > { %v5603_v37 = vpop.f32.mrb[158].mxu1 }
 0xcd6   : > { %v5684_v31 = vadd.f32 %v5645_v27, %v5601_v2  ;;  %v5604_v7 = vadd.f32 %v5603_v37, %v5308_v16  ;;  %v5605_v35 = vpop.f32.mrb[159].mxu1 }
 0xcd8   : > { %v5717_v6 = vadd.f32 %v5711_v29, %v5684_v31  ;;  %v5687_v50 = vadd.f32 %v5651_v15, %v5604_v7 }
 0xcda   : > { %5732 = vst [vmem:[%s10438_s26 + $0x10] sm:$0xff] %v5717_v6  ;;  %v5720_v21 = vadd.f32 %v5711_v29, %v5687_v50 }
 0xcdb   : > { %v5608_v47 = vpop.f32.mrb[160].mxu1 }
 0xcdc   : > { %5735 = vst [vmem:[%s10438_s26 + $0x28] sm:$0xff] %v5720_v21  ;;  %v5609_v10 = vadd.f32 %v5608_v47, %v5314_v36  ;;  %v5610_v18 = vpop.f32.mrb[161].mxu1 }
 0xcdd   : > { %v5611_v33 = vpop.f32.mrb[162].mxu1 }
 0xcde   : > { %v5690_v39 = vadd.f32 %v5657_v60, %v5609_v10  ;;  %v5612_v26 = vadd.f32 %v5611_v33, %v5320_v54  ;;  %v5613_v57 = vpop.f32.mrb[163].mxu1  ;;  %v7530_v54 = vld [vmem:[%s10954_s2 + $0x7] ss:$8 sm:$0x3] }
 0xcdf   : > { %v6390_v0 = vrot.slane %v7530_v54, %v8766_v9  ;;  %v6394_v41 = vrot.slane %v7530_v54, %v8778_v19 }
 0xce0   : > { %v5723_v40 = vadd.f32 %v5711_v29, %v5690_v39  ;;  %v5693_v45 = vadd.f32 %v5663_v53, %v5612_v26 }
 0xce2   : > { %5738 = vst [vmem:[%s10438_s26 + $0x40] sm:$0xff] %v5723_v40  ;;  %v5726_v16 = vadd.f32 %v5711_v29, %v5693_v45 }
 0xce3   : > { %v5616_v63 = vpop.f32.mrb[164].mxu1 }
 0xce4   : > { %5741 = vst [vmem:[%s10438_s26 + $0x58] sm:$0xff] %v5726_v16  ;;  %v5617_v25 = vadd.f32 %v5616_v63, %v5326_v49  ;;  %v5618_v43 = vpop.f32.mrb[165].mxu1 }
 0xce5   : > { %v5619_v13 = vpop.f32.mrb[166].mxu1 }
 0xce6   : > { %v5696_v11 = vadd.f32 %v5681_v12, %v5617_v25  ;;  %v5620_v36 = vpop.f32.mrb[167].mxu1  ;;  %v7579_v25 = vld [vmem:[%s10954_s2 + $0x18] ss:$8 sm:$0x3] }
 0xce8   : > { %v5729_v59 = vadd.f32 %v5711_v29, %v5696_v11  ;;  %v6869_v11 = vrot.slane %v7579_v25, %v8766_v9 }
 0xcea   : > { %5744 = vst [vmem:[%s10438_s26 + $0x70] sm:$0xff] %v5729_v59 }
 0xd03   : > { %v6142_v61 = vpop.f32.mrb[168].mxu1 }
 0xd04   : > { %v6144_v28 = vpop.f32.mrb[169].mxu1  ;;  %v6360_v24 = vrot.slane %v6142_v61, 1 }
 0xd05   : > { %v6146_v14 = vpop.f32.mrb[170].mxu1  ;;  %v6363_v49 = vrot.slane %v6144_v28, 1  ;;  %v6873_v28 = vrot.slane %v7579_v25, %v8778_v19 }
 0xd06   : > { %v6361_v23 = vrot.slane %v6146_v14, 1  ;;  %v6148_v51 = vpop.f32.mrb[171].mxu1 }
 0xd07   : > { %v6364_v30 = vrot.slane %v6148_v51, 1 }
 0xd08   : > { %v6362_v27 = vsel %vm778_vm8, %v6360_v24, %v6361_v23 }
 0xd09   : > { %v6378_v34 = vadd.f32 %v6362_v27, %v10464_v55  ;;  %v6365_v32 = vsel %vm778_vm8, %v6363_v49, %v6364_v30 }
 0xd0a   : > { %v6379_v3 = vadd.f32 %v6365_v32, %v10467_v42 }
 0xd0b   : > { %v6397_v1 = vadd.f32 %v6390_v0, %v6378_v34  ;;  %v6152_v44 = vpop.f32.mrb[172].mxu1 }
 0xd0c   : > { %v6398_v15 = vadd.f32 %v6394_v41, %v6379_v3  ;;  %v6366_v60 = vrot.slane %v6152_v44, 1  ;;  %v6154_v4 = vpop.f32.mrb[173].mxu1 }
 0xd0d   : > { %6403 = vst [vmem:[%s244_s29] sm:$0xff] %v6397_v1  ;;  %v6368_v56 = vrot.slane %v6154_v4, 1  ;;  %v6156_v38 = vpop.f32.mrb[174].mxu1 }
 0xd0e   : > { %6404 = vst [vmem:[%s244_s29 + $0x8] sm:$0xff] %v6398_v15  ;;  %v6367_v46 = vsel %vm778_vm8, %v6361_v23, %v6366_v60  ;;  %v6376_v55 = vsel %vm778_vm8, %v6366_v60, 0.0  ;;  %v6157_v62 = vpop.f32.mrb[175].mxu1 }
 0xd0f   : > { %v6380_v53 = vadd.f32 %v6367_v46, %v10472_v20  ;;  %v6382_v52 = vadd.f32 %v6376_v55, %v10483_v17  ;;  %v6369_v42 = vsel %vm778_vm8, %v6364_v30, %v6368_v56  ;;  %v6377_v48 = vsel %vm778_vm8, %v6368_v56, 0.0 }
 0xd10   : > { %v6381_v58 = vadd.f32 %v6369_v42, %v10474_v22  ;;  %v6383_v2 = vadd.f32 %v6377_v48, %v10485_v5 }
 0xd11   : > { %v6399_v29 = vadd.f32 %v6390_v0, %v6380_v53  ;;  %v6401_v8 = vadd.f32 %v6390_v0, %v6382_v52 }
 0xd12   : > { %v6400_v37 = vadd.f32 %v6394_v41, %v6381_v58  ;;  %v6402_v31 = vadd.f32 %v6394_v41, %v6383_v2 }
 0xd13   : > { %6405 = vst [vmem:[%s244_s29 + $0x10] sm:$0xff] %v6399_v29  ;;  %6407 = vst [vmem:[%s244_s29 + $0x20] sm:$0xff] %v6401_v8 }
 0xd14   : > { %6406 = vst [vmem:[%s244_s29 + $0x18] sm:$0xff] %v6400_v37  ;;  %6408 = vst [vmem:[%s244_s29 + $0x28] sm:$0xff] %v6402_v31 }
 0xd39   : > { %v6540_v7 = vpop.f32.mrb[176].mxu1  ;;  %v6695_v20 = vpop.f32.mrb[196].mxu0 }
 0xd3a   : > { %v6542_v35 = vpop.f32.mrb[177].mxu1  ;;  %v6697_v17 = vpop.f32.mrb[197].mxu0  ;;  %v6708_v21 = vrot.slane %v6540_v7, 7  ;;  %v6847_v47 = vrot.slane %v6695_v20, 1 }
 0xd3b   : > { %v6544_v6 = vpop.f32.mrb[178].mxu1  ;;  %v6699_v50 = vpop.f32.mrb[198].mxu0  ;;  %v6709_v33 = vrot.slane %v6542_v35, 7  ;;  %v6850_v39 = vrot.slane %v6697_v17, 1 }
 0xd3c   : > { %v6710_v22 = vrot.slane %v6544_v6, 7  ;;  %v6848_v10 = vrot.slane %v6699_v50, 1  ;;  %v6546_v5 = vpop.f32.mrb[179].mxu1  ;;  %v6701_v18 = vpop.f32.mrb[199].mxu0  ;;  %v6718_v43 = vsel %vm583_vm7, 0.0, %v6708_v21 }
 0xd3d   : > { %v6712_v26 = vrot.slane %v6546_v5, 7  ;;  %v6851_v57 = vrot.slane %v6701_v18, 1  ;;  %v6719_v36 = vsel %vm583_vm7, 0.0, %v6709_v33 }
 0xd3e   : > { %v6849_v40 = vsel %vm778_vm8, %v6847_v47, %v6848_v10  ;;  %v6711_v45 = vsel %vm583_vm7, %v6708_v21, %v6710_v22  ;;  %v6857_v51 = vsel %vm778_vm8, %v6848_v10, 0.0 }
 0xd3f   : > { %v6852_v16 = vsel %vm778_vm8, %v6850_v39, %v6851_v57  ;;  %v6713_v63 = vsel %vm583_vm7, %v6709_v33, %v6712_v26  ;;  %v6858_v9 = vsel %vm778_vm8, %v6851_v57, 0.0 }
 0xd59   : > { %v6834_v12 = vpop.f32.mrb[180].mxu1 }
 0xd5a   : > { %v6835_v13 = vadd.f32 %v6834_v12, %v6718_v43  ;;  %v6836_v59 = vpop.f32.mrb[181].mxu1 }
 0xd5b   : > { %v6837_v61 = vadd.f32 %v6836_v59, %v6719_v36  ;;  %v6838_v54 = vpop.f32.mrb[182].mxu1 }
 0xd5c   : > { %v6859_v14 = vadd.f32 %v6849_v40, %v6835_v13  ;;  %v6839_v24 = vadd.f32 %v6838_v54, %v6711_v45  ;;  %v6840_v23 = vpop.f32.mrb[183].mxu1 }
 0xd5d   : > { %v6860_v49 = vadd.f32 %v6852_v16, %v6837_v61  ;;  %v6841_v0 = vadd.f32 %v6840_v23, %v6713_v63 }
 0xd5e   : > { %v6876_v30 = vadd.f32 %v6869_v11, %v6859_v14  ;;  %v6861_v27 = vadd.f32 %v6857_v51, %v6839_v24 }
 0xd5f   : > { %v6877_v41 = vadd.f32 %v6873_v28, %v6860_v49  ;;  %v6862_v34 = vadd.f32 %v6858_v9, %v6841_v0 }
 0xd60   : > { %6880 = vst [vmem:[%s249_s10] sm:$0xff] %v6876_v30  ;;  %v6878_v19 = vadd.f32 %v6869_v11, %v6861_v27 }
 0xd61   : > { %6881 = vst [vmem:[%s249_s10 + $0x8] sm:$0xff] %v6877_v41  ;;  %v6879_v32 = vadd.f32 %v6873_v28, %v6862_v34 }
 0xd62   : > { %6882 = vst [vmem:[%s249_s10 + $0x10] sm:$0xff] %v6878_v19 }
 0xd63   : > { %6883 = vst [vmem:[%s249_s10 + $0x18] sm:$0xff] %v6879_v32 }
 0xd64 PF: > { %s16_s18 = sadd.s32 1, %s8387_s18  }
 0xd65   : > { %p13_p4 = scmp.ge.s32.totalorder %s16_s18, 4  }
 0xd67   :  { %15 = sbr.rel (!%p13_p4) target bundleno = 1 (0x1), region = 93 }

</bundles_post_ra>
